<compile_context>
chip_gen: v7x
topology: tpu7x:2x2x1
jax: 0.10.0
libtpu: 0.0.40
codegen_flags: <defaults>
</compile_context>

<pallas_src>
import functools
import math

import jax
import jax.numpy as jnp
from jax.experimental import pallas as pl
from jax.experimental.pallas import tpu as pltpu

# ---------------- small BERT config (stand-in for bert-base-uncased) --------
HIDDEN = 32          # stands in for 768
N_HEADS = 2
HEAD_DIM = HIDDEN // N_HEADS
INTERMEDIATE = 64    # stands in for 3072
N_LAYERS = 2         # stands in for 12
VOCAB = 64
MAX_POS = 16
TYPE_VOCAB = 2
LN_EPS = 1e-12
BLOCK_BATCH = 2      # batch rows processed per grid step ("parallel" axis)


# =========================== fused BERT kernel ===============================
def _bert_fused_kernel(emb_ref, mask_ref,
                       eg_ref, eb_ref,
                       qkv_w_ref, qkv_b_ref, o_w_ref, o_b_ref,
                       ln1_g_ref, ln1_b_ref,
                       i_w_ref, i_b_ref, f_w_ref, f_b_ref,
                       ln2_g_ref, ln2_b_ref,
                       pool_w_ref, pool_b_ref,
                       cls_ref, pooled_ref,
                       *, bb, seq, n_heads, head_dim, n_layers, eps):
    """One full BERT forward for a block of `bb` examples.

    emb_ref : (bb*seq, H)  word+pos+type embedding sum (f32)
    mask_ref: (bb, 1, seq) additive attention bias (f32)
    weights : stacked per-layer tensors (matmul weights in bf16, rest f32)
    cls_ref / pooled_ref: (1, bb, H) outputs.
    """
    hidden = n_heads * head_dim
    inv_sqrt_d = 1.0 / math.sqrt(head_dim)

    def ln(x, g, b):  # f32 layernorm over the last axis
        mu = jnp.mean(x, axis=-1, keepdims=True)
        var = jnp.mean(jnp.square(x - mu), axis=-1, keepdims=True)
        return (x - mu) * jax.lax.rsqrt(var + eps) * g + b

    def mm(a, w):  # bf16 MXU matmul with f32 accumulation
        return jnp.dot(a.astype(jnp.bfloat16), w.astype(jnp.bfloat16),
                       preferred_element_type=jnp.float32)

    x = ln(emb_ref[...], eg_ref[...], eb_ref[...])         # (bb*seq, H) f32
    bias = mask_ref[...]                                    # (bb, 1, seq) f32

    for l in range(n_layers):                               # static unroll
        # ---- fused QKV projection: one (H, 3H) matmul --------------------
        qkv = mm(x, qkv_w_ref[l]) + qkv_b_ref[l]            # (bb*seq, 3H)

        # ---- per-(example, head) attention, all in-register ---------------
        ctx_rows = []
        for b in range(bb):
            row0 = b * seq
            rows = slice(row0, row0 + seq)
            bias_b = bias[b]                                # (1, seq)
            head_ctx = []
            for h in range(n_heads):
                c0 = h * head_dim
                q = qkv[rows, c0:c0 + head_dim]                          # (seq, hd)
                k = qkv[rows, hidden + c0:hidden + c0 + head_dim]        # (seq, hd)
                v = qkv[rows, 2 * hidden + c0:2 * hidden + c0 + head_dim]
                s = jnp.dot(q.astype(jnp.bfloat16),
                            k.astype(jnp.bfloat16).T,
                            preferred_element_type=jnp.float32)          # (seq, seq)
                s = s * inv_sqrt_d + bias_b
                s = s - jnp.max(s, axis=-1, keepdims=True)
                p = jnp.exp(s)
                p = p / jnp.sum(p, axis=-1, keepdims=True)               # f32 softmax
                head_ctx.append(mm(p, v))                                # (seq, hd)
            ctx_rows.append(jnp.concatenate(head_ctx, axis=-1))          # (seq, H)
        ctx = jnp.concatenate(ctx_rows, axis=0)                          # (bb*seq, H)

        # ---- output projection + residual LN ------------------------------
        attn_out = mm(ctx, o_w_ref[l]) + o_b_ref[l]
        x = ln(attn_out + x, ln1_g_ref[l], ln1_b_ref[l])

        # ---- FFN: GELU(erf) + residual LN ----------------------------------
        h1 = mm(x, i_w_ref[l]) + i_b_ref[l]
        h1 = 0.5 * h1 * (1.0 + jax.lax.erf(h1 * (1.0 / math.sqrt(2.0))))
        h2 = mm(h1, f_w_ref[l]) + f_b_ref[l]
        x = ln(h2 + x, ln2_g_ref[l], ln2_b_ref[l])

    # ---- CLS hidden state + BertPooler -------------------------------------
    cls = jnp.concatenate([x[b * seq:b * seq + 1, :] for b in range(bb)], axis=0)
    pooled = jnp.tanh(mm(cls, pool_w_ref[...]) + pool_b_ref[...])        # (bb, H)

    cls_ref[...] = cls[None].astype(cls_ref.dtype)                       # (1, bb, H)
    pooled_ref[...] = pooled[None].astype(pooled_ref.dtype)


def bert_forward(params, input_ids, attention_mask=None, token_type_ids=None,
                 *, block_batch=BLOCK_BATCH):
    """Fused BertModel forward. Returns (cls_hidden (B,H), pooled_output (B,H))."""
    B, S = input_ids.shape
    if attention_mask is None:
        attention_mask = jnp.ones((B, S), jnp.float32)
    if token_type_ids is None:
        token_type_ids = jnp.zeros((B, S), jnp.int32)

    bb = min(block_batch, B)
    assert B % bb == 0, "batch must be divisible by block_batch"
    n_blocks = B // bb

    # TODO(synk): embedding-table gathers stay in plain JAX glue (dynamic
    # lookup); everything downstream runs inside the fused Pallas kernel.
    pos_ids = jnp.arange(S)
    emb = (params["word_emb"][input_ids]
           + params["pos_emb"][pos_ids][None, :, :]
           + params["type_emb"][token_type_ids]).reshape(B * S, HIDDEN)
    mask_bias = ((1.0 - attention_mask.astype(jnp.float32)) * -10000.0
                 ).reshape(B, 1, S)

    weight_names = ("emb_ln_g", "emb_ln_b", "qkv_w", "qkv_b", "o_w", "o_b",
                    "ln1_g", "ln1_b", "i_w", "i_b", "f_w", "f_b",
                    "ln2_g", "ln2_b", "pool_w", "pool_b")
    weights = [params[name] for name in weight_names]

    def full_spec(arr):
        n = arr.ndim
        return pl.BlockSpec(arr.shape, lambda b, _n=n: (0,) * _n)

    kernel = functools.partial(
        _bert_fused_kernel, bb=bb, seq=S, n_heads=N_HEADS,
        head_dim=HEAD_DIM, n_layers=N_LAYERS, eps=LN_EPS)

    cls3, pooled3 = pl.pallas_call(
        kernel,
        out_shape=(jax.ShapeDtypeStruct((n_blocks, bb, HIDDEN), jnp.float32),
                   jax.ShapeDtypeStruct((n_blocks, bb, HIDDEN), jnp.float32)),
        grid_spec=pltpu.PrefetchScalarGridSpec(
            num_scalar_prefetch=0,
            grid=(n_blocks,),
            in_specs=[pl.BlockSpec((bb * S, HIDDEN), lambda b: (b, 0)),
                      pl.BlockSpec((bb, 1, S), lambda b: (b, 0, 0))]
                     + [full_spec(w) for w in weights],
            out_specs=[pl.BlockSpec((1, bb, HIDDEN), lambda b: (b, 0, 0)),
                       pl.BlockSpec((1, bb, HIDDEN), lambda b: (b, 0, 0))]),
        compiler_params=pltpu.CompilerParams(
            dimension_semantics=("parallel",)),
    )(emb, mask_bias, *weights)

    return cls3.reshape(B, HIDDEN), pooled3.reshape(B, HIDDEN)


# =========================== classifier head kernel ==========================
def _head_kernel(p_ref, r_ref, sc_ref, bc_ref, w_ref, b_ref, o_ref):
    """score = tanh(cat(pooled, r_pooled, sc - bc)) @ W + b.
    tanh is elementwise, so the concat is realized as three chunk-wise matmuls
    against static slices of W.  Dropout(0.1) is identity at eval time."""
    h = p_ref.shape[-1]
    y1 = jnp.tanh(p_ref[...]).astype(jnp.bfloat16)
    y2 = jnp.tanh(r_ref[...]).astype(jnp.bfloat16)
    y3 = jnp.tanh(sc_ref[...] - bc_ref[...]).astype(jnp.bfloat16)
    w = w_ref[...]
    o = jnp.dot(y1, w[0:h, :], preferred_element_type=jnp.float32)
    o = o + jnp.dot(y2, w[h:2 * h, :], preferred_element_type=jnp.float32)
    o = o + jnp.dot(y3, w[2 * h:3 * h, :], preferred_element_type=jnp.float32)
    o_ref[...] = (o + b_ref[...]).astype(o_ref.dtype)


# =========================== parameters =====================================
def init_bert_params(key):
    ks = jax.random.split(key, 8)

    def nrm(k, shape):
        return 0.02 * jax.random.normal(k, shape, jnp.float32)

    L, H, I = N_LAYERS, HIDDEN, INTERMEDIATE
    return {
        "word_emb": nrm(ks[0], (VOCAB, H)),
        "pos_emb": nrm(ks[1], (MAX_POS, H)),
        "type_emb": nrm(ks[2], (TYPE_VOCAB, H)),
        "emb_ln_g": jnp.ones((1, H), jnp.float32),
        "emb_ln_b": jnp.zeros((1, H), jnp.float32),
        # fused QKV weight (H, 3H), stacked over layers; matmul weights in bf16
        "qkv_w": nrm(ks[3], (L, H, 3 * H)).astype(jnp.bfloat16),
        "qkv_b": jnp.zeros((L, 1, 3 * H), jnp.float32),
        "o_w": nrm(ks[4], (L, H, H)).astype(jnp.bfloat16),
        "o_b": jnp.zeros((L, 1, H), jnp.float32),
        "ln1_g": jnp.ones((L, 1, H), jnp.float32),
        "ln1_b": jnp.zeros((L, 1, H), jnp.float32),
        "i_w": nrm(ks[5], (L, H, I)).astype(jnp.bfloat16),
        "i_b": jnp.zeros((L, 1, I), jnp.float32),
        "f_w": nrm(ks[6], (L, I, H)).astype(jnp.bfloat16),
        "f_b": jnp.zeros((L, 1, H), jnp.float32),
        "ln2_g": jnp.ones((L, 1, H), jnp.float32),
        "ln2_b": jnp.zeros((L, 1, H), jnp.float32),
        "pool_w": nrm(ks[7], (H, H)).astype(jnp.bfloat16),
        "pool_b": jnp.zeros((1, H), jnp.float32),
    }


# =========================== CusArgModel forward =============================
def cus_arg_model_forward(params, inp, attention_mask, input_type_mask,
                          r_inp, r_attention_mask, r_input_type_mask, bc, sc):
    Bm = inp.shape[0]

    # Shared-weight NSP BERT: batch the (inp, r_inp) calls into one pass.
    nsp_ids = jnp.concatenate([inp, r_inp], axis=0)
    nsp_mask = jnp.concatenate([attention_mask, r_attention_mask], axis=0)
    nsp_types = jnp.concatenate([input_type_mask, r_input_type_mask], axis=0)
    _, nsp_pooled = bert_forward(params["bert_model"], nsp_ids, nsp_mask, nsp_types)
    pooled_output = nsp_pooled[:Bm]
    r_pooled_output = nsp_pooled[Bm:]

    # Text BERT: batch (bc, sc).  The sc/bc variable-name swap of the original
    # torch code is preserved: sc_output <- bert_text(bc), bc_output <- bert_text(sc).
    text_ids = jnp.concatenate([bc, sc], axis=0)
    text_cls, _ = bert_forward(params["bert_text"], text_ids)
    sc_output = text_cls[:Bm]
    bc_output = text_cls[Bm:]

    # cat -> dropout(identity, eval) -> tanh -> Linear(3H, 2), fused.
    score = pl.pallas_call(
        _head_kernel,
        out_shape=jax.ShapeDtypeStruct((Bm, 2), jnp.float32),
    )(pooled_output, r_pooled_output, sc_output, bc_output,
      params["cls_w"], params["cls_b"])
    return (score,)


# ================================= main ======================================
if __name__ == "__main__":
    key = jax.random.PRNGKey(0)
    k_bert_a, k_bert_b, k_cls, k_in = jax.random.split(key, 4)

    params = {
        "bert_model": init_bert_params(k_bert_a),   # CusBertForNextSentencePrediction.bert
        "bert_text": init_bert_params(k_bert_b),    # self.bert_text
        "cls_w": (0.02 * jax.random.normal(k_cls, (3 * HIDDEN, 2), jnp.float32)
                  ).astype(jnp.bfloat16),
        "cls_b": jnp.zeros((1, 2), jnp.float32),
    }

    B, S = 2, 8
    kk = jax.random.split(k_in, 4)
    inp = jax.random.randint(kk[0], (B, S), 0, VOCAB)
    r_inp = jax.random.randint(kk[1], (B, S), 0, VOCAB)
    bc = jax.random.randint(kk[2], (B, S), 0, VOCAB)
    sc = jax.random.randint(kk[3], (B, S), 0, VOCAB)
    attention_mask = jnp.ones((B, S), jnp.float32)
    r_attention_mask = jnp.ones((B, S), jnp.float32)
    input_type_mask = jnp.concatenate(
        [jnp.zeros((B, S // 2), jnp.int32), jnp.ones((B, S // 2), jnp.int32)], axis=-1)
    r_input_type_mask = input_type_mask

    forward = jax.jit(cus_arg_model_forward)
    outputs = forward(params, inp, attention_mask, input_type_mask,
                      r_inp, r_attention_mask, r_input_type_mask, bc, sc)
    jax.block_until_ready(outputs)
    assert outputs[0].shape == (B, 2)
    print("KERNEL_OK")
</pallas_src>

<mosaic_0001>
module attributes {stable_mosaic.version = 11 : i64} {
  func.func @_head_kernel(%arg0: memref<2x32xf32, #tpu.memory_space<vmem>>, %arg1: memref<2x32xf32, #tpu.memory_space<vmem>>, %arg2: memref<2x32xf32, #tpu.memory_space<vmem>>, %arg3: memref<2x32xf32, #tpu.memory_space<vmem>>, %arg4: memref<96x2xbf16, #tpu.memory_space<vmem>>, %arg5: memref<1x2xf32, #tpu.memory_space<vmem>>, %arg6: memref<2x2xf32, #tpu.memory_space<vmem>>) attributes {dimension_semantics = [], scalar_prefetch = 0 : i64, scratch_operands = 0 : i64, tpu.core_type = #tpu.core_type<tc>} {
    %c0 = arith.constant 0 : index
    %c0_0 = arith.constant 0 : index
    %0 = vector.load %arg0[%c0, %c0_0] : memref<2x32xf32, #tpu.memory_space<vmem>>, vector<2x32xf32>
    %1 = math.tanh %0 : vector<2x32xf32>
    %2 = arith.truncf %1 : vector<2x32xf32> to vector<2x32xbf16>
    %c0_1 = arith.constant 0 : index
    %c0_2 = arith.constant 0 : index
    %3 = vector.load %arg1[%c0_1, %c0_2] : memref<2x32xf32, #tpu.memory_space<vmem>>, vector<2x32xf32>
    %4 = math.tanh %3 : vector<2x32xf32>
    %5 = arith.truncf %4 : vector<2x32xf32> to vector<2x32xbf16>
    %c0_3 = arith.constant 0 : index
    %c0_4 = arith.constant 0 : index
    %6 = vector.load %arg2[%c0_3, %c0_4] : memref<2x32xf32, #tpu.memory_space<vmem>>, vector<2x32xf32>
    %c0_5 = arith.constant 0 : index
    %c0_6 = arith.constant 0 : index
    %7 = vector.load %arg3[%c0_5, %c0_6] : memref<2x32xf32, #tpu.memory_space<vmem>>, vector<2x32xf32>
    %8 = arith.subf %6, %7 : vector<2x32xf32>
    %9 = math.tanh %8 : vector<2x32xf32>
    %10 = arith.truncf %9 : vector<2x32xf32> to vector<2x32xbf16>
    %c0_7 = arith.constant 0 : index
    %c0_8 = arith.constant 0 : index
    %11 = vector.load %arg4[%c0_7, %c0_8] : memref<96x2xbf16, #tpu.memory_space<vmem>>, vector<96x2xbf16>
    %12 = vector.extract_strided_slice %11 {offsets = [0, 0], sizes = [32, 2], strides = [1, 1]} : vector<96x2xbf16> to vector<32x2xbf16>
    %cst = arith.constant dense<0.000000e+00> : vector<2x2xf32>
    %13 = tpu.matmul %2, %12, %cst {dimension_numbers = #tpu.dot_dimension_numbers<[1], [0], [0], [1], [0, 0, 1, 1], [], []>} : vector<2x32xbf16>, vector<32x2xbf16>, vector<2x2xf32> -> vector<2x2xf32>
    %14 = vector.extract_strided_slice %11 {offsets = [32, 0], sizes = [32, 2], strides = [1, 1]} : vector<96x2xbf16> to vector<32x2xbf16>
    %cst_9 = arith.constant dense<0.000000e+00> : vector<2x2xf32>
    %15 = tpu.matmul %5, %14, %cst_9 {dimension_numbers = #tpu.dot_dimension_numbers<[1], [0], [0], [1], [0, 0, 1, 1], [], []>} : vector<2x32xbf16>, vector<32x2xbf16>, vector<2x2xf32> -> vector<2x2xf32>
    %16 = arith.addf %13, %15 : vector<2x2xf32>
    %17 = vector.extract_strided_slice %11 {offsets = [64, 0], sizes = [32, 2], strides = [1, 1]} : vector<96x2xbf16> to vector<32x2xbf16>
    %cst_10 = arith.constant dense<0.000000e+00> : vector<2x2xf32>
    %18 = tpu.matmul %10, %17, %cst_10 {dimension_numbers = #tpu.dot_dimension_numbers<[1], [0], [0], [1], [0, 0, 1, 1], [], []>} : vector<2x32xbf16>, vector<32x2xbf16>, vector<2x2xf32> -> vector<2x2xf32>
    %19 = arith.addf %16, %18 : vector<2x2xf32>
    %c0_11 = arith.constant 0 : index
    %c0_12 = arith.constant 0 : index
    %20 = vector.load %arg5[%c0_11, %c0_12] : memref<1x2xf32, #tpu.memory_space<vmem>>, vector<1x2xf32>
    %21 = vector.broadcast %20 : vector<1x2xf32> to vector<2x2xf32>
    %22 = arith.addf %19, %21 : vector<2x2xf32>
    %c0_13 = arith.constant 0 : index
    %c0_14 = arith.constant 0 : index
    %23 = vector.load %arg6[%c0_13, %c0_14] : memref<2x2xf32, #tpu.memory_space<vmem>>, vector<2x2xf32>
    tpu.vector_store %arg6[%c0_13, %c0_14], %22 {strides = array<i32>} : memref<2x2xf32, #tpu.memory_space<vmem>>, vector<2x2xf32>,
    return
  }
}

module attributes {stable_mosaic.version = 11 : i64} {
  func.func @_bert_fused_kernel(%arg0: i32, %arg1: memref<16x32xf32, #tpu.memory_space<vmem>>, %arg2: memref<2x1x8xf32, #tpu.memory_space<vmem>>, %arg3: memref<1x32xf32, #tpu.memory_space<vmem>>, %arg4: memref<1x32xf32, #tpu.memory_space<vmem>>, %arg5: memref<2x32x96xbf16, #tpu.memory_space<vmem>>, %arg6: memref<2x1x96xf32, #tpu.memory_space<vmem>>, %arg7: memref<2x32x32xbf16, #tpu.memory_space<vmem>>, %arg8: memref<2x1x32xf32, #tpu.memory_space<vmem>>, %arg9: memref<2x1x32xf32, #tpu.memory_space<vmem>>, %arg10: memref<2x1x32xf32, #tpu.memory_space<vmem>>, %arg11: memref<2x32x64xbf16, #tpu.memory_space<vmem>>, %arg12: memref<2x1x64xf32, #tpu.memory_space<vmem>>, %arg13: memref<2x64x32xbf16, #tpu.memory_space<vmem>>, %arg14: memref<2x1x32xf32, #tpu.memory_space<vmem>>, %arg15: memref<2x1x32xf32, #tpu.memory_space<vmem>>, %arg16: memref<2x1x32xf32, #tpu.memory_space<vmem>>, %arg17: memref<32x32xbf16, #tpu.memory_space<vmem>>, %arg18: memref<1x32xf32, #tpu.memory_space<vmem>>, %arg19: memref<1x2x32xf32, #tpu.memory_space<vmem>>, %arg20: memref<1x2x32xf32, #tpu.memory_space<vmem>>) attributes {dimension_semantics = [#tpu.dimension_semantics<parallel>], iteration_bounds = array<i64: 2>, scalar_prefetch = 0 : i64, scratch_operands = 0 : i64, tpu.core_type = #tpu.core_type<tc>, window_params = [{transform_indices = @transform_0, window_bounds = array<i64: 16, 32>}, {transform_indices = @transform_1, window_bounds = array<i64: 2, 1, 8>}, {pipeline_mode = #tpu.pipeline_mode<synchronous>, transform_indices = @transform_2, window_bounds = array<i64: 1, 32>}, {pipeline_mode = #tpu.pipeline_mode<synchronous>, transform_indices = @transform_3, window_bounds = array<i64: 1, 32>}, {pipeline_mode = #tpu.pipeline_mode<synchronous>, transform_indices = @transform_4, window_bounds = array<i64: 2, 32, 96>}, {pipeline_mode = #tpu.pipeline_mode<synchronous>, transform_indices = @transform_5, window_bounds = array<i64: 2, 1, 96>}, {pipeline_mode = #tpu.pipeline_mode<synchronous>, transform_indices = @transform_6, window_bounds = array<i64: 2, 32, 32>}, {pipeline_mode = #tpu.pipeline_mode<synchronous>, transform_indices = @transform_7, window_bounds = array<i64: 2, 1, 32>}, {pipeline_mode = #tpu.pipeline_mode<synchronous>, transform_indices = @transform_8, window_bounds = array<i64: 2, 1, 32>}, {pipeline_mode = #tpu.pipeline_mode<synchronous>, transform_indices = @transform_9, window_bounds = array<i64: 2, 1, 32>}, {pipeline_mode = #tpu.pipeline_mode<synchronous>, transform_indices = @transform_10, window_bounds = array<i64: 2, 32, 64>}, {pipeline_mode = #tpu.pipeline_mode<synchronous>, transform_indices = @transform_11, window_bounds = array<i64: 2, 1, 64>}, {pipeline_mode = #tpu.pipeline_mode<synchronous>, transform_indices = @transform_12, window_bounds = array<i64: 2, 64, 32>}, {pipeline_mode = #tpu.pipeline_mode<synchronous>, transform_indices = @transform_13, window_bounds = array<i64: 2, 1, 32>}, {pipeline_mode = #tpu.pipeline_mode<synchronous>, transform_indices = @transform_14, window_bounds = array<i64: 2, 1, 32>}, {pipeline_mode = #tpu.pipeline_mode<synchronous>, transform_indices = @transform_15, window_bounds = array<i64: 2, 1, 32>}, {pipeline_mode = #tpu.pipeline_mode<synchronous>, transform_indices = @transform_16, window_bounds = array<i64: 32, 32>}, {pipeline_mode = #tpu.pipeline_mode<synchronous>, transform_indices = @transform_17, window_bounds = array<i64: 1, 32>}, {transform_indices = @transform_18, window_bounds = array<i64: 1, 2, 32>}, {transform_indices = @transform_19, window_bounds = array<i64: 1, 2, 32>}]} {
    %c0 = arith.constant 0 : index
    %c0_0 = arith.constant 0 : index
    %0 = vector.load %arg1[%c0, %c0_0] : memref<16x32xf32, #tpu.memory_space<vmem>>, vector<16x32xf32>
    %c0_1 = arith.constant 0 : index
    %c0_2 = arith.constant 0 : index
    %1 = vector.load %arg3[%c0_1, %c0_2] : memref<1x32xf32, #tpu.memory_space<vmem>>, vector<1x32xf32>
    %c0_3 = arith.constant 0 : index
    %c0_4 = arith.constant 0 : index
    %2 = vector.load %arg4[%c0_3, %c0_4] : memref<1x32xf32, #tpu.memory_space<vmem>>, vector<1x32xf32>
    %cst = arith.constant dense<0.000000e+00> : vector<16xf32>
    %3 = vector.multi_reduction <add>, %0, %cst [1] : vector<16x32xf32> to vector<16xf32>
    %4 = vector.shape_cast %3 : vector<16xf32> to vector<16x1xf32>
    %cst_5 = arith.constant 3.200000e+01 : f32
    %5 = vector.broadcast %cst_5 : f32 to vector<16x1xf32>
    %6 = arith.divf %4, %5 : vector<16x1xf32>
    %7 = vector.broadcast %6 : vector<16x1xf32> to vector<16x32xf32>
    %8 = arith.subf %0, %7 : vector<16x32xf32>
    %9 = arith.mulf %8, %8 : vector<16x32xf32>
    %cst_6 = arith.constant dense<0.000000e+00> : vector<16xf32>
    %10 = vector.multi_reduction <add>, %9, %cst_6 [1] : vector<16x32xf32> to vector<16xf32>
    %11 = vector.shape_cast %10 : vector<16xf32> to vector<16x1xf32>
    %cst_7 = arith.constant 3.200000e+01 : f32
    %12 = vector.broadcast %cst_7 : f32 to vector<16x1xf32>
    %13 = arith.divf %11, %12 : vector<16x1xf32>
    %14 = vector.broadcast %6 : vector<16x1xf32> to vector<16x32xf32>
    %15 = arith.subf %0, %14 : vector<16x32xf32>
    %cst_8 = arith.constant 9.99999996E-13 : f32
    %16 = vector.broadcast %cst_8 : f32 to vector<16x1xf32>
    %17 = arith.addf %13, %16 : vector<16x1xf32>
    %18 = math.rsqrt %17 : vector<16x1xf32>
    %19 = vector.broadcast %18 : vector<16x1xf32> to vector<16x32xf32>
    %20 = arith.mulf %15, %19 : vector<16x32xf32>
    %21 = vector.broadcast %1 : vector<1x32xf32> to vector<16x32xf32>
    %22 = arith.mulf %20, %21 : vector<16x32xf32>
    %23 = vector.broadcast %2 : vector<1x32xf32> to vector<16x32xf32>
    %24 = arith.addf %22, %23 : vector<16x32xf32>
    %c0_9 = arith.constant 0 : index
    %c0_10 = arith.constant 0 : index
    %c0_11 = arith.constant 0 : index
    %25 = vector.load %arg2[%c0_9, %c0_10, %c0_11] : memref<2x1x8xf32, #tpu.memory_space<vmem>>, vector<2x1x8xf32>
    %c0_12 = arith.constant 0 : index
    %c0_13 = arith.constant 0 : index
    %c0_14 = arith.constant 0 : index
    %26 = vector.load %arg5[%c0_12, %c0_13, %c0_14] : memref<2x32x96xbf16, #tpu.memory_space<vmem>>, vector<1x32x96xbf16>
    %27 = vector.shape_cast %26 : vector<1x32x96xbf16> to vector<32x96xbf16>
    %28 = arith.truncf %24 : vector<16x32xf32> to vector<16x32xbf16>
    %cst_15 = arith.constant dense<0.000000e+00> : vector<16x96xf32>
    %29 = tpu.matmul %28, %27, %cst_15 {dimension_numbers = #tpu.dot_dimension_numbers<[1], [0], [0], [1], [0, 0, 1, 1], [], []>} : vector<16x32xbf16>, vector<32x96xbf16>, vector<16x96xf32> -> vector<16x96xf32>
    %c0_16 = arith.constant 0 : index
    %c0_17 = arith.constant 0 : index
    %c0_18 = arith.constant 0 : index
    %30 = vector.load %arg6[%c0_16, %c0_17, %c0_18] : memref<2x1x96xf32, #tpu.memory_space<vmem>>, vector<1x1x96xf32>
    %31 = vector.shape_cast %30 : vector<1x1x96xf32> to vector<1x96xf32>
    %32 = vector.broadcast %31 : vector<1x96xf32> to vector<16x96xf32>
    %33 = arith.addf %29, %32 : vector<16x96xf32>
    %34 = vector.extract_strided_slice %25 {offsets = [0, 0, 0], sizes = [1, 1, 8], strides = [1, 1, 1]} : vector<2x1x8xf32> to vector<1x1x8xf32>
    %35 = vector.shape_cast %34 : vector<1x1x8xf32> to vector<1x8xf32>
    %36 = vector.extract_strided_slice %33 {offsets = [0, 0], sizes = [8, 16], strides = [1, 1]} : vector<16x96xf32> to vector<8x16xf32>
    %37 = vector.extract_strided_slice %33 {offsets = [0, 32], sizes = [8, 16], strides = [1, 1]} : vector<16x96xf32> to vector<8x16xf32>
    %38 = vector.extract_strided_slice %33 {offsets = [0, 64], sizes = [8, 16], strides = [1, 1]} : vector<16x96xf32> to vector<8x16xf32>
    %39 = arith.truncf %36 : vector<8x16xf32> to vector<8x16xbf16>
    %40 = arith.truncf %37 : vector<8x16xf32> to vector<8x16xbf16>
    %41 = tpu.transpose %40, [1, 0] : vector<8x16xbf16> -> vector<16x8xbf16>
    %cst_19 = arith.constant dense<0.000000e+00> : vector<8x8xf32>
    %42 = tpu.matmul %39, %41, %cst_19 {dimension_numbers = #tpu.dot_dimension_numbers<[1], [0], [0], [1], [0, 0, 1, 1], [], []>} : vector<8x16xbf16>, vector<16x8xbf16>, vector<8x8xf32> -> vector<8x8xf32>
    %cst_20 = arith.constant 2.500000e-01 : f32
    %43 = vector.broadcast %cst_20 : f32 to vector<8x8xf32>
    %44 = arith.mulf %42, %43 : vector<8x8xf32>
    %45 = vector.broadcast %35 : vector<1x8xf32> to vector<8x8xf32>
    %46 = arith.addf %44, %45 : vector<8x8xf32>
    %cst_21 = arith.constant dense<0xFF800000> : vector<8xf32>
    %47 = vector.multi_reduction <maximumf>, %46, %cst_21 [1] : vector<8x8xf32> to vector<8xf32>
    %48 = vector.shape_cast %47 : vector<8xf32> to vector<8x1xf32>
    %49 = vector.broadcast %48 : vector<8x1xf32> to vector<8x8xf32>
    %50 = arith.subf %46, %49 : vector<8x8xf32>
    %51 = math.exp %50 : vector<8x8xf32>
    %cst_22 = arith.constant dense<0.000000e+00> : vector<8xf32>
    %52 = vector.multi_reduction <add>, %51, %cst_22 [1] : vector<8x8xf32> to vector<8xf32>
    %53 = vector.shape_cast %52 : vector<8xf32> to vector<8x1xf32>
    %54 = vector.broadcast %53 : vector<8x1xf32> to vector<8x8xf32>
    %55 = arith.divf %51, %54 : vector<8x8xf32>
    %56 = arith.truncf %55 : vector<8x8xf32> to vector<8x8xbf16>
    %57 = arith.truncf %38 : vector<8x16xf32> to vector<8x16xbf16>
    %cst_23 = arith.constant dense<0.000000e+00> : vector<8x16xf32>
    %58 = tpu.matmul %56, %57, %cst_23 {dimension_numbers = #tpu.dot_dimension_numbers<[1], [0], [0], [1], [0, 0, 1, 1], [], []>} : vector<8x8xbf16>, vector<8x16xbf16>, vector<8x16xf32> -> vector<8x16xf32>
    %59 = vector.extract_strided_slice %33 {offsets = [0, 16], sizes = [8, 16], strides = [1, 1]} : vector<16x96xf32> to vector<8x16xf32>
    %60 = vector.extract_strided_slice %33 {offsets = [0, 48], sizes = [8, 16], strides = [1, 1]} : vector<16x96xf32> to vector<8x16xf32>
    %61 = vector.extract_strided_slice %33 {offsets = [0, 80], sizes = [8, 16], strides = [1, 1]} : vector<16x96xf32> to vector<8x16xf32>
    %62 = arith.truncf %59 : vector<8x16xf32> to vector<8x16xbf16>
    %63 = arith.truncf %60 : vector<8x16xf32> to vector<8x16xbf16>
    %64 = tpu.transpose %63, [1, 0] : vector<8x16xbf16> -> vector<16x8xbf16>
    %cst_24 = arith.constant dense<0.000000e+00> : vector<8x8xf32>
    %65 = tpu.matmul %62, %64, %cst_24 {dimension_numbers = #tpu.dot_dimension_numbers<[1], [0], [0], [1], [0, 0, 1, 1], [], []>} : vector<8x16xbf16>, vector<16x8xbf16>, vector<8x8xf32> -> vector<8x8xf32>
    %cst_25 = arith.constant 2.500000e-01 : f32
    %66 = vector.broadcast %cst_25 : f32 to vector<8x8xf32>
    %67 = arith.mulf %65, %66 : vector<8x8xf32>
    %68 = vector.broadcast %35 : vector<1x8xf32> to vector<8x8xf32>
    %69 = arith.addf %67, %68 : vector<8x8xf32>
    %cst_26 = arith.constant dense<0xFF800000> : vector<8xf32>
    %70 = vector.multi_reduction <maximumf>, %69, %cst_26 [1] : vector<8x8xf32> to vector<8xf32>
    %71 = vector.shape_cast %70 : vector<8xf32> to vector<8x1xf32>
    %72 = vector.broadcast %71 : vector<8x1xf32> to vector<8x8xf32>
    %73 = arith.subf %69, %72 : vector<8x8xf32>
    %74 = math.exp %73 : vector<8x8xf32>
    %cst_27 = arith.constant dense<0.000000e+00> : vector<8xf32>
    %75 = vector.multi_reduction <add>, %74, %cst_27 [1] : vector<8x8xf32> to vector<8xf32>
    %76 = vector.shape_cast %75 : vector<8xf32> to vector<8x1xf32>
    %77 = vector.broadcast %76 : vector<8x1xf32> to vector<8x8xf32>
    %78 = arith.divf %74, %77 : vector<8x8xf32>
    %79 = arith.truncf %78 : vector<8x8xf32> to vector<8x8xbf16>
    %80 = arith.truncf %61 : vector<8x16xf32> to vector<8x16xbf16>
    %cst_28 = arith.constant dense<0.000000e+00> : vector<8x16xf32>
    %81 = tpu.matmul %79, %80, %cst_28 {dimension_numbers = #tpu.dot_dimension_numbers<[1], [0], [0], [1], [0, 0, 1, 1], [], []>} : vector<8x8xbf16>, vector<8x16xbf16>, vector<8x16xf32> -> vector<8x16xf32>
    %82 = tpu.concatenate %58, %81 in 1 : vector<8x16xf32>, vector<8x16xf32> -> vector<8x32xf32>
    %83 = vector.extract_strided_slice %25 {offsets = [1, 0, 0], sizes = [1, 1, 8], strides = [1, 1, 1]} : vector<2x1x8xf32> to vector<1x1x8xf32>
    %84 = vector.shape_cast %83 : vector<1x1x8xf32> to vector<1x8xf32>
    %85 = vector.extract_strided_slice %33 {offsets = [8, 0], sizes = [8, 16], strides = [1, 1]} : vector<16x96xf32> to vector<8x16xf32>
    %86 = vector.extract_strided_slice %33 {offsets = [8, 32], sizes = [8, 16], strides = [1, 1]} : vector<16x96xf32> to vector<8x16xf32>
    %87 = vector.extract_strided_slice %33 {offsets = [8, 64], sizes = [8, 16], strides = [1, 1]} : vector<16x96xf32> to vector<8x16xf32>
    %88 = arith.truncf %85 : vector<8x16xf32> to vector<8x16xbf16>
    %89 = arith.truncf %86 : vector<8x16xf32> to vector<8x16xbf16>
    %90 = tpu.transpose %89, [1, 0] : vector<8x16xbf16> -> vector<16x8xbf16>
    %cst_29 = arith.constant dense<0.000000e+00> : vector<8x8xf32>
    %91 = tpu.matmul %88, %90, %cst_29 {dimension_numbers = #tpu.dot_dimension_numbers<[1], [0], [0], [1], [0, 0, 1, 1], [], []>} : vector<8x16xbf16>, vector<16x8xbf16>, vector<8x8xf32> -> vector<8x8xf32>
    %cst_30 = arith.constant 2.500000e-01 : f32
    %92 = vector.broadcast %cst_30 : f32 to vector<8x8xf32>
    %93 = arith.mulf %91, %92 : vector<8x8xf32>
    %94 = vector.broadcast %84 : vector<1x8xf32> to vector<8x8xf32>
    %95 = arith.addf %93, %94 : vector<8x8xf32>
    %cst_31 = arith.constant dense<0xFF800000> : vector<8xf32>
    %96 = vector.multi_reduction <maximumf>, %95, %cst_31 [1] : vector<8x8xf32> to vector<8xf32>
    %97 = vector.shape_cast %96 : vector<8xf32> to vector<8x1xf32>
    %98 = vector.broadcast %97 : vector<8x1xf32> to vector<8x8xf32>
    %99 = arith.subf %95, %98 : vector<8x8xf32>
    %100 = math.exp %99 : vector<8x8xf32>
    %cst_32 = arith.constant dense<0.000000e+00> : vector<8xf32>
    %101 = vector.multi_reduction <add>, %100, %cst_32 [1] : vector<8x8xf32> to vector<8xf32>
    %102 = vector.shape_cast %101 : vector<8xf32> to vector<8x1xf32>
    %103 = vector.broadcast %102 : vector<8x1xf32> to vector<8x8xf32>
    %104 = arith.divf %100, %103 : vector<8x8xf32>
    %105 = arith.truncf %104 : vector<8x8xf32> to vector<8x8xbf16>
    %106 = arith.truncf %87 : vector<8x16xf32> to vector<8x16xbf16>
    %cst_33 = arith.constant dense<0.000000e+00> : vector<8x16xf32>
    %107 = tpu.matmul %105, %106, %cst_33 {dimension_numbers = #tpu.dot_dimension_numbers<[1], [0], [0], [1], [0, 0, 1, 1], [], []>} : vector<8x8xbf16>, vector<8x16xbf16>, vector<8x16xf32> -> vector<8x16xf32>
    %108 = vector.extract_strided_slice %33 {offsets = [8, 16], sizes = [8, 16], strides = [1, 1]} : vector<16x96xf32> to vector<8x16xf32>
    %109 = vector.extract_strided_slice %33 {offsets = [8, 48], sizes = [8, 16], strides = [1, 1]} : vector<16x96xf32> to vector<8x16xf32>
    %110 = vector.extract_strided_slice %33 {offsets = [8, 80], sizes = [8, 16], strides = [1, 1]} : vector<16x96xf32> to vector<8x16xf32>
    %111 = arith.truncf %108 : vector<8x16xf32> to vector<8x16xbf16>
    %112 = arith.truncf %109 : vector<8x16xf32> to vector<8x16xbf16>
    %113 = tpu.transpose %112, [1, 0] : vector<8x16xbf16> -> vector<16x8xbf16>
    %cst_34 = arith.constant dense<0.000000e+00> : vector<8x8xf32>
    %114 = tpu.matmul %111, %113, %cst_34 {dimension_numbers = #tpu.dot_dimension_numbers<[1], [0], [0], [1], [0, 0, 1, 1], [], []>} : vector<8x16xbf16>, vector<16x8xbf16>, vector<8x8xf32> -> vector<8x8xf32>
    %cst_35 = arith.constant 2.500000e-01 : f32
    %115 = vector.broadcast %cst_35 : f32 to vector<8x8xf32>
    %116 = arith.mulf %114, %115 : vector<8x8xf32>
    %117 = vector.broadcast %84 : vector<1x8xf32> to vector<8x8xf32>
    %118 = arith.addf %116, %117 : vector<8x8xf32>
    %cst_36 = arith.constant dense<0xFF800000> : vector<8xf32>
    %119 = vector.multi_reduction <maximumf>, %118, %cst_36 [1] : vector<8x8xf32> to vector<8xf32>
    %120 = vector.shape_cast %119 : vector<8xf32> to vector<8x1xf32>
    %121 = vector.broadcast %120 : vector<8x1xf32> to vector<8x8xf32>
    %122 = arith.subf %118, %121 : vector<8x8xf32>
    %123 = math.exp %122 : vector<8x8xf32>
    %cst_37 = arith.constant dense<0.000000e+00> : vector<8xf32>
    %124 = vector.multi_reduction <add>, %123, %cst_37 [1] : vector<8x8xf32> to vector<8xf32>
    %125 = vector.shape_cast %124 : vector<8xf32> to vector<8x1xf32>
    %126 = vector.broadcast %125 : vector<8x1xf32> to vector<8x8xf32>
    %127 = arith.divf %123, %126 : vector<8x8xf32>
    %128 = arith.truncf %127 : vector<8x8xf32> to vector<8x8xbf16>
    %129 = arith.truncf %110 : vector<8x16xf32> to vector<8x16xbf16>
    %cst_38 = arith.constant dense<0.000000e+00> : vector<8x16xf32>
    %130 = tpu.matmul %128, %129, %cst_38 {dimension_numbers = #tpu.dot_dimension_numbers<[1], [0], [0], [1], [0, 0, 1, 1], [], []>} : vector<8x8xbf16>, vector<8x16xbf16>, vector<8x16xf32> -> vector<8x16xf32>
    %131 = tpu.concatenate %107, %130 in 1 : vector<8x16xf32>, vector<8x16xf32> -> vector<8x32xf32>
    %132 = tpu.concatenate %82, %131 in 0 : vector<8x32xf32>, vector<8x32xf32> -> vector<16x32xf32>
    %c0_39 = arith.constant 0 : index
    %c0_40 = arith.constant 0 : index
    %c0_41 = arith.constant 0 : index
    %133 = vector.load %arg7[%c0_39, %c0_40, %c0_41] : memref<2x32x32xbf16, #tpu.memory_space<vmem>>, vector<1x32x32xbf16>
    %134 = vector.shape_cast %133 : vector<1x32x32xbf16> to vector<32x32xbf16>
    %135 = arith.truncf %132 : vector<16x32xf32> to vector<16x32xbf16>
    %cst_42 = arith.constant dense<0.000000e+00> : vector<16x32xf32>
    %136 = tpu.matmul %135, %134, %cst_42 {dimension_numbers = #tpu.dot_dimension_numbers<[1], [0], [0], [1], [0, 0, 1, 1], [], []>} : vector<16x32xbf16>, vector<32x32xbf16>, vector<16x32xf32> -> vector<16x32xf32>
    %c0_43 = arith.constant 0 : index
    %c0_44 = arith.constant 0 : index
    %c0_45 = arith.constant 0 : index
    %137 = vector.load %arg8[%c0_43, %c0_44, %c0_45] : memref<2x1x32xf32, #tpu.memory_space<vmem>>, vector<1x1x32xf32>
    %138 = vector.shape_cast %137 : vector<1x1x32xf32> to vector<1x32xf32>
    %139 = vector.broadcast %138 : vector<1x32xf32> to vector<16x32xf32>
    %140 = arith.addf %136, %139 : vector<16x32xf32>
    %141 = arith.addf %140, %24 : vector<16x32xf32>
    %c0_46 = arith.constant 0 : index
    %c0_47 = arith.constant 0 : index
    %c0_48 = arith.constant 0 : index
    %142 = vector.load %arg9[%c0_46, %c0_47, %c0_48] : memref<2x1x32xf32, #tpu.memory_space<vmem>>, vector<1x1x32xf32>
    %143 = vector.shape_cast %142 : vector<1x1x32xf32> to vector<1x32xf32>
    %c0_49 = arith.constant 0 : index
    %c0_50 = arith.constant 0 : index
    %c0_51 = arith.constant 0 : index
    %144 = vector.load %arg10[%c0_49, %c0_50, %c0_51] : memref<2x1x32xf32, #tpu.memory_space<vmem>>, vector<1x1x32xf32>
    %145 = vector.shape_cast %144 : vector<1x1x32xf32> to vector<1x32xf32>
    %cst_52 = arith.constant dense<0.000000e+00> : vector<16xf32>
    %146 = vector.multi_reduction <add>, %141, %cst_52 [1] : vector<16x32xf32> to vector<16xf32>
    %147 = vector.shape_cast %146 : vector<16xf32> to vector<16x1xf32>
    %cst_53 = arith.constant 3.200000e+01 : f32
    %148 = vector.broadcast %cst_53 : f32 to vector<16x1xf32>
    %149 = arith.divf %147, %148 : vector<16x1xf32>
    %150 = vector.broadcast %149 : vector<16x1xf32> to vector<16x32xf32>
    %151 = arith.subf %141, %150 : vector<16x32xf32>
    %152 = arith.mulf %151, %151 : vector<16x32xf32>
    %cst_54 = arith.constant dense<0.000000e+00> : vector<16xf32>
    %153 = vector.multi_reduction <add>, %152, %cst_54 [1] : vector<16x32xf32> to vector<16xf32>
    %154 = vector.shape_cast %153 : vector<16xf32> to vector<16x1xf32>
    %cst_55 = arith.constant 3.200000e+01 : f32
    %155 = vector.broadcast %cst_55 : f32 to vector<16x1xf32>
    %156 = arith.divf %154, %155 : vector<16x1xf32>
    %157 = vector.broadcast %149 : vector<16x1xf32> to vector<16x32xf32>
    %158 = arith.subf %141, %157 : vector<16x32xf32>
    %cst_56 = arith.constant 9.99999996E-13 : f32
    %159 = vector.broadcast %cst_56 : f32 to vector<16x1xf32>
    %160 = arith.addf %156, %159 : vector<16x1xf32>
    %161 = math.rsqrt %160 : vector<16x1xf32>
    %162 = vector.broadcast %161 : vector<16x1xf32> to vector<16x32xf32>
    %163 = arith.mulf %158, %162 : vector<16x32xf32>
    %164 = vector.broadcast %143 : vector<1x32xf32> to vector<16x32xf32>
    %165 = arith.mulf %163, %164 : vector<16x32xf32>
    %166 = vector.broadcast %145 : vector<1x32xf32> to vector<16x32xf32>
    %167 = arith.addf %165, %166 : vector<16x32xf32>
    %c0_57 = arith.constant 0 : index
    %c0_58 = arith.constant 0 : index
    %c0_59 = arith.constant 0 : index
    %168 = vector.load %arg11[%c0_57, %c0_58, %c0_59] : memref<2x32x64xbf16, #tpu.memory_space<vmem>>, vector<1x32x64xbf16>
    %169 = vector.shape_cast %168 : vector<1x32x64xbf16> to vector<32x64xbf16>
    %170 = arith.truncf %167 : vector<16x32xf32> to vector<16x32xbf16>
    %cst_60 = arith.constant dense<0.000000e+00> : vector<16x64xf32>
    %171 = tpu.matmul %170, %169, %cst_60 {dimension_numbers = #tpu.dot_dimension_numbers<[1], [0], [0], [1], [0, 0, 1, 1], [], []>} : vector<16x32xbf16>, vector<32x64xbf16>, vector<16x64xf32> -> vector<16x64xf32>
    %c0_61 = arith.constant 0 : index
    %c0_62 = arith.constant 0 : index
    %c0_63 = arith.constant 0 : index
    %172 = vector.load %arg12[%c0_61, %c0_62, %c0_63] : memref<2x1x64xf32, #tpu.memory_space<vmem>>, vector<1x1x64xf32>
    %173 = vector.shape_cast %172 : vector<1x1x64xf32> to vector<1x64xf32>
    %174 = vector.broadcast %173 : vector<1x64xf32> to vector<16x64xf32>
    %175 = arith.addf %171, %174 : vector<16x64xf32>
    %cst_64 = arith.constant 5.000000e-01 : f32
    %176 = vector.broadcast %cst_64 : f32 to vector<16x64xf32>
    %177 = arith.mulf %176, %175 : vector<16x64xf32>
    %cst_65 = arith.constant 0.707106769 : f32
    %178 = vector.broadcast %cst_65 : f32 to vector<16x64xf32>
    %179 = arith.mulf %175, %178 : vector<16x64xf32>
    %180 = math.erf %179 : vector<16x64xf32>
    %cst_66 = arith.constant 1.000000e+00 : f32
    %181 = vector.broadcast %cst_66 : f32 to vector<16x64xf32>
    %182 = arith.addf %181, %180 : vector<16x64xf32>
    %183 = arith.mulf %177, %182 : vector<16x64xf32>
    %c0_67 = arith.constant 0 : index
    %c0_68 = arith.constant 0 : index
    %c0_69 = arith.constant 0 : index
    %184 = vector.load %arg13[%c0_67, %c0_68, %c0_69] : memref<2x64x32xbf16, #tpu.memory_space<vmem>>, vector<1x64x32xbf16>
    %185 = vector.shape_cast %184 : vector<1x64x32xbf16> to vector<64x32xbf16>
    %186 = arith.truncf %183 : vector<16x64xf32> to vector<16x64xbf16>
    %cst_70 = arith.constant dense<0.000000e+00> : vector<16x32xf32>
    %187 = tpu.matmul %186, %185, %cst_70 {dimension_numbers = #tpu.dot_dimension_numbers<[1], [0], [0], [1], [0, 0, 1, 1], [], []>} : vector<16x64xbf16>, vector<64x32xbf16>, vector<16x32xf32> -> vector<16x32xf32>
    %c0_71 = arith.constant 0 : index
    %c0_72 = arith.constant 0 : index
    %c0_73 = arith.constant 0 : index
    %188 = vector.load %arg14[%c0_71, %c0_72, %c0_73] : memref<2x1x32xf32, #tpu.memory_space<vmem>>, vector<1x1x32xf32>
    %189 = vector.shape_cast %188 : vector<1x1x32xf32> to vector<1x32xf32>
    %190 = vector.broadcast %189 : vector<1x32xf32> to vector<16x32xf32>
    %191 = arith.addf %187, %190 : vector<16x32xf32>
    %192 = arith.addf %191, %167 : vector<16x32xf32>
    %c0_74 = arith.constant 0 : index
    %c0_75 = arith.constant 0 : index
    %c0_76 = arith.constant 0 : index
    %193 = vector.load %arg15[%c0_74, %c0_75, %c0_76] : memref<2x1x32xf32, #tpu.memory_space<vmem>>, vector<1x1x32xf32>
    %194 = vector.shape_cast %193 : vector<1x1x32xf32> to vector<1x32xf32>
    %c0_77 = arith.constant 0 : index
    %c0_78 = arith.constant 0 : index
    %c0_79 = arith.constant 0 : index
    %195 = vector.load %arg16[%c0_77, %c0_78, %c0_79] : memref<2x1x32xf32, #tpu.memory_space<vmem>>, vector<1x1x32xf32>
    %196 = vector.shape_cast %195 : vector<1x1x32xf32> to vector<1x32xf32>
    %cst_80 = arith.constant dense<0.000000e+00> : vector<16xf32>
    %197 = vector.multi_reduction <add>, %192, %cst_80 [1] : vector<16x32xf32> to vector<16xf32>
    %198 = vector.shape_cast %197 : vector<16xf32> to vector<16x1xf32>
    %cst_81 = arith.constant 3.200000e+01 : f32
    %199 = vector.broadcast %cst_81 : f32 to vector<16x1xf32>
    %200 = arith.divf %198, %199 : vector<16x1xf32>
    %201 = vector.broadcast %200 : vector<16x1xf32> to vector<16x32xf32>
    %202 = arith.subf %192, %201 : vector<16x32xf32>
    %203 = arith.mulf %202, %202 : vector<16x32xf32>
    %cst_82 = arith.constant dense<0.000000e+00> : vector<16xf32>
    %204 = vector.multi_reduction <add>, %203, %cst_82 [1] : vector<16x32xf32> to vector<16xf32>
    %205 = vector.shape_cast %204 : vector<16xf32> to vector<16x1xf32>
    %cst_83 = arith.constant 3.200000e+01 : f32
    %206 = vector.broadcast %cst_83 : f32 to vector<16x1xf32>
    %207 = arith.divf %205, %206 : vector<16x1xf32>
    %208 = vector.broadcast %200 : vector<16x1xf32> to vector<16x32xf32>
    %209 = arith.subf %192, %208 : vector<16x32xf32>
    %cst_84 = arith.constant 9.99999996E-13 : f32
    %210 = vector.broadcast %cst_84 : f32 to vector<16x1xf32>
    %211 = arith.addf %207, %210 : vector<16x1xf32>
    %212 = math.rsqrt %211 : vector<16x1xf32>
    %213 = vector.broadcast %212 : vector<16x1xf32> to vector<16x32xf32>
    %214 = arith.mulf %209, %213 : vector<16x32xf32>
    %215 = vector.broadcast %194 : vector<1x32xf32> to vector<16x32xf32>
    %216 = arith.mulf %214, %215 : vector<16x32xf32>
    %217 = vector.broadcast %196 : vector<1x32xf32> to vector<16x32xf32>
    %218 = arith.addf %216, %217 : vector<16x32xf32>
    %c1 = arith.constant 1 : index
    %c0_85 = arith.constant 0 : index
    %c0_86 = arith.constant 0 : index
    %219 = vector.load %arg5[%c1, %c0_85, %c0_86] : memref<2x32x96xbf16, #tpu.memory_space<vmem>>, vector<1x32x96xbf16>
    %220 = vector.shape_cast %219 : vector<1x32x96xbf16> to vector<32x96xbf16>
    %221 = arith.truncf %218 : vector<16x32xf32> to vector<16x32xbf16>
    %cst_87 = arith.constant dense<0.000000e+00> : vector<16x96xf32>
    %222 = tpu.matmul %221, %220, %cst_87 {dimension_numbers = #tpu.dot_dimension_numbers<[1], [0], [0], [1], [0, 0, 1, 1], [], []>} : vector<16x32xbf16>, vector<32x96xbf16>, vector<16x96xf32> -> vector<16x96xf32>
    %c1_88 = arith.constant 1 : index
    %c0_89 = arith.constant 0 : index
    %c0_90 = arith.constant 0 : index
    %223 = vector.load %arg6[%c1_88, %c0_89, %c0_90] : memref<2x1x96xf32, #tpu.memory_space<vmem>>, vector<1x1x96xf32>
    %224 = vector.shape_cast %223 : vector<1x1x96xf32> to vector<1x96xf32>
    %225 = vector.broadcast %224 : vector<1x96xf32> to vector<16x96xf32>
    %226 = arith.addf %222, %225 : vector<16x96xf32>
    %227 = vector.extract_strided_slice %25 {offsets = [0, 0, 0], sizes = [1, 1, 8], strides = [1, 1, 1]} : vector<2x1x8xf32> to vector<1x1x8xf32>
    %228 = vector.shape_cast %227 : vector<1x1x8xf32> to vector<1x8xf32>
    %229 = vector.extract_strided_slice %226 {offsets = [0, 0], sizes = [8, 16], strides = [1, 1]} : vector<16x96xf32> to vector<8x16xf32>
    %230 = vector.extract_strided_slice %226 {offsets = [0, 32], sizes = [8, 16], strides = [1, 1]} : vector<16x96xf32> to vector<8x16xf32>
    %231 = vector.extract_strided_slice %226 {offsets = [0, 64], sizes = [8, 16], strides = [1, 1]} : vector<16x96xf32> to vector<8x16xf32>
    %232 = arith.truncf %229 : vector<8x16xf32> to vector<8x16xbf16>
    %233 = arith.truncf %230 : vector<8x16xf32> to vector<8x16xbf16>
    %234 = tpu.transpose %233, [1, 0] : vector<8x16xbf16> -> vector<16x8xbf16>
    %cst_91 = arith.constant dense<0.000000e+00> : vector<8x8xf32>
    %235 = tpu.matmul %232, %234, %cst_91 {dimension_numbers = #tpu.dot_dimension_numbers<[1], [0], [0], [1], [0, 0, 1, 1], [], []>} : vector<8x16xbf16>, vector<16x8xbf16>, vector<8x8xf32> -> vector<8x8xf32>
    %cst_92 = arith.constant 2.500000e-01 : f32
    %236 = vector.broadcast %cst_92 : f32 to vector<8x8xf32>
    %237 = arith.mulf %235, %236 : vector<8x8xf32>
    %238 = vector.broadcast %228 : vector<1x8xf32> to vector<8x8xf32>
    %239 = arith.addf %237, %238 : vector<8x8xf32>
    %cst_93 = arith.constant dense<0xFF800000> : vector<8xf32>
    %240 = vector.multi_reduction <maximumf>, %239, %cst_93 [1] : vector<8x8xf32> to vector<8xf32>
    %241 = vector.shape_cast %240 : vector<8xf32> to vector<8x1xf32>
    %242 = vector.broadcast %241 : vector<8x1xf32> to vector<8x8xf32>
    %243 = arith.subf %239, %242 : vector<8x8xf32>
    %244 = math.exp %243 : vector<8x8xf32>
    %cst_94 = arith.constant dense<0.000000e+00> : vector<8xf32>
    %245 = vector.multi_reduction <add>, %244, %cst_94 [1] : vector<8x8xf32> to vector<8xf32>
    %246 = vector.shape_cast %245 : vector<8xf32> to vector<8x1xf32>
    %247 = vector.broadcast %246 : vector<8x1xf32> to vector<8x8xf32>
    %248 = arith.divf %244, %247 : vector<8x8xf32>
    %249 = arith.truncf %248 : vector<8x8xf32> to vector<8x8xbf16>
    %250 = arith.truncf %231 : vector<8x16xf32> to vector<8x16xbf16>
    %cst_95 = arith.constant dense<0.000000e+00> : vector<8x16xf32>
    %251 = tpu.matmul %249, %250, %cst_95 {dimension_numbers = #tpu.dot_dimension_numbers<[1], [0], [0], [1], [0, 0, 1, 1], [], []>} : vector<8x8xbf16>, vector<8x16xbf16>, vector<8x16xf32> -> vector<8x16xf32>
    %252 = vector.extract_strided_slice %226 {offsets = [0, 16], sizes = [8, 16], strides = [1, 1]} : vector<16x96xf32> to vector<8x16xf32>
    %253 = vector.extract_strided_slice %226 {offsets = [0, 48], sizes = [8, 16], strides = [1, 1]} : vector<16x96xf32> to vector<8x16xf32>
    %254 = vector.extract_strided_slice %226 {offsets = [0, 80], sizes = [8, 16], strides = [1, 1]} : vector<16x96xf32> to vector<8x16xf32>
    %255 = arith.truncf %252 : vector<8x16xf32> to vector<8x16xbf16>
    %256 = arith.truncf %253 : vector<8x16xf32> to vector<8x16xbf16>
    %257 = tpu.transpose %256, [1, 0] : vector<8x16xbf16> -> vector<16x8xbf16>
    %cst_96 = arith.constant dense<0.000000e+00> : vector<8x8xf32>
    %258 = tpu.matmul %255, %257, %cst_96 {dimension_numbers = #tpu.dot_dimension_numbers<[1], [0], [0], [1], [0, 0, 1, 1], [], []>} : vector<8x16xbf16>, vector<16x8xbf16>, vector<8x8xf32> -> vector<8x8xf32>
    %cst_97 = arith.constant 2.500000e-01 : f32
    %259 = vector.broadcast %cst_97 : f32 to vector<8x8xf32>
    %260 = arith.mulf %258, %259 : vector<8x8xf32>
    %261 = vector.broadcast %228 : vector<1x8xf32> to vector<8x8xf32>
    %262 = arith.addf %260, %261 : vector<8x8xf32>
    %cst_98 = arith.constant dense<0xFF800000> : vector<8xf32>
    %263 = vector.multi_reduction <maximumf>, %262, %cst_98 [1] : vector<8x8xf32> to vector<8xf32>
    %264 = vector.shape_cast %263 : vector<8xf32> to vector<8x1xf32>
    %265 = vector.broadcast %264 : vector<8x1xf32> to vector<8x8xf32>
    %266 = arith.subf %262, %265 : vector<8x8xf32>
    %267 = math.exp %266 : vector<8x8xf32>
    %cst_99 = arith.constant dense<0.000000e+00> : vector<8xf32>
    %268 = vector.multi_reduction <add>, %267, %cst_99 [1] : vector<8x8xf32> to vector<8xf32>
    %269 = vector.shape_cast %268 : vector<8xf32> to vector<8x1xf32>
    %270 = vector.broadcast %269 : vector<8x1xf32> to vector<8x8xf32>
    %271 = arith.divf %267, %270 : vector<8x8xf32>
    %272 = arith.truncf %271 : vector<8x8xf32> to vector<8x8xbf16>
    %273 = arith.truncf %254 : vector<8x16xf32> to vector<8x16xbf16>
    %cst_100 = arith.constant dense<0.000000e+00> : vector<8x16xf32>
    %274 = tpu.matmul %272, %273, %cst_100 {dimension_numbers = #tpu.dot_dimension_numbers<[1], [0], [0], [1], [0, 0, 1, 1], [], []>} : vector<8x8xbf16>, vector<8x16xbf16>, vector<8x16xf32> -> vector<8x16xf32>
    %275 = tpu.concatenate %251, %274 in 1 : vector<8x16xf32>, vector<8x16xf32> -> vector<8x32xf32>
    %276 = vector.extract_strided_slice %25 {offsets = [1, 0, 0], sizes = [1, 1, 8], strides = [1, 1, 1]} : vector<2x1x8xf32> to vector<1x1x8xf32>
    %277 = vector.shape_cast %276 : vector<1x1x8xf32> to vector<1x8xf32>
    %278 = vector.extract_strided_slice %226 {offsets = [8, 0], sizes = [8, 16], strides = [1, 1]} : vector<16x96xf32> to vector<8x16xf32>
    %279 = vector.extract_strided_slice %226 {offsets = [8, 32], sizes = [8, 16], strides = [1, 1]} : vector<16x96xf32> to vector<8x16xf32>
    %280 = vector.extract_strided_slice %226 {offsets = [8, 64], sizes = [8, 16], strides = [1, 1]} : vector<16x96xf32> to vector<8x16xf32>
    %281 = arith.truncf %278 : vector<8x16xf32> to vector<8x16xbf16>
    %282 = arith.truncf %279 : vector<8x16xf32> to vector<8x16xbf16>
    %283 = tpu.transpose %282, [1, 0] : vector<8x16xbf16> -> vector<16x8xbf16>
    %cst_101 = arith.constant dense<0.000000e+00> : vector<8x8xf32>
    %284 = tpu.matmul %281, %283, %cst_101 {dimension_numbers = #tpu.dot_dimension_numbers<[1], [0], [0], [1], [0, 0, 1, 1], [], []>} : vector<8x16xbf16>, vector<16x8xbf16>, vector<8x8xf32> -> vector<8x8xf32>
    %cst_102 = arith.constant 2.500000e-01 : f32
    %285 = vector.broadcast %cst_102 : f32 to vector<8x8xf32>
    %286 = arith.mulf %284, %285 : vector<8x8xf32>
    %287 = vector.broadcast %277 : vector<1x8xf32> to vector<8x8xf32>
    %288 = arith.addf %286, %287 : vector<8x8xf32>
    %cst_103 = arith.constant dense<0xFF800000> : vector<8xf32>
    %289 = vector.multi_reduction <maximumf>, %288, %cst_103 [1] : vector<8x8xf32> to vector<8xf32>
    %290 = vector.shape_cast %289 : vector<8xf32> to vector<8x1xf32>
    %291 = vector.broadcast %290 : vector<8x1xf32> to vector<8x8xf32>
    %292 = arith.subf %288, %291 : vector<8x8xf32>
    %293 = math.exp %292 : vector<8x8xf32>
    %cst_104 = arith.constant dense<0.000000e+00> : vector<8xf32>
    %294 = vector.multi_reduction <add>, %293, %cst_104 [1] : vector<8x8xf32> to vector<8xf32>
    %295 = vector.shape_cast %294 : vector<8xf32> to vector<8x1xf32>
    %296 = vector.broadcast %295 : vector<8x1xf32> to vector<8x8xf32>
    %297 = arith.divf %293, %296 : vector<8x8xf32>
    %298 = arith.truncf %297 : vector<8x8xf32> to vector<8x8xbf16>
    %299 = arith.truncf %280 : vector<8x16xf32> to vector<8x16xbf16>
    %cst_105 = arith.constant dense<0.000000e+00> : vector<8x16xf32>
    %300 = tpu.matmul %298, %299, %cst_105 {dimension_numbers = #tpu.dot_dimension_numbers<[1], [0], [0], [1], [0, 0, 1, 1], [], []>} : vector<8x8xbf16>, vector<8x16xbf16>, vector<8x16xf32> -> vector<8x16xf32>
    %301 = vector.extract_strided_slice %226 {offsets = [8, 16], sizes = [8, 16], strides = [1, 1]} : vector<16x96xf32> to vector<8x16xf32>
    %302 = vector.extract_strided_slice %226 {offsets = [8, 48], sizes = [8, 16], strides = [1, 1]} : vector<16x96xf32> to vector<8x16xf32>
    %303 = vector.extract_strided_slice %226 {offsets = [8, 80], sizes = [8, 16], strides = [1, 1]} : vector<16x96xf32> to vector<8x16xf32>
    %304 = arith.truncf %301 : vector<8x16xf32> to vector<8x16xbf16>
    %305 = arith.truncf %302 : vector<8x16xf32> to vector<8x16xbf16>
    %306 = tpu.transpose %305, [1, 0] : vector<8x16xbf16> -> vector<16x8xbf16>
    %cst_106 = arith.constant dense<0.000000e+00> : vector<8x8xf32>
    %307 = tpu.matmul %304, %306, %cst_106 {dimension_numbers = #tpu.dot_dimension_numbers<[1], [0], [0], [1], [0, 0, 1, 1], [], []>} : vector<8x16xbf16>, vector<16x8xbf16>, vector<8x8xf32> -> vector<8x8xf32>
    %cst_107 = arith.constant 2.500000e-01 : f32
    %308 = vector.broadcast %cst_107 : f32 to vector<8x8xf32>
    %309 = arith.mulf %307, %308 : vector<8x8xf32>
    %310 = vector.broadcast %277 : vector<1x8xf32> to vector<8x8xf32>
    %311 = arith.addf %309, %310 : vector<8x8xf32>
    %cst_108 = arith.constant dense<0xFF800000> : vector<8xf32>
    %312 = vector.multi_reduction <maximumf>, %311, %cst_108 [1] : vector<8x8xf32> to vector<8xf32>
    %313 = vector.shape_cast %312 : vector<8xf32> to vector<8x1xf32>
    %314 = vector.broadcast %313 : vector<8x1xf32> to vector<8x8xf32>
    %315 = arith.subf %311, %314 : vector<8x8xf32>
    %316 = math.exp %315 : vector<8x8xf32>
    %cst_109 = arith.constant dense<0.000000e+00> : vector<8xf32>
    %317 = vector.multi_reduction <add>, %316, %cst_109 [1] : vector<8x8xf32> to vector<8xf32>
    %318 = vector.shape_cast %317 : vector<8xf32> to vector<8x1xf32>
    %319 = vector.broadcast %318 : vector<8x1xf32> to vector<8x8xf32>
    %320 = arith.divf %316, %319 : vector<8x8xf32>
    %321 = arith.truncf %320 : vector<8x8xf32> to vector<8x8xbf16>
    %322 = arith.truncf %303 : vector<8x16xf32> to vector<8x16xbf16>
    %cst_110 = arith.constant dense<0.000000e+00> : vector<8x16xf32>
    %323 = tpu.matmul %321, %322, %cst_110 {dimension_numbers = #tpu.dot_dimension_numbers<[1], [0], [0], [1], [0, 0, 1, 1], [], []>} : vector<8x8xbf16>, vector<8x16xbf16>, vector<8x16xf32> -> vector<8x16xf32>
    %324 = tpu.concatenate %300, %323 in 1 : vector<8x16xf32>, vector<8x16xf32> -> vector<8x32xf32>
    %325 = tpu.concatenate %275, %324 in 0 : vector<8x32xf32>, vector<8x32xf32> -> vector<16x32xf32>
    %c1_111 = arith.constant 1 : index
    %c0_112 = arith.constant 0 : index
    %c0_113 = arith.constant 0 : index
    %326 = vector.load %arg7[%c1_111, %c0_112, %c0_113] : memref<2x32x32xbf16, #tpu.memory_space<vmem>>, vector<1x32x32xbf16>
    %327 = vector.shape_cast %326 : vector<1x32x32xbf16> to vector<32x32xbf16>
    %328 = arith.truncf %325 : vector<16x32xf32> to vector<16x32xbf16>
    %cst_114 = arith.constant dense<0.000000e+00> : vector<16x32xf32>
    %329 = tpu.matmul %328, %327, %cst_114 {dimension_numbers = #tpu.dot_dimension_numbers<[1], [0], [0], [1], [0, 0, 1, 1], [], []>} : vector<16x32xbf16>, vector<32x32xbf16>, vector<16x32xf32> -> vector<16x32xf32>
    %c1_115 = arith.constant 1 : index
    %c0_116 = arith.constant 0 : index
    %c0_117 = arith.constant 0 : index
    %330 = vector.load %arg8[%c1_115, %c0_116, %c0_117] : memref<2x1x32xf32, #tpu.memory_space<vmem>>, vector<1x1x32xf32>
    %331 = vector.shape_cast %330 : vector<1x1x32xf32> to vector<1x32xf32>
    %332 = vector.broadcast %331 : vector<1x32xf32> to vector<16x32xf32>
    %333 = arith.addf %329, %332 : vector<16x32xf32>
    %334 = arith.addf %333, %218 : vector<16x32xf32>
    %c1_118 = arith.constant 1 : index
    %c0_119 = arith.constant 0 : index
    %c0_120 = arith.constant 0 : index
    %335 = vector.load %arg9[%c1_118, %c0_119, %c0_120] : memref<2x1x32xf32, #tpu.memory_space<vmem>>, vector<1x1x32xf32>
    %336 = vector.shape_cast %335 : vector<1x1x32xf32> to vector<1x32xf32>
    %c1_121 = arith.constant 1 : index
    %c0_122 = arith.constant 0 : index
    %c0_123 = arith.constant 0 : index
    %337 = vector.load %arg10[%c1_121, %c0_122, %c0_123] : memref<2x1x32xf32, #tpu.memory_space<vmem>>, vector<1x1x32xf32>
    %338 = vector.shape_cast %337 : vector<1x1x32xf32> to vector<1x32xf32>
    %cst_124 = arith.constant dense<0.000000e+00> : vector<16xf32>
    %339 = vector.multi_reduction <add>, %334, %cst_124 [1] : vector<16x32xf32> to vector<16xf32>
    %340 = vector.shape_cast %339 : vector<16xf32> to vector<16x1xf32>
    %cst_125 = arith.constant 3.200000e+01 : f32
    %341 = vector.broadcast %cst_125 : f32 to vector<16x1xf32>
    %342 = arith.divf %340, %341 : vector<16x1xf32>
    %343 = vector.broadcast %342 : vector<16x1xf32> to vector<16x32xf32>
    %344 = arith.subf %334, %343 : vector<16x32xf32>
    %345 = arith.mulf %344, %344 : vector<16x32xf32>
    %cst_126 = arith.constant dense<0.000000e+00> : vector<16xf32>
    %346 = vector.multi_reduction <add>, %345, %cst_126 [1] : vector<16x32xf32> to vector<16xf32>
    %347 = vector.shape_cast %346 : vector<16xf32> to vector<16x1xf32>
    %cst_127 = arith.constant 3.200000e+01 : f32
    %348 = vector.broadcast %cst_127 : f32 to vector<16x1xf32>
    %349 = arith.divf %347, %348 : vector<16x1xf32>
    %350 = vector.broadcast %342 : vector<16x1xf32> to vector<16x32xf32>
    %351 = arith.subf %334, %350 : vector<16x32xf32>
    %cst_128 = arith.constant 9.99999996E-13 : f32
    %352 = vector.broadcast %cst_128 : f32 to vector<16x1xf32>
    %353 = arith.addf %349, %352 : vector<16x1xf32>
    %354 = math.rsqrt %353 : vector<16x1xf32>
    %355 = vector.broadcast %354 : vector<16x1xf32> to vector<16x32xf32>
    %356 = arith.mulf %351, %355 : vector<16x32xf32>
    %357 = vector.broadcast %336 : vector<1x32xf32> to vector<16x32xf32>
    %358 = arith.mulf %356, %357 : vector<16x32xf32>
    %359 = vector.broadcast %338 : vector<1x32xf32> to vector<16x32xf32>
    %360 = arith.addf %358, %359 : vector<16x32xf32>
    %c1_129 = arith.constant 1 : index
    %c0_130 = arith.constant 0 : index
    %c0_131 = arith.constant 0 : index
    %361 = vector.load %arg11[%c1_129, %c0_130, %c0_131] : memref<2x32x64xbf16, #tpu.memory_space<vmem>>, vector<1x32x64xbf16>
    %362 = vector.shape_cast %361 : vector<1x32x64xbf16> to vector<32x64xbf16>
    %363 = arith.truncf %360 : vector<16x32xf32> to vector<16x32xbf16>
    %cst_132 = arith.constant dense<0.000000e+00> : vector<16x64xf32>
    %364 = tpu.matmul %363, %362, %cst_132 {dimension_numbers = #tpu.dot_dimension_numbers<[1], [0], [0], [1], [0, 0, 1, 1], [], []>} : vector<16x32xbf16>, vector<32x64xbf16>, vector<16x64xf32> -> vector<16x64xf32>
    %c1_133 = arith.constant 1 : index
    %c0_134 = arith.constant 0 : index
    %c0_135 = arith.constant 0 : index
    %365 = vector.load %arg12[%c1_133, %c0_134, %c0_135] : memref<2x1x64xf32, #tpu.memory_space<vmem>>, vector<1x1x64xf32>
    %366 = vector.shape_cast %365 : vector<1x1x64xf32> to vector<1x64xf32>
    %367 = vector.broadcast %366 : vector<1x64xf32> to vector<16x64xf32>
    %368 = arith.addf %364, %367 : vector<16x64xf32>
    %cst_136 = arith.constant 5.000000e-01 : f32
    %369 = vector.broadcast %cst_136 : f32 to vector<16x64xf32>
    %370 = arith.mulf %369, %368 : vector<16x64xf32>
    %cst_137 = arith.constant 0.707106769 : f32
    %371 = vector.broadcast %cst_137 : f32 to vector<16x64xf32>
    %372 = arith.mulf %368, %371 : vector<16x64xf32>
    %373 = math.erf %372 : vector<16x64xf32>
    %cst_138 = arith.constant 1.000000e+00 : f32
    %374 = vector.broadcast %cst_138 : f32 to vector<16x64xf32>
    %375 = arith.addf %374, %373 : vector<16x64xf32>
    %376 = arith.mulf %370, %375 : vector<16x64xf32>
    %c1_139 = arith.constant 1 : index
    %c0_140 = arith.constant 0 : index
    %c0_141 = arith.constant 0 : index
    %377 = vector.load %arg13[%c1_139, %c0_140, %c0_141] : memref<2x64x32xbf16, #tpu.memory_space<vmem>>, vector<1x64x32xbf16>
    %378 = vector.shape_cast %377 : vector<1x64x32xbf16> to vector<64x32xbf16>
    %379 = arith.truncf %376 : vector<16x64xf32> to vector<16x64xbf16>
    %cst_142 = arith.constant dense<0.000000e+00> : vector<16x32xf32>
    %380 = tpu.matmul %379, %378, %cst_142 {dimension_numbers = #tpu.dot_dimension_numbers<[1], [0], [0], [1], [0, 0, 1, 1], [], []>} : vector<16x64xbf16>, vector<64x32xbf16>, vector<16x32xf32> -> vector<16x32xf32>
    %c1_143 = arith.constant 1 : index
    %c0_144 = arith.constant 0 : index
    %c0_145 = arith.constant 0 : index
    %381 = vector.load %arg14[%c1_143, %c0_144, %c0_145] : memref<2x1x32xf32, #tpu.memory_space<vmem>>, vector<1x1x32xf32>
    %382 = vector.shape_cast %381 : vector<1x1x32xf32> to vector<1x32xf32>
    %383 = vector.broadcast %382 : vector<1x32xf32> to vector<16x32xf32>
    %384 = arith.addf %380, %383 : vector<16x32xf32>
    %385 = arith.addf %384, %360 : vector<16x32xf32>
    %c1_146 = arith.constant 1 : index
    %c0_147 = arith.constant 0 : index
    %c0_148 = arith.constant 0 : index
    %386 = vector.load %arg15[%c1_146, %c0_147, %c0_148] : memref<2x1x32xf32, #tpu.memory_space<vmem>>, vector<1x1x32xf32>
    %387 = vector.shape_cast %386 : vector<1x1x32xf32> to vector<1x32xf32>
    %c1_149 = arith.constant 1 : index
    %c0_150 = arith.constant 0 : index
    %c0_151 = arith.constant 0 : index
    %388 = vector.load %arg16[%c1_149, %c0_150, %c0_151] : memref<2x1x32xf32, #tpu.memory_space<vmem>>, vector<1x1x32xf32>
    %389 = vector.shape_cast %388 : vector<1x1x32xf32> to vector<1x32xf32>
    %cst_152 = arith.constant dense<0.000000e+00> : vector<16xf32>
    %390 = vector.multi_reduction <add>, %385, %cst_152 [1] : vector<16x32xf32> to vector<16xf32>
    %391 = vector.shape_cast %390 : vector<16xf32> to vector<16x1xf32>
    %cst_153 = arith.constant 3.200000e+01 : f32
    %392 = vector.broadcast %cst_153 : f32 to vector<16x1xf32>
    %393 = arith.divf %391, %392 : vector<16x1xf32>
    %394 = vector.broadcast %393 : vector<16x1xf32> to vector<16x32xf32>
    %395 = arith.subf %385, %394 : vector<16x32xf32>
    %396 = arith.mulf %395, %395 : vector<16x32xf32>
    %cst_154 = arith.constant dense<0.000000e+00> : vector<16xf32>
    %397 = vector.multi_reduction <add>, %396, %cst_154 [1] : vector<16x32xf32> to vector<16xf32>
    %398 = vector.shape_cast %397 : vector<16xf32> to vector<16x1xf32>
    %cst_155 = arith.constant 3.200000e+01 : f32
    %399 = vector.broadcast %cst_155 : f32 to vector<16x1xf32>
    %400 = arith.divf %398, %399 : vector<16x1xf32>
    %401 = vector.broadcast %393 : vector<16x1xf32> to vector<16x32xf32>
    %402 = arith.subf %385, %401 : vector<16x32xf32>
    %cst_156 = arith.constant 9.99999996E-13 : f32
    %403 = vector.broadcast %cst_156 : f32 to vector<16x1xf32>
    %404 = arith.addf %400, %403 : vector<16x1xf32>
    %405 = math.rsqrt %404 : vector<16x1xf32>
    %406 = vector.broadcast %405 : vector<16x1xf32> to vector<16x32xf32>
    %407 = arith.mulf %402, %406 : vector<16x32xf32>
    %408 = vector.broadcast %387 : vector<1x32xf32> to vector<16x32xf32>
    %409 = arith.mulf %407, %408 : vector<16x32xf32>
    %410 = vector.broadcast %389 : vector<1x32xf32> to vector<16x32xf32>
    %411 = arith.addf %409, %410 : vector<16x32xf32>
    %412 = vector.extract_strided_slice %411 {offsets = [0, 0], sizes = [1, 32], strides = [1, 1]} : vector<16x32xf32> to vector<1x32xf32>
    %413 = vector.extract_strided_slice %411 {offsets = [8, 0], sizes = [1, 32], strides = [1, 1]} : vector<16x32xf32> to vector<1x32xf32>
    %414 = tpu.concatenate %412, %413 in 0 : vector<1x32xf32>, vector<1x32xf32> -> vector<2x32xf32>
    %c0_157 = arith.constant 0 : index
    %c0_158 = arith.constant 0 : index
    %415 = vector.load %arg17[%c0_157, %c0_158] : memref<32x32xbf16, #tpu.memory_space<vmem>>, vector<32x32xbf16>
    %416 = arith.truncf %414 : vector<2x32xf32> to vector<2x32xbf16>
    %cst_159 = arith.constant dense<0.000000e+00> : vector<2x32xf32>
    %417 = tpu.matmul %416, %415, %cst_159 {dimension_numbers = #tpu.dot_dimension_numbers<[1], [0], [0], [1], [0, 0, 1, 1], [], []>} : vector<2x32xbf16>, vector<32x32xbf16>, vector<2x32xf32> -> vector<2x32xf32>
    %c0_160 = arith.constant 0 : index
    %c0_161 = arith.constant 0 : index
    %418 = vector.load %arg18[%c0_160, %c0_161] : memref<1x32xf32, #tpu.memory_space<vmem>>, vector<1x32xf32>
    %419 = vector.broadcast %418 : vector<1x32xf32> to vector<2x32xf32>
    %420 = arith.addf %417, %419 : vector<2x32xf32>
    %421 = math.tanh %420 : vector<2x32xf32>
    %422 = vector.shape_cast %414 : vector<2x32xf32> to vector<1x2x32xf32>
    %c0_162 = arith.constant 0 : index
    %c0_163 = arith.constant 0 : index
    %c0_164 = arith.constant 0 : index
    %423 = vector.load %arg19[%c0_162, %c0_163, %c0_164] : memref<1x2x32xf32, #tpu.memory_space<vmem>>, vector<1x2x32xf32>
    tpu.vector_store %arg19[%c0_162, %c0_163, %c0_164], %422 {strides = array<i32>} : memref<1x2x32xf32, #tpu.memory_space<vmem>>, vector<1x2x32xf32>,
    %424 = vector.shape_cast %421 : vector<2x32xf32> to vector<1x2x32xf32>
    %c0_165 = arith.constant 0 : index
    %c0_166 = arith.constant 0 : index
    %c0_167 = arith.constant 0 : index
    %425 = vector.load %arg20[%c0_165, %c0_166, %c0_167] : memref<1x2x32xf32, #tpu.memory_space<vmem>>, vector<1x2x32xf32>
    tpu.vector_store %arg20[%c0_165, %c0_166, %c0_167], %424 {strides = array<i32>} : memref<1x2x32xf32, #tpu.memory_space<vmem>>, vector<1x2x32xf32>,
    return
  }
  func.func @transform_0(%arg0: i32) -> (i32, i32) {
    %c0_i32 = arith.constant 0 : i32
    %c0_i32_0 = arith.constant 0 : i32
    return %arg0, %c0_i32 : i32, i32
  }
  func.func @transform_1(%arg0: i32) -> (i32, i32, i32) {
    %c0_i32 = arith.constant 0 : i32
    %c0_i32_0 = arith.constant 0 : i32
    %c0_i32_1 = arith.constant 0 : i32
    return %arg0, %c0_i32, %c0_i32_0 : i32, i32, i32
  }
  func.func @transform_2(%arg0: i32) -> (i32, i32) {
    %c0_i32 = arith.constant 0 : i32
    %c0_i32_0 = arith.constant 0 : i32
    %c0_i32_1 = arith.constant 0 : i32
    return %c0_i32, %c0_i32_0 : i32, i32
  }
  func.func @transform_3(%arg0: i32) -> (i32, i32) {
    %c0_i32 = arith.constant 0 : i32
    %c0_i32_0 = arith.constant 0 : i32
    %c0_i32_1 = arith.constant 0 : i32
    return %c0_i32, %c0_i32_0 : i32, i32
  }
  func.func @transform_4(%arg0: i32) -> (i32, i32, i32) {
    %c0_i32 = arith.constant 0 : i32
    %c0_i32_0 = arith.constant 0 : i32
    %c0_i32_1 = arith.constant 0 : i32
    %c0_i32_2 = arith.constant 0 : i32
    return %c0_i32, %c0_i32_0, %c0_i32_1 : i32, i32, i32
  }
  func.func @transform_5(%arg0: i32) -> (i32, i32, i32) {
    %c0_i32 = arith.constant 0 : i32
    %c0_i32_0 = arith.constant 0 : i32
    %c0_i32_1 = arith.constant 0 : i32
    %c0_i32_2 = arith.constant 0 : i32
    return %c0_i32, %c0_i32_0, %c0_i32_1 : i32, i32, i32
  }
  func.func @transform_6(%arg0: i32) -> (i32, i32, i32) {
    %c0_i32 = arith.constant 0 : i32
    %c0_i32_0 = arith.constant 0 : i32
    %c0_i32_1 = arith.constant 0 : i32
    %c0_i32_2 = arith.constant 0 : i32
    return %c0_i32, %c0_i32_0, %c0_i32_1 : i32, i32, i32
  }
  func.func @transform_7(%arg0: i32) -> (i32, i32, i32) {
    %c0_i32 = arith.constant 0 : i32
    %c0_i32_0 = arith.constant 0 : i32
    %c0_i32_1 = arith.constant 0 : i32
    %c0_i32_2 = arith.constant 0 : i32
    return %c0_i32, %c0_i32_0, %c0_i32_1 : i32, i32, i32
  }
  func.func @transform_8(%arg0: i32) -> (i32, i32, i32) {
    %c0_i32 = arith.constant 0 : i32
    %c0_i32_0 = arith.constant 0 : i32
    %c0_i32_1 = arith.constant 0 : i32
    %c0_i32_2 = arith.constant 0 : i32
    return %c0_i32, %c0_i32_0, %c0_i32_1 : i32, i32, i32
  }
  func.func @transform_9(%arg0: i32) -> (i32, i32, i32) {
    %c0_i32 = arith.constant 0 : i32
    %c0_i32_0 = arith.constant 0 : i32
    %c0_i32_1 = arith.constant 0 : i32
    %c0_i32_2 = arith.constant 0 : i32
    return %c0_i32, %c0_i32_0, %c0_i32_1 : i32, i32, i32
  }
  func.func @transform_10(%arg0: i32) -> (i32, i32, i32) {
    %c0_i32 = arith.constant 0 : i32
    %c0_i32_0 = arith.constant 0 : i32
    %c0_i32_1 = arith.constant 0 : i32
    %c0_i32_2 = arith.constant 0 : i32
    return %c0_i32, %c0_i32_0, %c0_i32_1 : i32, i32, i32
  }
  func.func @transform_11(%arg0: i32) -> (i32, i32, i32) {
    %c0_i32 = arith.constant 0 : i32
    %c0_i32_0 = arith.constant 0 : i32
    %c0_i32_1 = arith.constant 0 : i32
    %c0_i32_2 = arith.constant 0 : i32
    return %c0_i32, %c0_i32_0, %c0_i32_1 : i32, i32, i32
  }
  func.func @transform_12(%arg0: i32) -> (i32, i32, i32) {
    %c0_i32 = arith.constant 0 : i32
    %c0_i32_0 = arith.constant 0 : i32
    %c0_i32_1 = arith.constant 0 : i32
    %c0_i32_2 = arith.constant 0 : i32
    return %c0_i32, %c0_i32_0, %c0_i32_1 : i32, i32, i32
  }
  func.func @transform_13(%arg0: i32) -> (i32, i32, i32) {
    %c0_i32 = arith.constant 0 : i32
    %c0_i32_0 = arith.constant 0 : i32
    %c0_i32_1 = arith.constant 0 : i32
    %c0_i32_2 = arith.constant 0 : i32
    return %c0_i32, %c0_i32_0, %c0_i32_1 : i32, i32, i32
  }
  func.func @transform_14(%arg0: i32) -> (i32, i32, i32) {
    %c0_i32 = arith.constant 0 : i32
    %c0_i32_0 = arith.constant 0 : i32
    %c0_i32_1 = arith.constant 0 : i32
    %c0_i32_2 = arith.constant 0 : i32
    return %c0_i32, %c0_i32_0, %c0_i32_1 : i32, i32, i32
  }
  func.func @transform_15(%arg0: i32) -> (i32, i32, i32) {
    %c0_i32 = arith.constant 0 : i32
    %c0_i32_0 = arith.constant 0 : i32
    %c0_i32_1 = arith.constant 0 : i32
    %c0_i32_2 = arith.constant 0 : i32
    return %c0_i32, %c0_i32_0, %c0_i32_1 : i32, i32, i32
  }
  func.func @transform_16(%arg0: i32) -> (i32, i32) {
    %c0_i32 = arith.constant 0 : i32
    %c0_i32_0 = arith.constant 0 : i32
    %c0_i32_1 = arith.constant 0 : i32
    return %c0_i32, %c0_i32_0 : i32, i32
  }
  func.func @transform_17(%arg0: i32) -> (i32, i32) {
    %c0_i32 = arith.constant 0 : i32
    %c0_i32_0 = arith.constant 0 : i32
    %c0_i32_1 = arith.constant 0 : i32
    return %c0_i32, %c0_i32_0 : i32, i32
  }
  func.func @transform_18(%arg0: i32) -> (i32, i32, i32) {
    %c0_i32 = arith.constant 0 : i32
    %c0_i32_0 = arith.constant 0 : i32
    %c0_i32_1 = arith.constant 0 : i32
    return %arg0, %c0_i32, %c0_i32_0 : i32, i32, i32
  }
  func.func @transform_19(%arg0: i32) -> (i32, i32, i32) {
    %c0_i32 = arith.constant 0 : i32
    %c0_i32_0 = arith.constant 0 : i32
    %c0_i32_1 = arith.constant 0 : i32
    return %arg0, %c0_i32, %c0_i32_0 : i32, i32, i32
  }
}

module attributes {stable_mosaic.version = 11 : i64} {
  func.func @_bert_fused_kernel(%arg0: i32, %arg1: memref<16x32xf32, #tpu.memory_space<vmem>>, %arg2: memref<2x1x8xf32, #tpu.memory_space<vmem>>, %arg3: memref<1x32xf32, #tpu.memory_space<vmem>>, %arg4: memref<1x32xf32, #tpu.memory_space<vmem>>, %arg5: memref<2x32x96xbf16, #tpu.memory_space<vmem>>, %arg6: memref<2x1x96xf32, #tpu.memory_space<vmem>>, %arg7: memref<2x32x32xbf16, #tpu.memory_space<vmem>>, %arg8: memref<2x1x32xf32, #tpu.memory_space<vmem>>, %arg9: memref<2x1x32xf32, #tpu.memory_space<vmem>>, %arg10: memref<2x1x32xf32, #tpu.memory_space<vmem>>, %arg11: memref<2x32x64xbf16, #tpu.memory_space<vmem>>, %arg12: memref<2x1x64xf32, #tpu.memory_space<vmem>>, %arg13: memref<2x64x32xbf16, #tpu.memory_space<vmem>>, %arg14: memref<2x1x32xf32, #tpu.memory_space<vmem>>, %arg15: memref<2x1x32xf32, #tpu.memory_space<vmem>>, %arg16: memref<2x1x32xf32, #tpu.memory_space<vmem>>, %arg17: memref<32x32xbf16, #tpu.memory_space<vmem>>, %arg18: memref<1x32xf32, #tpu.memory_space<vmem>>, %arg19: memref<1x2x32xf32, #tpu.memory_space<vmem>>, %arg20: memref<1x2x32xf32, #tpu.memory_space<vmem>>) attributes {dimension_semantics = [#tpu.dimension_semantics<parallel>], iteration_bounds = array<i64: 2>, scalar_prefetch = 0 : i64, scratch_operands = 0 : i64, tpu.core_type = #tpu.core_type<tc>, window_params = [{transform_indices = @transform_0, window_bounds = array<i64: 16, 32>}, {transform_indices = @transform_1, window_bounds = array<i64: 2, 1, 8>}, {pipeline_mode = #tpu.pipeline_mode<synchronous>, transform_indices = @transform_2, window_bounds = array<i64: 1, 32>}, {pipeline_mode = #tpu.pipeline_mode<synchronous>, transform_indices = @transform_3, window_bounds = array<i64: 1, 32>}, {pipeline_mode = #tpu.pipeline_mode<synchronous>, transform_indices = @transform_4, window_bounds = array<i64: 2, 32, 96>}, {pipeline_mode = #tpu.pipeline_mode<synchronous>, transform_indices = @transform_5, window_bounds = array<i64: 2, 1, 96>}, {pipeline_mode = #tpu.pipeline_mode<synchronous>, transform_indices = @transform_6, window_bounds = array<i64: 2, 32, 32>}, {pipeline_mode = #tpu.pipeline_mode<synchronous>, transform_indices = @transform_7, window_bounds = array<i64: 2, 1, 32>}, {pipeline_mode = #tpu.pipeline_mode<synchronous>, transform_indices = @transform_8, window_bounds = array<i64: 2, 1, 32>}, {pipeline_mode = #tpu.pipeline_mode<synchronous>, transform_indices = @transform_9, window_bounds = array<i64: 2, 1, 32>}, {pipeline_mode = #tpu.pipeline_mode<synchronous>, transform_indices = @transform_10, window_bounds = array<i64: 2, 32, 64>}, {pipeline_mode = #tpu.pipeline_mode<synchronous>, transform_indices = @transform_11, window_bounds = array<i64: 2, 1, 64>}, {pipeline_mode = #tpu.pipeline_mode<synchronous>, transform_indices = @transform_12, window_bounds = array<i64: 2, 64, 32>}, {pipeline_mode = #tpu.pipeline_mode<synchronous>, transform_indices = @transform_13, window_bounds = array<i64: 2, 1, 32>}, {pipeline_mode = #tpu.pipeline_mode<synchronous>, transform_indices = @transform_14, window_bounds = array<i64: 2, 1, 32>}, {pipeline_mode = #tpu.pipeline_mode<synchronous>, transform_indices = @transform_15, window_bounds = array<i64: 2, 1, 32>}, {pipeline_mode = #tpu.pipeline_mode<synchronous>, transform_indices = @transform_16, window_bounds = array<i64: 32, 32>}, {pipeline_mode = #tpu.pipeline_mode<synchronous>, transform_indices = @transform_17, window_bounds = array<i64: 1, 32>}, {transform_indices = @transform_18, window_bounds = array<i64: 1, 2, 32>}, {transform_indices = @transform_19, window_bounds = array<i64: 1, 2, 32>}]} {
    %c0 = arith.constant 0 : index
    %c0_0 = arith.constant 0 : index
    %0 = vector.load %arg1[%c0, %c0_0] : memref<16x32xf32, #tpu.memory_space<vmem>>, vector<16x32xf32>
    %c0_1 = arith.constant 0 : index
    %c0_2 = arith.constant 0 : index
    %1 = vector.load %arg3[%c0_1, %c0_2] : memref<1x32xf32, #tpu.memory_space<vmem>>, vector<1x32xf32>
    %c0_3 = arith.constant 0 : index
    %c0_4 = arith.constant 0 : index
    %2 = vector.load %arg4[%c0_3, %c0_4] : memref<1x32xf32, #tpu.memory_space<vmem>>, vector<1x32xf32>
    %cst = arith.constant dense<0.000000e+00> : vector<16xf32>
    %3 = vector.multi_reduction <add>, %0, %cst [1] : vector<16x32xf32> to vector<16xf32>
    %4 = vector.shape_cast %3 : vector<16xf32> to vector<16x1xf32>
    %cst_5 = arith.constant 3.200000e+01 : f32
    %5 = vector.broadcast %cst_5 : f32 to vector<16x1xf32>
    %6 = arith.divf %4, %5 : vector<16x1xf32>
    %7 = vector.broadcast %6 : vector<16x1xf32> to vector<16x32xf32>
    %8 = arith.subf %0, %7 : vector<16x32xf32>
    %9 = arith.mulf %8, %8 : vector<16x32xf32>
    %cst_6 = arith.constant dense<0.000000e+00> : vector<16xf32>
    %10 = vector.multi_reduction <add>, %9, %cst_6 [1] : vector<16x32xf32> to vector<16xf32>
    %11 = vector.shape_cast %10 : vector<16xf32> to vector<16x1xf32>
    %cst_7 = arith.constant 3.200000e+01 : f32
    %12 = vector.broadcast %cst_7 : f32 to vector<16x1xf32>
    %13 = arith.divf %11, %12 : vector<16x1xf32>
    %14 = vector.broadcast %6 : vector<16x1xf32> to vector<16x32xf32>
    %15 = arith.subf %0, %14 : vector<16x32xf32>
    %cst_8 = arith.constant 9.99999996E-13 : f32
    %16 = vector.broadcast %cst_8 : f32 to vector<16x1xf32>
    %17 = arith.addf %13, %16 : vector<16x1xf32>
    %18 = math.rsqrt %17 : vector<16x1xf32>
    %19 = vector.broadcast %18 : vector<16x1xf32> to vector<16x32xf32>
    %20 = arith.mulf %15, %19 : vector<16x32xf32>
    %21 = vector.broadcast %1 : vector<1x32xf32> to vector<16x32xf32>
    %22 = arith.mulf %20, %21 : vector<16x32xf32>
    %23 = vector.broadcast %2 : vector<1x32xf32> to vector<16x32xf32>
    %24 = arith.addf %22, %23 : vector<16x32xf32>
    %c0_9 = arith.constant 0 : index
    %c0_10 = arith.constant 0 : index
    %c0_11 = arith.constant 0 : index
    %25 = vector.load %arg2[%c0_9, %c0_10, %c0_11] : memref<2x1x8xf32, #tpu.memory_space<vmem>>, vector<2x1x8xf32>
    %c0_12 = arith.constant 0 : index
    %c0_13 = arith.constant 0 : index
    %c0_14 = arith.constant 0 : index
    %26 = vector.load %arg5[%c0_12, %c0_13, %c0_14] : memref<2x32x96xbf16, #tpu.memory_space<vmem>>, vector<1x32x96xbf16>
    %27 = vector.shape_cast %26 : vector<1x32x96xbf16> to vector<32x96xbf16>
    %28 = arith.truncf %24 : vector<16x32xf32> to vector<16x32xbf16>
    %cst_15 = arith.constant dense<0.000000e+00> : vector<16x96xf32>
    %29 = tpu.matmul %28, %27, %cst_15 {dimension_numbers = #tpu.dot_dimension_numbers<[1], [0], [0], [1], [0, 0, 1, 1], [], []>} : vector<16x32xbf16>, vector<32x96xbf16>, vector<16x96xf32> -> vector<16x96xf32>
    %c0_16 = arith.constant 0 : index
    %c0_17 = arith.constant 0 : index
    %c0_18 = arith.constant 0 : index
    %30 = vector.load %arg6[%c0_16, %c0_17, %c0_18] : memref<2x1x96xf32, #tpu.memory_space<vmem>>, vector<1x1x96xf32>
    %31 = vector.shape_cast %30 : vector<1x1x96xf32> to vector<1x96xf32>
    %32 = vector.broadcast %31 : vector<1x96xf32> to vector<16x96xf32>
    %33 = arith.addf %29, %32 : vector<16x96xf32>
    %34 = vector.extract_strided_slice %25 {offsets = [0, 0, 0], sizes = [1, 1, 8], strides = [1, 1, 1]} : vector<2x1x8xf32> to vector<1x1x8xf32>
    %35 = vector.shape_cast %34 : vector<1x1x8xf32> to vector<1x8xf32>
    %36 = vector.extract_strided_slice %33 {offsets = [0, 0], sizes = [8, 16], strides = [1, 1]} : vector<16x96xf32> to vector<8x16xf32>
    %37 = vector.extract_strided_slice %33 {offsets = [0, 32], sizes = [8, 16], strides = [1, 1]} : vector<16x96xf32> to vector<8x16xf32>
    %38 = vector.extract_strided_slice %33 {offsets = [0, 64], sizes = [8, 16], strides = [1, 1]} : vector<16x96xf32> to vector<8x16xf32>
    %39 = arith.truncf %36 : vector<8x16xf32> to vector<8x16xbf16>
    %40 = arith.truncf %37 : vector<8x16xf32> to vector<8x16xbf16>
    %41 = tpu.transpose %40, [1, 0] : vector<8x16xbf16> -> vector<16x8xbf16>
    %cst_19 = arith.constant dense<0.000000e+00> : vector<8x8xf32>
    %42 = tpu.matmul %39, %41, %cst_19 {dimension_numbers = #tpu.dot_dimension_numbers<[1], [0], [0], [1], [0, 0, 1, 1], [], []>} : vector<8x16xbf16>, vector<16x8xbf16>, vector<8x8xf32> -> vector<8x8xf32>
    %cst_20 = arith.constant 2.500000e-01 : f32
    %43 = vector.broadcast %cst_20 : f32 to vector<8x8xf32>
    %44 = arith.mulf %42, %43 : vector<8x8xf32>
    %45 = vector.broadcast %35 : vector<1x8xf32> to vector<8x8xf32>
    %46 = arith.addf %44, %45 : vector<8x8xf32>
    %cst_21 = arith.constant dense<0xFF800000> : vector<8xf32>
    %47 = vector.multi_reduction <maximumf>, %46, %cst_21 [1] : vector<8x8xf32> to vector<8xf32>
    %48 = vector.shape_cast %47 : vector<8xf32> to vector<8x1xf32>
    %49 = vector.broadcast %48 : vector<8x1xf32> to vector<8x8xf32>
    %50 = arith.subf %46, %49 : vector<8x8xf32>
    %51 = math.exp %50 : vector<8x8xf32>
    %cst_22 = arith.constant dense<0.000000e+00> : vector<8xf32>
    %52 = vector.multi_reduction <add>, %51, %cst_22 [1] : vector<8x8xf32> to vector<8xf32>
    %53 = vector.shape_cast %52 : vector<8xf32> to vector<8x1xf32>
    %54 = vector.broadcast %53 : vector<8x1xf32> to vector<8x8xf32>
    %55 = arith.divf %51, %54 : vector<8x8xf32>
    %56 = arith.truncf %55 : vector<8x8xf32> to vector<8x8xbf16>
    %57 = arith.truncf %38 : vector<8x16xf32> to vector<8x16xbf16>
    %cst_23 = arith.constant dense<0.000000e+00> : vector<8x16xf32>
    %58 = tpu.matmul %56, %57, %cst_23 {dimension_numbers = #tpu.dot_dimension_numbers<[1], [0], [0], [1], [0, 0, 1, 1], [], []>} : vector<8x8xbf16>, vector<8x16xbf16>, vector<8x16xf32> -> vector<8x16xf32>
    %59 = vector.extract_strided_slice %33 {offsets = [0, 16], sizes = [8, 16], strides = [1, 1]} : vector<16x96xf32> to vector<8x16xf32>
    %60 = vector.extract_strided_slice %33 {offsets = [0, 48], sizes = [8, 16], strides = [1, 1]} : vector<16x96xf32> to vector<8x16xf32>
    %61 = vector.extract_strided_slice %33 {offsets = [0, 80], sizes = [8, 16], strides = [1, 1]} : vector<16x96xf32> to vector<8x16xf32>
    %62 = arith.truncf %59 : vector<8x16xf32> to vector<8x16xbf16>
    %63 = arith.truncf %60 : vector<8x16xf32> to vector<8x16xbf16>
    %64 = tpu.transpose %63, [1, 0] : vector<8x16xbf16> -> vector<16x8xbf16>
    %cst_24 = arith.constant dense<0.000000e+00> : vector<8x8xf32>
    %65 = tpu.matmul %62, %64, %cst_24 {dimension_numbers = #tpu.dot_dimension_numbers<[1], [0], [0], [1], [0, 0, 1, 1], [], []>} : vector<8x16xbf16>, vector<16x8xbf16>, vector<8x8xf32> -> vector<8x8xf32>
    %cst_25 = arith.constant 2.500000e-01 : f32
    %66 = vector.broadcast %cst_25 : f32 to vector<8x8xf32>
    %67 = arith.mulf %65, %66 : vector<8x8xf32>
    %68 = vector.broadcast %35 : vector<1x8xf32> to vector<8x8xf32>
    %69 = arith.addf %67, %68 : vector<8x8xf32>
    %cst_26 = arith.constant dense<0xFF800000> : vector<8xf32>
    %70 = vector.multi_reduction <maximumf>, %69, %cst_26 [1] : vector<8x8xf32> to vector<8xf32>
    %71 = vector.shape_cast %70 : vector<8xf32> to vector<8x1xf32>
    %72 = vector.broadcast %71 : vector<8x1xf32> to vector<8x8xf32>
    %73 = arith.subf %69, %72 : vector<8x8xf32>
    %74 = math.exp %73 : vector<8x8xf32>
    %cst_27 = arith.constant dense<0.000000e+00> : vector<8xf32>
    %75 = vector.multi_reduction <add>, %74, %cst_27 [1] : vector<8x8xf32> to vector<8xf32>
    %76 = vector.shape_cast %75 : vector<8xf32> to vector<8x1xf32>
    %77 = vector.broadcast %76 : vector<8x1xf32> to vector<8x8xf32>
    %78 = arith.divf %74, %77 : vector<8x8xf32>
    %79 = arith.truncf %78 : vector<8x8xf32> to vector<8x8xbf16>
    %80 = arith.truncf %61 : vector<8x16xf32> to vector<8x16xbf16>
    %cst_28 = arith.constant dense<0.000000e+00> : vector<8x16xf32>
    %81 = tpu.matmul %79, %80, %cst_28 {dimension_numbers = #tpu.dot_dimension_numbers<[1], [0], [0], [1], [0, 0, 1, 1], [], []>} : vector<8x8xbf16>, vector<8x16xbf16>, vector<8x16xf32> -> vector<8x16xf32>
    %82 = tpu.concatenate %58, %81 in 1 : vector<8x16xf32>, vector<8x16xf32> -> vector<8x32xf32>
    %83 = vector.extract_strided_slice %25 {offsets = [1, 0, 0], sizes = [1, 1, 8], strides = [1, 1, 1]} : vector<2x1x8xf32> to vector<1x1x8xf32>
    %84 = vector.shape_cast %83 : vector<1x1x8xf32> to vector<1x8xf32>
    %85 = vector.extract_strided_slice %33 {offsets = [8, 0], sizes = [8, 16], strides = [1, 1]} : vector<16x96xf32> to vector<8x16xf32>
    %86 = vector.extract_strided_slice %33 {offsets = [8, 32], sizes = [8, 16], strides = [1, 1]} : vector<16x96xf32> to vector<8x16xf32>
    %87 = vector.extract_strided_slice %33 {offsets = [8, 64], sizes = [8, 16], strides = [1, 1]} : vector<16x96xf32> to vector<8x16xf32>
    %88 = arith.truncf %85 : vector<8x16xf32> to vector<8x16xbf16>
    %89 = arith.truncf %86 : vector<8x16xf32> to vector<8x16xbf16>
    %90 = tpu.transpose %89, [1, 0] : vector<8x16xbf16> -> vector<16x8xbf16>
    %cst_29 = arith.constant dense<0.000000e+00> : vector<8x8xf32>
    %91 = tpu.matmul %88, %90, %cst_29 {dimension_numbers = #tpu.dot_dimension_numbers<[1], [0], [0], [1], [0, 0, 1, 1], [], []>} : vector<8x16xbf16>, vector<16x8xbf16>, vector<8x8xf32> -> vector<8x8xf32>
    %cst_30 = arith.constant 2.500000e-01 : f32
    %92 = vector.broadcast %cst_30 : f32 to vector<8x8xf32>
    %93 = arith.mulf %91, %92 : vector<8x8xf32>
    %94 = vector.broadcast %84 : vector<1x8xf32> to vector<8x8xf32>
    %95 = arith.addf %93, %94 : vector<8x8xf32>
    %cst_31 = arith.constant dense<0xFF800000> : vector<8xf32>
    %96 = vector.multi_reduction <maximumf>, %95, %cst_31 [1] : vector<8x8xf32> to vector<8xf32>
    %97 = vector.shape_cast %96 : vector<8xf32> to vector<8x1xf32>
    %98 = vector.broadcast %97 : vector<8x1xf32> to vector<8x8xf32>
    %99 = arith.subf %95, %98 : vector<8x8xf32>
    %100 = math.exp %99 : vector<8x8xf32>
    %cst_32 = arith.constant dense<0.000000e+00> : vector<8xf32>
    %101 = vector.multi_reduction <add>, %100, %cst_32 [1] : vector<8x8xf32> to vector<8xf32>
    %102 = vector.shape_cast %101 : vector<8xf32> to vector<8x1xf32>
    %103 = vector.broadcast %102 : vector<8x1xf32> to vector<8x8xf32>
    %104 = arith.divf %100, %103 : vector<8x8xf32>
    %105 = arith.truncf %104 : vector<8x8xf32> to vector<8x8xbf16>
    %106 = arith.truncf %87 : vector<8x16xf32> to vector<8x16xbf16>
    %cst_33 = arith.constant dense<0.000000e+00> : vector<8x16xf32>
    %107 = tpu.matmul %105, %106, %cst_33 {dimension_numbers = #tpu.dot_dimension_numbers<[1], [0], [0], [1], [0, 0, 1, 1], [], []>} : vector<8x8xbf16>, vector<8x16xbf16>, vector<8x16xf32> -> vector<8x16xf32>
    %108 = vector.extract_strided_slice %33 {offsets = [8, 16], sizes = [8, 16], strides = [1, 1]} : vector<16x96xf32> to vector<8x16xf32>
    %109 = vector.extract_strided_slice %33 {offsets = [8, 48], sizes = [8, 16], strides = [1, 1]} : vector<16x96xf32> to vector<8x16xf32>
    %110 = vector.extract_strided_slice %33 {offsets = [8, 80], sizes = [8, 16], strides = [1, 1]} : vector<16x96xf32> to vector<8x16xf32>
    %111 = arith.truncf %108 : vector<8x16xf32> to vector<8x16xbf16>
    %112 = arith.truncf %109 : vector<8x16xf32> to vector<8x16xbf16>
    %113 = tpu.transpose %112, [1, 0] : vector<8x16xbf16> -> vector<16x8xbf16>
    %cst_34 = arith.constant dense<0.000000e+00> : vector<8x8xf32>
    %114 = tpu.matmul %111, %113, %cst_34 {dimension_numbers = #tpu.dot_dimension_numbers<[1], [0], [0], [1], [0, 0, 1, 1], [], []>} : vector<8x16xbf16>, vector<16x8xbf16>, vector<8x8xf32> -> vector<8x8xf32>
    %cst_35 = arith.constant 2.500000e-01 : f32
    %115 = vector.broadcast %cst_35 : f32 to vector<8x8xf32>
    %116 = arith.mulf %114, %115 : vector<8x8xf32>
    %117 = vector.broadcast %84 : vector<1x8xf32> to vector<8x8xf32>
    %118 = arith.addf %116, %117 : vector<8x8xf32>
    %cst_36 = arith.constant dense<0xFF800000> : vector<8xf32>
    %119 = vector.multi_reduction <maximumf>, %118, %cst_36 [1] : vector<8x8xf32> to vector<8xf32>
    %120 = vector.shape_cast %119 : vector<8xf32> to vector<8x1xf32>
    %121 = vector.broadcast %120 : vector<8x1xf32> to vector<8x8xf32>
    %122 = arith.subf %118, %121 : vector<8x8xf32>
    %123 = math.exp %122 : vector<8x8xf32>
    %cst_37 = arith.constant dense<0.000000e+00> : vector<8xf32>
    %124 = vector.multi_reduction <add>, %123, %cst_37 [1] : vector<8x8xf32> to vector<8xf32>
    %125 = vector.shape_cast %124 : vector<8xf32> to vector<8x1xf32>
    %126 = vector.broadcast %125 : vector<8x1xf32> to vector<8x8xf32>
    %127 = arith.divf %123, %126 : vector<8x8xf32>
    %128 = arith.truncf %127 : vector<8x8xf32> to vector<8x8xbf16>
    %129 = arith.truncf %110 : vector<8x16xf32> to vector<8x16xbf16>
    %cst_38 = arith.constant dense<0.000000e+00> : vector<8x16xf32>
    %130 = tpu.matmul %128, %129, %cst_38 {dimension_numbers = #tpu.dot_dimension_numbers<[1], [0], [0], [1], [0, 0, 1, 1], [], []>} : vector<8x8xbf16>, vector<8x16xbf16>, vector<8x16xf32> -> vector<8x16xf32>
    %131 = tpu.concatenate %107, %130 in 1 : vector<8x16xf32>, vector<8x16xf32> -> vector<8x32xf32>
    %132 = tpu.concatenate %82, %131 in 0 : vector<8x32xf32>, vector<8x32xf32> -> vector<16x32xf32>
    %c0_39 = arith.constant 0 : index
    %c0_40 = arith.constant 0 : index
    %c0_41 = arith.constant 0 : index
    %133 = vector.load %arg7[%c0_39, %c0_40, %c0_41] : memref<2x32x32xbf16, #tpu.memory_space<vmem>>, vector<1x32x32xbf16>
    %134 = vector.shape_cast %133 : vector<1x32x32xbf16> to vector<32x32xbf16>
    %135 = arith.truncf %132 : vector<16x32xf32> to vector<16x32xbf16>
    %cst_42 = arith.constant dense<0.000000e+00> : vector<16x32xf32>
    %136 = tpu.matmul %135, %134, %cst_42 {dimension_numbers = #tpu.dot_dimension_numbers<[1], [0], [0], [1], [0, 0, 1, 1], [], []>} : vector<16x32xbf16>, vector<32x32xbf16>, vector<16x32xf32> -> vector<16x32xf32>
    %c0_43 = arith.constant 0 : index
    %c0_44 = arith.constant 0 : index
    %c0_45 = arith.constant 0 : index
    %137 = vector.load %arg8[%c0_43, %c0_44, %c0_45] : memref<2x1x32xf32, #tpu.memory_space<vmem>>, vector<1x1x32xf32>
    %138 = vector.shape_cast %137 : vector<1x1x32xf32> to vector<1x32xf32>
    %139 = vector.broadcast %138 : vector<1x32xf32> to vector<16x32xf32>
    %140 = arith.addf %136, %139 : vector<16x32xf32>
    %141 = arith.addf %140, %24 : vector<16x32xf32>
    %c0_46 = arith.constant 0 : index
    %c0_47 = arith.constant 0 : index
    %c0_48 = arith.constant 0 : index
    %142 = vector.load %arg9[%c0_46, %c0_47, %c0_48] : memref<2x1x32xf32, #tpu.memory_space<vmem>>, vector<1x1x32xf32>
    %143 = vector.shape_cast %142 : vector<1x1x32xf32> to vector<1x32xf32>
    %c0_49 = arith.constant 0 : index
    %c0_50 = arith.constant 0 : index
    %c0_51 = arith.constant 0 : index
    %144 = vector.load %arg10[%c0_49, %c0_50, %c0_51] : memref<2x1x32xf32, #tpu.memory_space<vmem>>, vector<1x1x32xf32>
    %145 = vector.shape_cast %144 : vector<1x1x32xf32> to vector<1x32xf32>
    %cst_52 = arith.constant dense<0.000000e+00> : vector<16xf32>
    %146 = vector.multi_reduction <add>, %141, %cst_52 [1] : vector<16x32xf32> to vector<16xf32>
    %147 = vector.shape_cast %146 : vector<16xf32> to vector<16x1xf32>
    %cst_53 = arith.constant 3.200000e+01 : f32
    %148 = vector.broadcast %cst_53 : f32 to vector<16x1xf32>
    %149 = arith.divf %147, %148 : vector<16x1xf32>
    %150 = vector.broadcast %149 : vector<16x1xf32> to vector<16x32xf32>
    %151 = arith.subf %141, %150 : vector<16x32xf32>
    %152 = arith.mulf %151, %151 : vector<16x32xf32>
    %cst_54 = arith.constant dense<0.000000e+00> : vector<16xf32>
    %153 = vector.multi_reduction <add>, %152, %cst_54 [1] : vector<16x32xf32> to vector<16xf32>
    %154 = vector.shape_cast %153 : vector<16xf32> to vector<16x1xf32>
    %cst_55 = arith.constant 3.200000e+01 : f32
    %155 = vector.broadcast %cst_55 : f32 to vector<16x1xf32>
    %156 = arith.divf %154, %155 : vector<16x1xf32>
    %157 = vector.broadcast %149 : vector<16x1xf32> to vector<16x32xf32>
    %158 = arith.subf %141, %157 : vector<16x32xf32>
    %cst_56 = arith.constant 9.99999996E-13 : f32
    %159 = vector.broadcast %cst_56 : f32 to vector<16x1xf32>
    %160 = arith.addf %156, %159 : vector<16x1xf32>
    %161 = math.rsqrt %160 : vector<16x1xf32>
    %162 = vector.broadcast %161 : vector<16x1xf32> to vector<16x32xf32>
    %163 = arith.mulf %158, %162 : vector<16x32xf32>
    %164 = vector.broadcast %143 : vector<1x32xf32> to vector<16x32xf32>
    %165 = arith.mulf %163, %164 : vector<16x32xf32>
    %166 = vector.broadcast %145 : vector<1x32xf32> to vector<16x32xf32>
    %167 = arith.addf %165, %166 : vector<16x32xf32>
    %c0_57 = arith.constant 0 : index
    %c0_58 = arith.constant 0 : index
    %c0_59 = arith.constant 0 : index
    %168 = vector.load %arg11[%c0_57, %c0_58, %c0_59] : memref<2x32x64xbf16, #tpu.memory_space<vmem>>, vector<1x32x64xbf16>
    %169 = vector.shape_cast %168 : vector<1x32x64xbf16> to vector<32x64xbf16>
    %170 = arith.truncf %167 : vector<16x32xf32> to vector<16x32xbf16>
    %cst_60 = arith.constant dense<0.000000e+00> : vector<16x64xf32>
    %171 = tpu.matmul %170, %169, %cst_60 {dimension_numbers = #tpu.dot_dimension_numbers<[1], [0], [0], [1], [0, 0, 1, 1], [], []>} : vector<16x32xbf16>, vector<32x64xbf16>, vector<16x64xf32> -> vector<16x64xf32>
    %c0_61 = arith.constant 0 : index
    %c0_62 = arith.constant 0 : index
    %c0_63 = arith.constant 0 : index
    %172 = vector.load %arg12[%c0_61, %c0_62, %c0_63] : memref<2x1x64xf32, #tpu.memory_space<vmem>>, vector<1x1x64xf32>
    %173 = vector.shape_cast %172 : vector<1x1x64xf32> to vector<1x64xf32>
    %174 = vector.broadcast %173 : vector<1x64xf32> to vector<16x64xf32>
    %175 = arith.addf %171, %174 : vector<16x64xf32>
    %cst_64 = arith.constant 5.000000e-01 : f32
    %176 = vector.broadcast %cst_64 : f32 to vector<16x64xf32>
    %177 = arith.mulf %176, %175 : vector<16x64xf32>
    %cst_65 = arith.constant 0.707106769 : f32
    %178 = vector.broadcast %cst_65 : f32 to vector<16x64xf32>
    %179 = arith.mulf %175, %178 : vector<16x64xf32>
    %180 = math.erf %179 : vector<16x64xf32>
    %cst_66 = arith.constant 1.000000e+00 : f32
    %181 = vector.broadcast %cst_66 : f32 to vector<16x64xf32>
    %182 = arith.addf %181, %180 : vector<16x64xf32>
    %183 = arith.mulf %177, %182 : vector<16x64xf32>
    %c0_67 = arith.constant 0 : index
    %c0_68 = arith.constant 0 : index
    %c0_69 = arith.constant 0 : index
    %184 = vector.load %arg13[%c0_67, %c0_68, %c0_69] : memref<2x64x32xbf16, #tpu.memory_space<vmem>>, vector<1x64x32xbf16>
    %185 = vector.shape_cast %184 : vector<1x64x32xbf16> to vector<64x32xbf16>
    %186 = arith.truncf %183 : vector<16x64xf32> to vector<16x64xbf16>
    %cst_70 = arith.constant dense<0.000000e+00> : vector<16x32xf32>
    %187 = tpu.matmul %186, %185, %cst_70 {dimension_numbers = #tpu.dot_dimension_numbers<[1], [0], [0], [1], [0, 0, 1, 1], [], []>} : vector<16x64xbf16>, vector<64x32xbf16>, vector<16x32xf32> -> vector<16x32xf32>
    %c0_71 = arith.constant 0 : index
    %c0_72 = arith.constant 0 : index
    %c0_73 = arith.constant 0 : index
    %188 = vector.load %arg14[%c0_71, %c0_72, %c0_73] : memref<2x1x32xf32, #tpu.memory_space<vmem>>, vector<1x1x32xf32>
    %189 = vector.shape_cast %188 : vector<1x1x32xf32> to vector<1x32xf32>
    %190 = vector.broadcast %189 : vector<1x32xf32> to vector<16x32xf32>
    %191 = arith.addf %187, %190 : vector<16x32xf32>
    %192 = arith.addf %191, %167 : vector<16x32xf32>
    %c0_74 = arith.constant 0 : index
    %c0_75 = arith.constant 0 : index
    %c0_76 = arith.constant 0 : index
    %193 = vector.load %arg15[%c0_74, %c0_75, %c0_76] : memref<2x1x32xf32, #tpu.memory_space<vmem>>, vector<1x1x32xf32>
    %194 = vector.shape_cast %193 : vector<1x1x32xf32> to vector<1x32xf32>
    %c0_77 = arith.constant 0 : index
    %c0_78 = arith.constant 0 : index
    %c0_79 = arith.constant 0 : index
    %195 = vector.load %arg16[%c0_77, %c0_78, %c0_79] : memref<2x1x32xf32, #tpu.memory_space<vmem>>, vector<1x1x32xf32>
    %196 = vector.shape_cast %195 : vector<1x1x32xf32> to vector<1x32xf32>
    %cst_80 = arith.constant dense<0.000000e+00> : vector<16xf32>
    %197 = vector.multi_reduction <add>, %192, %cst_80 [1] : vector<16x32xf32> to vector<16xf32>
    %198 = vector.shape_cast %197 : vector<16xf32> to vector<16x1xf32>
    %cst_81 = arith.constant 3.200000e+01 : f32
    %199 = vector.broadcast %cst_81 : f32 to vector<16x1xf32>
    %200 = arith.divf %198, %199 : vector<16x1xf32>
    %201 = vector.broadcast %200 : vector<16x1xf32> to vector<16x32xf32>
    %202 = arith.subf %192, %201 : vector<16x32xf32>
    %203 = arith.mulf %202, %202 : vector<16x32xf32>
    %cst_82 = arith.constant dense<0.000000e+00> : vector<16xf32>
    %204 = vector.multi_reduction <add>, %203, %cst_82 [1] : vector<16x32xf32> to vector<16xf32>
    %205 = vector.shape_cast %204 : vector<16xf32> to vector<16x1xf32>
    %cst_83 = arith.constant 3.200000e+01 : f32
    %206 = vector.broadcast %cst_83 : f32 to vector<16x1xf32>
    %207 = arith.divf %205, %206 : vector<16x1xf32>
    %208 = vector.broadcast %200 : vector<16x1xf32> to vector<16x32xf32>
    %209 = arith.subf %192, %208 : vector<16x32xf32>
    %cst_84 = arith.constant 9.99999996E-13 : f32
    %210 = vector.broadcast %cst_84 : f32 to vector<16x1xf32>
    %211 = arith.addf %207, %210 : vector<16x1xf32>
    %212 = math.rsqrt %211 : vector<16x1xf32>
    %213 = vector.broadcast %212 : vector<16x1xf32> to vector<16x32xf32>
    %214 = arith.mulf %209, %213 : vector<16x32xf32>
    %215 = vector.broadcast %194 : vector<1x32xf32> to vector<16x32xf32>
    %216 = arith.mulf %214, %215 : vector<16x32xf32>
    %217 = vector.broadcast %196 : vector<1x32xf32> to vector<16x32xf32>
    %218 = arith.addf %216, %217 : vector<16x32xf32>
    %c1 = arith.constant 1 : index
    %c0_85 = arith.constant 0 : index
    %c0_86 = arith.constant 0 : index
    %219 = vector.load %arg5[%c1, %c0_85, %c0_86] : memref<2x32x96xbf16, #tpu.memory_space<vmem>>, vector<1x32x96xbf16>
    %220 = vector.shape_cast %219 : vector<1x32x96xbf16> to vector<32x96xbf16>
    %221 = arith.truncf %218 : vector<16x32xf32> to vector<16x32xbf16>
    %cst_87 = arith.constant dense<0.000000e+00> : vector<16x96xf32>
    %222 = tpu.matmul %221, %220, %cst_87 {dimension_numbers = #tpu.dot_dimension_numbers<[1], [0], [0], [1], [0, 0, 1, 1], [], []>} : vector<16x32xbf16>, vector<32x96xbf16>, vector<16x96xf32> -> vector<16x96xf32>
    %c1_88 = arith.constant 1 : index
    %c0_89 = arith.constant 0 : index
    %c0_90 = arith.constant 0 : index
    %223 = vector.load %arg6[%c1_88, %c0_89, %c0_90] : memref<2x1x96xf32, #tpu.memory_space<vmem>>, vector<1x1x96xf32>
    %224 = vector.shape_cast %223 : vector<1x1x96xf32> to vector<1x96xf32>
    %225 = vector.broadcast %224 : vector<1x96xf32> to vector<16x96xf32>
    %226 = arith.addf %222, %225 : vector<16x96xf32>
    %227 = vector.extract_strided_slice %25 {offsets = [0, 0, 0], sizes = [1, 1, 8], strides = [1, 1, 1]} : vector<2x1x8xf32> to vector<1x1x8xf32>
    %228 = vector.shape_cast %227 : vector<1x1x8xf32> to vector<1x8xf32>
    %229 = vector.extract_strided_slice %226 {offsets = [0, 0], sizes = [8, 16], strides = [1, 1]} : vector<16x96xf32> to vector<8x16xf32>
    %230 = vector.extract_strided_slice %226 {offsets = [0, 32], sizes = [8, 16], strides = [1, 1]} : vector<16x96xf32> to vector<8x16xf32>
    %231 = vector.extract_strided_slice %226 {offsets = [0, 64], sizes = [8, 16], strides = [1, 1]} : vector<16x96xf32> to vector<8x16xf32>
    %232 = arith.truncf %229 : vector<8x16xf32> to vector<8x16xbf16>
    %233 = arith.truncf %230 : vector<8x16xf32> to vector<8x16xbf16>
    %234 = tpu.transpose %233, [1, 0] : vector<8x16xbf16> -> vector<16x8xbf16>
    %cst_91 = arith.constant dense<0.000000e+00> : vector<8x8xf32>
    %235 = tpu.matmul %232, %234, %cst_91 {dimension_numbers = #tpu.dot_dimension_numbers<[1], [0], [0], [1], [0, 0, 1, 1], [], []>} : vector<8x16xbf16>, vector<16x8xbf16>, vector<8x8xf32> -> vector<8x8xf32>
    %cst_92 = arith.constant 2.500000e-01 : f32
    %236 = vector.broadcast %cst_92 : f32 to vector<8x8xf32>
    %237 = arith.mulf %235, %236 : vector<8x8xf32>
    %238 = vector.broadcast %228 : vector<1x8xf32> to vector<8x8xf32>
    %239 = arith.addf %237, %238 : vector<8x8xf32>
    %cst_93 = arith.constant dense<0xFF800000> : vector<8xf32>
    %240 = vector.multi_reduction <maximumf>, %239, %cst_93 [1] : vector<8x8xf32> to vector<8xf32>
    %241 = vector.shape_cast %240 : vector<8xf32> to vector<8x1xf32>
    %242 = vector.broadcast %241 : vector<8x1xf32> to vector<8x8xf32>
    %243 = arith.subf %239, %242 : vector<8x8xf32>
    %244 = math.exp %243 : vector<8x8xf32>
    %cst_94 = arith.constant dense<0.000000e+00> : vector<8xf32>
    %245 = vector.multi_reduction <add>, %244, %cst_94 [1] : vector<8x8xf32> to vector<8xf32>
    %246 = vector.shape_cast %245 : vector<8xf32> to vector<8x1xf32>
    %247 = vector.broadcast %246 : vector<8x1xf32> to vector<8x8xf32>
    %248 = arith.divf %244, %247 : vector<8x8xf32>
    %249 = arith.truncf %248 : vector<8x8xf32> to vector<8x8xbf16>
    %250 = arith.truncf %231 : vector<8x16xf32> to vector<8x16xbf16>
    %cst_95 = arith.constant dense<0.000000e+00> : vector<8x16xf32>
    %251 = tpu.matmul %249, %250, %cst_95 {dimension_numbers = #tpu.dot_dimension_numbers<[1], [0], [0], [1], [0, 0, 1, 1], [], []>} : vector<8x8xbf16>, vector<8x16xbf16>, vector<8x16xf32> -> vector<8x16xf32>
    %252 = vector.extract_strided_slice %226 {offsets = [0, 16], sizes = [8, 16], strides = [1, 1]} : vector<16x96xf32> to vector<8x16xf32>
    %253 = vector.extract_strided_slice %226 {offsets = [0, 48], sizes = [8, 16], strides = [1, 1]} : vector<16x96xf32> to vector<8x16xf32>
    %254 = vector.extract_strided_slice %226 {offsets = [0, 80], sizes = [8, 16], strides = [1, 1]} : vector<16x96xf32> to vector<8x16xf32>
    %255 = arith.truncf %252 : vector<8x16xf32> to vector<8x16xbf16>
    %256 = arith.truncf %253 : vector<8x16xf32> to vector<8x16xbf16>
    %257 = tpu.transpose %256, [1, 0] : vector<8x16xbf16> -> vector<16x8xbf16>
    %cst_96 = arith.constant dense<0.000000e+00> : vector<8x8xf32>
    %258 = tpu.matmul %255, %257, %cst_96 {dimension_numbers = #tpu.dot_dimension_numbers<[1], [0], [0], [1], [0, 0, 1, 1], [], []>} : vector<8x16xbf16>, vector<16x8xbf16>, vector<8x8xf32> -> vector<8x8xf32>
    %cst_97 = arith.constant 2.500000e-01 : f32
    %259 = vector.broadcast %cst_97 : f32 to vector<8x8xf32>
    %260 = arith.mulf %258, %259 : vector<8x8xf32>
    %261 = vector.broadcast %228 : vector<1x8xf32> to vector<8x8xf32>
    %262 = arith.addf %260, %261 : vector<8x8xf32>
    %cst_98 = arith.constant dense<0xFF800000> : vector<8xf32>
    %263 = vector.multi_reduction <maximumf>, %262, %cst_98 [1] : vector<8x8xf32> to vector<8xf32>
    %264 = vector.shape_cast %263 : vector<8xf32> to vector<8x1xf32>
    %265 = vector.broadcast %264 : vector<8x1xf32> to vector<8x8xf32>
    %266 = arith.subf %262, %265 : vector<8x8xf32>
    %267 = math.exp %266 : vector<8x8xf32>
    %cst_99 = arith.constant dense<0.000000e+00> : vector<8xf32>
    %268 = vector.multi_reduction <add>, %267, %cst_99 [1] : vector<8x8xf32> to vector<8xf32>
    %269 = vector.shape_cast %268 : vector<8xf32> to vector<8x1xf32>
    %270 = vector.broadcast %269 : vector<8x1xf32> to vector<8x8xf32>
    %271 = arith.divf %267, %270 : vector<8x8xf32>
    %272 = arith.truncf %271 : vector<8x8xf32> to vector<8x8xbf16>
    %273 = arith.truncf %254 : vector<8x16xf32> to vector<8x16xbf16>
    %cst_100 = arith.constant dense<0.000000e+00> : vector<8x16xf32>
    %274 = tpu.matmul %272, %273, %cst_100 {dimension_numbers = #tpu.dot_dimension_numbers<[1], [0], [0], [1], [0, 0, 1, 1], [], []>} : vector<8x8xbf16>, vector<8x16xbf16>, vector<8x16xf32> -> vector<8x16xf32>
    %275 = tpu.concatenate %251, %274 in 1 : vector<8x16xf32>, vector<8x16xf32> -> vector<8x32xf32>
    %276 = vector.extract_strided_slice %25 {offsets = [1, 0, 0], sizes = [1, 1, 8], strides = [1, 1, 1]} : vector<2x1x8xf32> to vector<1x1x8xf32>
    %277 = vector.shape_cast %276 : vector<1x1x8xf32> to vector<1x8xf32>
    %278 = vector.extract_strided_slice %226 {offsets = [8, 0], sizes = [8, 16], strides = [1, 1]} : vector<16x96xf32> to vector<8x16xf32>
    %279 = vector.extract_strided_slice %226 {offsets = [8, 32], sizes = [8, 16], strides = [1, 1]} : vector<16x96xf32> to vector<8x16xf32>
    %280 = vector.extract_strided_slice %226 {offsets = [8, 64], sizes = [8, 16], strides = [1, 1]} : vector<16x96xf32> to vector<8x16xf32>
    %281 = arith.truncf %278 : vector<8x16xf32> to vector<8x16xbf16>
    %282 = arith.truncf %279 : vector<8x16xf32> to vector<8x16xbf16>
    %283 = tpu.transpose %282, [1, 0] : vector<8x16xbf16> -> vector<16x8xbf16>
    %cst_101 = arith.constant dense<0.000000e+00> : vector<8x8xf32>
    %284 = tpu.matmul %281, %283, %cst_101 {dimension_numbers = #tpu.dot_dimension_numbers<[1], [0], [0], [1], [0, 0, 1, 1], [], []>} : vector<8x16xbf16>, vector<16x8xbf16>, vector<8x8xf32> -> vector<8x8xf32>
    %cst_102 = arith.constant 2.500000e-01 : f32
    %285 = vector.broadcast %cst_102 : f32 to vector<8x8xf32>
    %286 = arith.mulf %284, %285 : vector<8x8xf32>
    %287 = vector.broadcast %277 : vector<1x8xf32> to vector<8x8xf32>
    %288 = arith.addf %286, %287 : vector<8x8xf32>
    %cst_103 = arith.constant dense<0xFF800000> : vector<8xf32>
    %289 = vector.multi_reduction <maximumf>, %288, %cst_103 [1] : vector<8x8xf32> to vector<8xf32>
    %290 = vector.shape_cast %289 : vector<8xf32> to vector<8x1xf32>
    %291 = vector.broadcast %290 : vector<8x1xf32> to vector<8x8xf32>
    %292 = arith.subf %288, %291 : vector<8x8xf32>
    %293 = math.exp %292 : vector<8x8xf32>
    %cst_104 = arith.constant dense<0.000000e+00> : vector<8xf32>
    %294 = vector.multi_reduction <add>, %293, %cst_104 [1] : vector<8x8xf32> to vector<8xf32>
    %295 = vector.shape_cast %294 : vector<8xf32> to vector<8x1xf32>
    %296 = vector.broadcast %295 : vector<8x1xf32> to vector<8x8xf32>
    %297 = arith.divf %293, %296 : vector<8x8xf32>
    %298 = arith.truncf %297 : vector<8x8xf32> to vector<8x8xbf16>
    %299 = arith.truncf %280 : vector<8x16xf32> to vector<8x16xbf16>
    %cst_105 = arith.constant dense<0.000000e+00> : vector<8x16xf32>
    %300 = tpu.matmul %298, %299, %cst_105 {dimension_numbers = #tpu.dot_dimension_numbers<[1], [0], [0], [1], [0, 0, 1, 1], [], []>} : vector<8x8xbf16>, vector<8x16xbf16>, vector<8x16xf32> -> vector<8x16xf32>
    %301 = vector.extract_strided_slice %226 {offsets = [8, 16], sizes = [8, 16], strides = [1, 1]} : vector<16x96xf32> to vector<8x16xf32>
    %302 = vector.extract_strided_slice %226 {offsets = [8, 48], sizes = [8, 16], strides = [1, 1]} : vector<16x96xf32> to vector<8x16xf32>
    %303 = vector.extract_strided_slice %226 {offsets = [8, 80], sizes = [8, 16], strides = [1, 1]} : vector<16x96xf32> to vector<8x16xf32>
    %304 = arith.truncf %301 : vector<8x16xf32> to vector<8x16xbf16>
    %305 = arith.truncf %302 : vector<8x16xf32> to vector<8x16xbf16>
    %306 = tpu.transpose %305, [1, 0] : vector<8x16xbf16> -> vector<16x8xbf16>
    %cst_106 = arith.constant dense<0.000000e+00> : vector<8x8xf32>
    %307 = tpu.matmul %304, %306, %cst_106 {dimension_numbers = #tpu.dot_dimension_numbers<[1], [0], [0], [1], [0, 0, 1, 1], [], []>} : vector<8x16xbf16>, vector<16x8xbf16>, vector<8x8xf32> -> vector<8x8xf32>
    %cst_107 = arith.constant 2.500000e-01 : f32
    %308 = vector.broadcast %cst_107 : f32 to vector<8x8xf32>
    %309 = arith.mulf %307, %308 : vector<8x8xf32>
    %310 = vector.broadcast %277 : vector<1x8xf32> to vector<8x8xf32>
    %311 = arith.addf %309, %310 : vector<8x8xf32>
    %cst_108 = arith.constant dense<0xFF800000> : vector<8xf32>
    %312 = vector.multi_reduction <maximumf>, %311, %cst_108 [1] : vector<8x8xf32> to vector<8xf32>
    %313 = vector.shape_cast %312 : vector<8xf32> to vector<8x1xf32>
    %314 = vector.broadcast %313 : vector<8x1xf32> to vector<8x8xf32>
    %315 = arith.subf %311, %314 : vector<8x8xf32>
    %316 = math.exp %315 : vector<8x8xf32>
    %cst_109 = arith.constant dense<0.000000e+00> : vector<8xf32>
    %317 = vector.multi_reduction <add>, %316, %cst_109 [1] : vector<8x8xf32> to vector<8xf32>
    %318 = vector.shape_cast %317 : vector<8xf32> to vector<8x1xf32>
    %319 = vector.broadcast %318 : vector<8x1xf32> to vector<8x8xf32>
    %320 = arith.divf %316, %319 : vector<8x8xf32>
    %321 = arith.truncf %320 : vector<8x8xf32> to vector<8x8xbf16>
    %322 = arith.truncf %303 : vector<8x16xf32> to vector<8x16xbf16>
    %cst_110 = arith.constant dense<0.000000e+00> : vector<8x16xf32>
    %323 = tpu.matmul %321, %322, %cst_110 {dimension_numbers = #tpu.dot_dimension_numbers<[1], [0], [0], [1], [0, 0, 1, 1], [], []>} : vector<8x8xbf16>, vector<8x16xbf16>, vector<8x16xf32> -> vector<8x16xf32>
    %324 = tpu.concatenate %300, %323 in 1 : vector<8x16xf32>, vector<8x16xf32> -> vector<8x32xf32>
    %325 = tpu.concatenate %275, %324 in 0 : vector<8x32xf32>, vector<8x32xf32> -> vector<16x32xf32>
    %c1_111 = arith.constant 1 : index
    %c0_112 = arith.constant 0 : index
    %c0_113 = arith.constant 0 : index
    %326 = vector.load %arg7[%c1_111, %c0_112, %c0_113] : memref<2x32x32xbf16, #tpu.memory_space<vmem>>, vector<1x32x32xbf16>
    %327 = vector.shape_cast %326 : vector<1x32x32xbf16> to vector<32x32xbf16>
    %328 = arith.truncf %325 : vector<16x32xf32> to vector<16x32xbf16>
    %cst_114 = arith.constant dense<0.000000e+00> : vector<16x32xf32>
    %329 = tpu.matmul %328, %327, %cst_114 {dimension_numbers = #tpu.dot_dimension_numbers<[1], [0], [0], [1], [0, 0, 1, 1], [], []>} : vector<16x32xbf16>, vector<32x32xbf16>, vector<16x32xf32> -> vector<16x32xf32>
    %c1_115 = arith.constant 1 : index
    %c0_116 = arith.constant 0 : index
    %c0_117 = arith.constant 0 : index
    %330 = vector.load %arg8[%c1_115, %c0_116, %c0_117] : memref<2x1x32xf32, #tpu.memory_space<vmem>>, vector<1x1x32xf32>
    %331 = vector.shape_cast %330 : vector<1x1x32xf32> to vector<1x32xf32>
    %332 = vector.broadcast %331 : vector<1x32xf32> to vector<16x32xf32>
    %333 = arith.addf %329, %332 : vector<16x32xf32>
    %334 = arith.addf %333, %218 : vector<16x32xf32>
    %c1_118 = arith.constant 1 : index
    %c0_119 = arith.constant 0 : index
    %c0_120 = arith.constant 0 : index
    %335 = vector.load %arg9[%c1_118, %c0_119, %c0_120] : memref<2x1x32xf32, #tpu.memory_space<vmem>>, vector<1x1x32xf32>
    %336 = vector.shape_cast %335 : vector<1x1x32xf32> to vector<1x32xf32>
    %c1_121 = arith.constant 1 : index
    %c0_122 = arith.constant 0 : index
    %c0_123 = arith.constant 0 : index
    %337 = vector.load %arg10[%c1_121, %c0_122, %c0_123] : memref<2x1x32xf32, #tpu.memory_space<vmem>>, vector<1x1x32xf32>
    %338 = vector.shape_cast %337 : vector<1x1x32xf32> to vector<1x32xf32>
    %cst_124 = arith.constant dense<0.000000e+00> : vector<16xf32>
    %339 = vector.multi_reduction <add>, %334, %cst_124 [1] : vector<16x32xf32> to vector<16xf32>
    %340 = vector.shape_cast %339 : vector<16xf32> to vector<16x1xf32>
    %cst_125 = arith.constant 3.200000e+01 : f32
    %341 = vector.broadcast %cst_125 : f32 to vector<16x1xf32>
    %342 = arith.divf %340, %341 : vector<16x1xf32>
    %343 = vector.broadcast %342 : vector<16x1xf32> to vector<16x32xf32>
    %344 = arith.subf %334, %343 : vector<16x32xf32>
    %345 = arith.mulf %344, %344 : vector<16x32xf32>
    %cst_126 = arith.constant dense<0.000000e+00> : vector<16xf32>
    %346 = vector.multi_reduction <add>, %345, %cst_126 [1] : vector<16x32xf32> to vector<16xf32>
    %347 = vector.shape_cast %346 : vector<16xf32> to vector<16x1xf32>
    %cst_127 = arith.constant 3.200000e+01 : f32
    %348 = vector.broadcast %cst_127 : f32 to vector<16x1xf32>
    %349 = arith.divf %347, %348 : vector<16x1xf32>
    %350 = vector.broadcast %342 : vector<16x1xf32> to vector<16x32xf32>
    %351 = arith.subf %334, %350 : vector<16x32xf32>
    %cst_128 = arith.constant 9.99999996E-13 : f32
    %352 = vector.broadcast %cst_128 : f32 to vector<16x1xf32>
    %353 = arith.addf %349, %352 : vector<16x1xf32>
    %354 = math.rsqrt %353 : vector<16x1xf32>
    %355 = vector.broadcast %354 : vector<16x1xf32> to vector<16x32xf32>
    %356 = arith.mulf %351, %355 : vector<16x32xf32>
    %357 = vector.broadcast %336 : vector<1x32xf32> to vector<16x32xf32>
    %358 = arith.mulf %356, %357 : vector<16x32xf32>
    %359 = vector.broadcast %338 : vector<1x32xf32> to vector<16x32xf32>
    %360 = arith.addf %358, %359 : vector<16x32xf32>
    %c1_129 = arith.constant 1 : index
    %c0_130 = arith.constant 0 : index
    %c0_131 = arith.constant 0 : index
    %361 = vector.load %arg11[%c1_129, %c0_130, %c0_131] : memref<2x32x64xbf16, #tpu.memory_space<vmem>>, vector<1x32x64xbf16>
    %362 = vector.shape_cast %361 : vector<1x32x64xbf16> to vector<32x64xbf16>
    %363 = arith.truncf %360 : vector<16x32xf32> to vector<16x32xbf16>
    %cst_132 = arith.constant dense<0.000000e+00> : vector<16x64xf32>
    %364 = tpu.matmul %363, %362, %cst_132 {dimension_numbers = #tpu.dot_dimension_numbers<[1], [0], [0], [1], [0, 0, 1, 1], [], []>} : vector<16x32xbf16>, vector<32x64xbf16>, vector<16x64xf32> -> vector<16x64xf32>
    %c1_133 = arith.constant 1 : index
    %c0_134 = arith.constant 0 : index
    %c0_135 = arith.constant 0 : index
    %365 = vector.load %arg12[%c1_133, %c0_134, %c0_135] : memref<2x1x64xf32, #tpu.memory_space<vmem>>, vector<1x1x64xf32>
    %366 = vector.shape_cast %365 : vector<1x1x64xf32> to vector<1x64xf32>
    %367 = vector.broadcast %366 : vector<1x64xf32> to vector<16x64xf32>
    %368 = arith.addf %364, %367 : vector<16x64xf32>
    %cst_136 = arith.constant 5.000000e-01 : f32
    %369 = vector.broadcast %cst_136 : f32 to vector<16x64xf32>
    %370 = arith.mulf %369, %368 : vector<16x64xf32>
    %cst_137 = arith.constant 0.707106769 : f32
    %371 = vector.broadcast %cst_137 : f32 to vector<16x64xf32>
    %372 = arith.mulf %368, %371 : vector<16x64xf32>
    %373 = math.erf %372 : vector<16x64xf32>
    %cst_138 = arith.constant 1.000000e+00 : f32
    %374 = vector.broadcast %cst_138 : f32 to vector<16x64xf32>
    %375 = arith.addf %374, %373 : vector<16x64xf32>
    %376 = arith.mulf %370, %375 : vector<16x64xf32>
    %c1_139 = arith.constant 1 : index
    %c0_140 = arith.constant 0 : index
    %c0_141 = arith.constant 0 : index
    %377 = vector.load %arg13[%c1_139, %c0_140, %c0_141] : memref<2x64x32xbf16, #tpu.memory_space<vmem>>, vector<1x64x32xbf16>
    %378 = vector.shape_cast %377 : vector<1x64x32xbf16> to vector<64x32xbf16>
    %379 = arith.truncf %376 : vector<16x64xf32> to vector<16x64xbf16>
    %cst_142 = arith.constant dense<0.000000e+00> : vector<16x32xf32>
    %380 = tpu.matmul %379, %378, %cst_142 {dimension_numbers = #tpu.dot_dimension_numbers<[1], [0], [0], [1], [0, 0, 1, 1], [], []>} : vector<16x64xbf16>, vector<64x32xbf16>, vector<16x32xf32> -> vector<16x32xf32>
    %c1_143 = arith.constant 1 : index
    %c0_144 = arith.constant 0 : index
    %c0_145 = arith.constant 0 : index
    %381 = vector.load %arg14[%c1_143, %c0_144, %c0_145] : memref<2x1x32xf32, #tpu.memory_space<vmem>>, vector<1x1x32xf32>
    %382 = vector.shape_cast %381 : vector<1x1x32xf32> to vector<1x32xf32>
    %383 = vector.broadcast %382 : vector<1x32xf32> to vector<16x32xf32>
    %384 = arith.addf %380, %383 : vector<16x32xf32>
    %385 = arith.addf %384, %360 : vector<16x32xf32>
    %c1_146 = arith.constant 1 : index
    %c0_147 = arith.constant 0 : index
    %c0_148 = arith.constant 0 : index
    %386 = vector.load %arg15[%c1_146, %c0_147, %c0_148] : memref<2x1x32xf32, #tpu.memory_space<vmem>>, vector<1x1x32xf32>
    %387 = vector.shape_cast %386 : vector<1x1x32xf32> to vector<1x32xf32>
    %c1_149 = arith.constant 1 : index
    %c0_150 = arith.constant 0 : index
    %c0_151 = arith.constant 0 : index
    %388 = vector.load %arg16[%c1_149, %c0_150, %c0_151] : memref<2x1x32xf32, #tpu.memory_space<vmem>>, vector<1x1x32xf32>
    %389 = vector.shape_cast %388 : vector<1x1x32xf32> to vector<1x32xf32>
    %cst_152 = arith.constant dense<0.000000e+00> : vector<16xf32>
    %390 = vector.multi_reduction <add>, %385, %cst_152 [1] : vector<16x32xf32> to vector<16xf32>
    %391 = vector.shape_cast %390 : vector<16xf32> to vector<16x1xf32>
    %cst_153 = arith.constant 3.200000e+01 : f32
    %392 = vector.broadcast %cst_153 : f32 to vector<16x1xf32>
    %393 = arith.divf %391, %392 : vector<16x1xf32>
    %394 = vector.broadcast %393 : vector<16x1xf32> to vector<16x32xf32>
    %395 = arith.subf %385, %394 : vector<16x32xf32>
    %396 = arith.mulf %395, %395 : vector<16x32xf32>
    %cst_154 = arith.constant dense<0.000000e+00> : vector<16xf32>
    %397 = vector.multi_reduction <add>, %396, %cst_154 [1] : vector<16x32xf32> to vector<16xf32>
    %398 = vector.shape_cast %397 : vector<16xf32> to vector<16x1xf32>
    %cst_155 = arith.constant 3.200000e+01 : f32
    %399 = vector.broadcast %cst_155 : f32 to vector<16x1xf32>
    %400 = arith.divf %398, %399 : vector<16x1xf32>
    %401 = vector.broadcast %393 : vector<16x1xf32> to vector<16x32xf32>
    %402 = arith.subf %385, %401 : vector<16x32xf32>
    %cst_156 = arith.constant 9.99999996E-13 : f32
    %403 = vector.broadcast %cst_156 : f32 to vector<16x1xf32>
    %404 = arith.addf %400, %403 : vector<16x1xf32>
    %405 = math.rsqrt %404 : vector<16x1xf32>
    %406 = vector.broadcast %405 : vector<16x1xf32> to vector<16x32xf32>
    %407 = arith.mulf %402, %406 : vector<16x32xf32>
    %408 = vector.broadcast %387 : vector<1x32xf32> to vector<16x32xf32>
    %409 = arith.mulf %407, %408 : vector<16x32xf32>
    %410 = vector.broadcast %389 : vector<1x32xf32> to vector<16x32xf32>
    %411 = arith.addf %409, %410 : vector<16x32xf32>
    %412 = vector.extract_strided_slice %411 {offsets = [0, 0], sizes = [1, 32], strides = [1, 1]} : vector<16x32xf32> to vector<1x32xf32>
    %413 = vector.extract_strided_slice %411 {offsets = [8, 0], sizes = [1, 32], strides = [1, 1]} : vector<16x32xf32> to vector<1x32xf32>
    %414 = tpu.concatenate %412, %413 in 0 : vector<1x32xf32>, vector<1x32xf32> -> vector<2x32xf32>
    %c0_157 = arith.constant 0 : index
    %c0_158 = arith.constant 0 : index
    %415 = vector.load %arg17[%c0_157, %c0_158] : memref<32x32xbf16, #tpu.memory_space<vmem>>, vector<32x32xbf16>
    %416 = arith.truncf %414 : vector<2x32xf32> to vector<2x32xbf16>
    %cst_159 = arith.constant dense<0.000000e+00> : vector<2x32xf32>
    %417 = tpu.matmul %416, %415, %cst_159 {dimension_numbers = #tpu.dot_dimension_numbers<[1], [0], [0], [1], [0, 0, 1, 1], [], []>} : vector<2x32xbf16>, vector<32x32xbf16>, vector<2x32xf32> -> vector<2x32xf32>
    %c0_160 = arith.constant 0 : index
    %c0_161 = arith.constant 0 : index
    %418 = vector.load %arg18[%c0_160, %c0_161] : memref<1x32xf32, #tpu.memory_space<vmem>>, vector<1x32xf32>
    %419 = vector.broadcast %418 : vector<1x32xf32> to vector<2x32xf32>
    %420 = arith.addf %417, %419 : vector<2x32xf32>
    %421 = math.tanh %420 : vector<2x32xf32>
    %422 = vector.shape_cast %414 : vector<2x32xf32> to vector<1x2x32xf32>
    %c0_162 = arith.constant 0 : index
    %c0_163 = arith.constant 0 : index
    %c0_164 = arith.constant 0 : index
    %423 = vector.load %arg19[%c0_162, %c0_163, %c0_164] : memref<1x2x32xf32, #tpu.memory_space<vmem>>, vector<1x2x32xf32>
    tpu.vector_store %arg19[%c0_162, %c0_163, %c0_164], %422 {strides = array<i32>} : memref<1x2x32xf32, #tpu.memory_space<vmem>>, vector<1x2x32xf32>,
    %424 = vector.shape_cast %421 : vector<2x32xf32> to vector<1x2x32xf32>
    %c0_165 = arith.constant 0 : index
    %c0_166 = arith.constant 0 : index
    %c0_167 = arith.constant 0 : index
    %425 = vector.load %arg20[%c0_165, %c0_166, %c0_167] : memref<1x2x32xf32, #tpu.memory_space<vmem>>, vector<1x2x32xf32>
    tpu.vector_store %arg20[%c0_165, %c0_166, %c0_167], %424 {strides = array<i32>} : memref<1x2x32xf32, #tpu.memory_space<vmem>>, vector<1x2x32xf32>,
    return
  }
  func.func @transform_0(%arg0: i32) -> (i32, i32) {
    %c0_i32 = arith.constant 0 : i32
    %c0_i32_0 = arith.constant 0 : i32
    return %arg0, %c0_i32 : i32, i32
  }
  func.func @transform_1(%arg0: i32) -> (i32, i32, i32) {
    %c0_i32 = arith.constant 0 : i32
    %c0_i32_0 = arith.constant 0 : i32
    %c0_i32_1 = arith.constant 0 : i32
    return %arg0, %c0_i32, %c0_i32_0 : i32, i32, i32
  }
  func.func @transform_2(%arg0: i32) -> (i32, i32) {
    %c0_i32 = arith.constant 0 : i32
    %c0_i32_0 = arith.constant 0 : i32
    %c0_i32_1 = arith.constant 0 : i32
    return %c0_i32, %c0_i32_0 : i32, i32
  }
  func.func @transform_3(%arg0: i32) -> (i32, i32) {
    %c0_i32 = arith.constant 0 : i32
    %c0_i32_0 = arith.constant 0 : i32
    %c0_i32_1 = arith.constant 0 : i32
    return %c0_i32, %c0_i32_0 : i32, i32
  }
  func.func @transform_4(%arg0: i32) -> (i32, i32, i32) {
    %c0_i32 = arith.constant 0 : i32
    %c0_i32_0 = arith.constant 0 : i32
    %c0_i32_1 = arith.constant 0 : i32
    %c0_i32_2 = arith.constant 0 : i32
    return %c0_i32, %c0_i32_0, %c0_i32_1 : i32, i32, i32
  }
  func.func @transform_5(%arg0: i32) -> (i32, i32, i32) {
    %c0_i32 = arith.constant 0 : i32
    %c0_i32_0 = arith.constant 0 : i32
    %c0_i32_1 = arith.constant 0 : i32
    %c0_i32_2 = arith.constant 0 : i32
    return %c0_i32, %c0_i32_0, %c0_i32_1 : i32, i32, i32
  }
  func.func @transform_6(%arg0: i32) -> (i32, i32, i32) {
    %c0_i32 = arith.constant 0 : i32
    %c0_i32_0 = arith.constant 0 : i32
    %c0_i32_1 = arith.constant 0 : i32
    %c0_i32_2 = arith.constant 0 : i32
    return %c0_i32, %c0_i32_0, %c0_i32_1 : i32, i32, i32
  }
  func.func @transform_7(%arg0: i32) -> (i32, i32, i32) {
    %c0_i32 = arith.constant 0 : i32
    %c0_i32_0 = arith.constant 0 : i32
    %c0_i32_1 = arith.constant 0 : i32
    %c0_i32_2 = arith.constant 0 : i32
    return %c0_i32, %c0_i32_0, %c0_i32_1 : i32, i32, i32
  }
  func.func @transform_8(%arg0: i32) -> (i32, i32, i32) {
    %c0_i32 = arith.constant 0 : i32
    %c0_i32_0 = arith.constant 0 : i32
    %c0_i32_1 = arith.constant 0 : i32
    %c0_i32_2 = arith.constant 0 : i32
    return %c0_i32, %c0_i32_0, %c0_i32_1 : i32, i32, i32
  }
  func.func @transform_9(%arg0: i32) -> (i32, i32, i32) {
    %c0_i32 = arith.constant 0 : i32
    %c0_i32_0 = arith.constant 0 : i32
    %c0_i32_1 = arith.constant 0 : i32
    %c0_i32_2 = arith.constant 0 : i32
    return %c0_i32, %c0_i32_0, %c0_i32_1 : i32, i32, i32
  }
  func.func @transform_10(%arg0: i32) -> (i32, i32, i32) {
    %c0_i32 = arith.constant 0 : i32
    %c0_i32_0 = arith.constant 0 : i32
    %c0_i32_1 = arith.constant 0 : i32
    %c0_i32_2 = arith.constant 0 : i32
    return %c0_i32, %c0_i32_0, %c0_i32_1 : i32, i32, i32
  }
  func.func @transform_11(%arg0: i32) -> (i32, i32, i32) {
    %c0_i32 = arith.constant 0 : i32
    %c0_i32_0 = arith.constant 0 : i32
    %c0_i32_1 = arith.constant 0 : i32
    %c0_i32_2 = arith.constant 0 : i32
    return %c0_i32, %c0_i32_0, %c0_i32_1 : i32, i32, i32
  }
  func.func @transform_12(%arg0: i32) -> (i32, i32, i32) {
    %c0_i32 = arith.constant 0 : i32
    %c0_i32_0 = arith.constant 0 : i32
    %c0_i32_1 = arith.constant 0 : i32
    %c0_i32_2 = arith.constant 0 : i32
    return %c0_i32, %c0_i32_0, %c0_i32_1 : i32, i32, i32
  }
  func.func @transform_13(%arg0: i32) -> (i32, i32, i32) {
    %c0_i32 = arith.constant 0 : i32
    %c0_i32_0 = arith.constant 0 : i32
    %c0_i32_1 = arith.constant 0 : i32
    %c0_i32_2 = arith.constant 0 : i32
    return %c0_i32, %c0_i32_0, %c0_i32_1 : i32, i32, i32
  }
  func.func @transform_14(%arg0: i32) -> (i32, i32, i32) {
    %c0_i32 = arith.constant 0 : i32
    %c0_i32_0 = arith.constant 0 : i32
    %c0_i32_1 = arith.constant 0 : i32
    %c0_i32_2 = arith.constant 0 : i32
    return %c0_i32, %c0_i32_0, %c0_i32_1 : i32, i32, i32
  }
  func.func @transform_15(%arg0: i32) -> (i32, i32, i32) {
    %c0_i32 = arith.constant 0 : i32
    %c0_i32_0 = arith.constant 0 : i32
    %c0_i32_1 = arith.constant 0 : i32
    %c0_i32_2 = arith.constant 0 : i32
    return %c0_i32, %c0_i32_0, %c0_i32_1 : i32, i32, i32
  }
  func.func @transform_16(%arg0: i32) -> (i32, i32) {
    %c0_i32 = arith.constant 0 : i32
    %c0_i32_0 = arith.constant 0 : i32
    %c0_i32_1 = arith.constant 0 : i32
    return %c0_i32, %c0_i32_0 : i32, i32
  }
  func.func @transform_17(%arg0: i32) -> (i32, i32) {
    %c0_i32 = arith.constant 0 : i32
    %c0_i32_0 = arith.constant 0 : i32
    %c0_i32_1 = arith.constant 0 : i32
    return %c0_i32, %c0_i32_0 : i32, i32
  }
  func.func @transform_18(%arg0: i32) -> (i32, i32, i32) {
    %c0_i32 = arith.constant 0 : i32
    %c0_i32_0 = arith.constant 0 : i32
    %c0_i32_1 = arith.constant 0 : i32
    return %arg0, %c0_i32, %c0_i32_0 : i32, i32, i32
  }
  func.func @transform_19(%arg0: i32) -> (i32, i32, i32) {
    %c0_i32 = arith.constant 0 : i32
    %c0_i32_0 = arith.constant 0 : i32
    %c0_i32_1 = arith.constant 0 : i32
    return %arg0, %c0_i32, %c0_i32_0 : i32, i32, i32
  }
}

</mosaic_0001>

<bundles_post_ra>
// kernel: cus_arg_model_forward.5
= control target key start
LH: loop header
LB: loop body
LE: loop exit
PB: predicated region body
PF: predicated region fallthrough
CT: control target
= control target key end

     0   :  { %v321_v1 = vmov 0.0   ;;  %vm322_vm0 = vmmov 0   ;;  %s407_s0 = inlined_call_operand.vmem [shape: f32[2,32], index: 0, kind: input, shape index: {}]   ;;  %s408_s1 = inlined_call_operand.vmem [shape: f32[2,32], index: 1, kind: input, shape index: {}]   ;;  %s409_s2 = inlined_call_operand.vmem [shape: f32[2,32], index: 2, kind: input, shape index: {}]   ;;  %s410_s3 = inlined_call_operand.vmem [shape: f32[2,32], index: 3, kind: input, shape index: {}]   ;;  %s411_s4 = inlined_call_operand.vmem [shape: bf16[96,2], index: 4, kind: input, shape index: {}]   ;;  %s412_s5 = inlined_call_operand.vmem [shape: f32[1,2], index: 5, kind: input, shape index: {}]   ;;  %s413_s6 = inlined_call_operand.hbm [shape: f32[2,2], index: 6, kind: output, shape index: {}]  }
   0x1   :  { %v285_v0 = vld [vmem:[%s411_s4 + $0x10] sm:$0xff]   ;;  %258 = vmatprep.subr.bf16.mxu0 %v321_v1  ;;  %266 = vmatprep.subr.bf16.mxu1 %v321_v1  ;;  %v286_v2 = vld [vmem:[%s411_s4] sm:$0xff]   ;;  %v287_v3 = vld [vmem:[%s411_s4 + $0x18] sm:$0xff]  }
   0x2   :  { %259 = vmatpush3.bf16.msra.mxu0 %v285_v0  ;;  %262 = vmatprep.mubr.msk.bf16.mxu0 %vm322_vm0, %v321_v1  ;;  %v288_v4 = vld [vmem:[%s411_s4 + $0x8] sm:$0xff]   ;;  %v28_v5 = vld [vmem:[%s408_s1] sm:$0x3] }
   0x3   :  { %267 = vmatpush3.bf16.msra.mxu1 %v286_v2  ;;  %260 = vmatprep.subr.bf16.mxu0 %v321_v1  ;;  %v25_v6 = vld [vmem:[%s407_s0] sm:$0x3]  ;;  %291 = vtanh.f32 %v28_v5 }
   0x4   :  { %268 = vmatprep.subr.bf16.mxu1 %v321_v1  ;;  %270 = vmatprep.mubr.msk.bf16.mxu1 %vm322_vm0, %v321_v1  ;;  %293 = vtanh.f32 %v25_v6  ;;  %v31_v7 = vld [vmem:[%s409_s2] sm:$0x3] }
   0x5   :  { %v32_v8 = vld [vmem:[%s410_s3] sm:$0x3] }
   0x6   :  { %261 = vmatpush3.bf16.msra.mxu0 %v287_v3 }
   0x7   :  { %269 = vmatpush3.bf16.msra.mxu1 %v288_v4  ;;  %274 = vmatprep.subr.bf16.mxu0 %v321_v1 }
   0x8   :  { %11 = vsyncpa [#allocation3], 0  ;;  %v33_v9 = vsub.f32 %v31_v7, %v32_v8  ;;  %vm60_vm1 = vcmask 261120   ;;  %v289_v11 = vld [vmem:[%s411_s4 + $0x20] sm:$0xff]   ;;  %v290_v15 = vld [vmem:[%s411_s4 + $0x28] sm:$0xff]   ;;  %s323_s4 = smov [#allocation2]  }
   0x9   :  { %v248_v28 = vld [vmem:[%s412_s5] ss:$0 sm:$0xff]  ;;  %s231_s15 = sshll.u32 %s323_s4, 4  ;;  %vm223_vm2 = vcmask 9216   ;;  %s232_s15 = int_to_ptr.vmem [resolvable:$true] %s231_s15 }
   0xa   :  { %295 = vtanh.f32 %v33_v9  ;;  %s297_s16 = scalar_lea.vmem %s232_s15, 32  ;;  %p302_p1 = scmp.lt.s32.totalorder %s232_s15, %s232_s15 }
   0xb   :  { %p298_p0 = scmp.ne.s32.totalorder %s232_s15, %s297_s16  ;;  %p303_p2 = scmp.lt.s32.totalorder %s297_s16, %s297_s16 }
   0xd   :  { %v292_v10 = vpop.eup %291  ;;  %p304_p3 = por %p303_p2, %p302_p1 }
   0xe   :  { %v294_v12 = vpop.eup %293  ;;  %v30_v13 = vpack.c.bf16 %v292_v10, %v292_v10 }
   0xf   :  { %v27_v14 = vpack.c.bf16 %v294_v12, %v294_v12  ;;  %p305_p4 = pnand %p304_p3, %p298_p0 }
  0x10   :  { %263 = vmatmul.mubr.msk.bf16.vlgmr.msra.gmra.mrb[0].mxu0 %vm60_vm1, %v30_v13 }
  0x11   :  { %271 = vmatmul.mubr.msk.bf16.vlgmr.msra.gmra.mrb[0].mxu1 %vm60_vm1, %v27_v14  ;;  %275 = vmatpush3.bf16.msra.mxu0 %v289_v11 }
  0x12   :  { %276 = vmatprep.subr.bf16.mxu0 %v321_v1  ;;  %278 = vmatprep.mubr.msk.bf16.mxu0 %vm322_vm0, %v321_v1 }
  0x14   :  { %v296_v16 = vpop.eup %295 }
  0x15   :  { %v35_v17 = vpack.c.bf16 %v296_v16, %v296_v16  ;;  %277 = vmatpush3.bf16.msra.mxu0 %v290_v15 }
  0x18   :  { %279 = vmatmul.mubr.msk.bf16.vlgmr.msra.gmra.mrb[4].mxu0 %vm60_vm1, %v35_v17 }
  0xe3   :  { %v98_v18 = vpop.f32.mrb[0].mxu0 }
  0xe4   :  { %v153_v19 = vpop.f32.mrb[0].mxu1  ;;  %v264_v20 = vpop.f32.mrb[1].mxu0 }
  0xe5   :  { %v154_v21 = vadd.f32 %v153_v19, %v98_v18  ;;  %v101_v22 = vpop.f32.mrb[2].mxu0  ;;  %v272_v23 = vpop.f32.mrb[1].mxu1 }
  0xe6   :  { %v265_v24 = vpop.f32.mrb[3].mxu0  ;;  %v156_v25 = vpop.f32.mrb[2].mxu1 }
  0xe7   :  { %v273_v26 = vpop.f32.mrb[3].mxu1 }
  0xeb   :  { %v208_v27 = vpop.f32.mrb[4].mxu0 }
  0xec   :  { %v214_v29 = vadd.f32 %v208_v27, %v154_v21  ;;  %v280_v30 = vpop.f32.mrb[5].mxu0 }
  0xed   :  { %v211_v31 = vpop.f32.mrb[6].mxu0 }
  0xee   :  { %v222_v32 = vadd.f32 %v248_v28, %v214_v29  ;;  %v281_v33 = vpop.f32.mrb[7].mxu0 }
  0xf0   :  { %224 = vst.msk [vmem:[#allocation2] sm:$0x3] %vm223_vm2, %v222_v32 }
  0xf1   :  { %308 = shalt.err (!%p305_p4)
}
  0xf2   :  { %s309_s5 = scalar_lea.hbm %s413_s6, 32 }
  0xf3   :  { %p310_p5 = scmp.ne.s32.totalorder %s413_s6, %s309_s5  ;;  %p313_p6 = scmp.lt.u32.totalorder %s309_s5, %s413_s6 }
  0xf5   :  { %p315_p7 = pnand %p313_p6, %p310_p5 }
  0xf7   :  { %318 = shalt.err (!%p315_p7)
}
  0xf8   :  { %234 = dma.vmem_to_hbm [thread:$0]  %s232_s15, 32, %s413_s6, [#allocation3]  }
  0xf9   :  { %319 = dma.done.wait [#allocation3], 32  }
  0xfa   :  { %320 = vsyncadd [#allocation3], 4294967264 }
  0xfb   :  { %238 = vsyncpa [#allocation3], 1 }

// kernel: cus_arg_model_forward.4
= control target key start
LH: loop header
LB: loop body
LE: loop exit
PB: predicated region body
PF: predicated region fallthrough
CT: control target
= control target key end

     0   :  { %s3746_s0 = inlined_call_operand.vmem [shape: f32[32,32], index: 0, kind: input, shape index: {}]   ;;  %s3747_s1 = inlined_call_operand.vmem [shape: f32[4,1,8], index: 1, kind: input, shape index: {}]   ;;  %s3748_s2 = inlined_call_operand.vmem [shape: f32[1,32], index: 2, kind: input, shape index: {}]   ;;  %s3749_s3 = inlined_call_operand.vmem [shape: f32[1,32], index: 3, kind: input, shape index: {}]   ;;  %s3750_s4 = inlined_call_operand.vmem [shape: bf16[2,32,96], index: 4, kind: input, shape index: {}]   ;;  %s3751_s5 = inlined_call_operand.vmem [shape: f32[2,1,96], index: 5, kind: input, shape index: {}]   ;;  %s3752_s6 = inlined_call_operand.vmem [shape: bf16[2,32,32], index: 6, kind: input, shape index: {}]   ;;  %s3753_s7 = inlined_call_operand.vmem [shape: f32[2,1,32], index: 7, kind: input, shape index: {}]   ;;  %s3754_s8 = inlined_call_operand.vmem [shape: f32[2,1,32], index: 8, kind: input, shape index: {}]   ;;  %s3755_s9 = inlined_call_operand.vmem [shape: f32[2,1,32], index: 9, kind: input, shape index: {}]   ;;  %s3756_s10 = inlined_call_operand.vmem [shape: bf16[2,32,64], index: 10, kind: input, shape index: {}]   ;;  %s3757_s11 = inlined_call_operand.vmem [shape: f32[2,1,64], index: 11, kind: input, shape index: {}]   ;;  %s3758_s12 = inlined_call_operand.vmem [shape: bf16[2,64,32], index: 12, kind: input, shape index: {}]   ;;  %s3759_s13 = inlined_call_operand.vmem [shape: f32[2,1,32], index: 13, kind: input, shape index: {}]   ;;  %s3760_s14 = inlined_call_operand.vmem [shape: f32[2,1,32], index: 14, kind: input, shape index: {}]   ;;  %s3761_s15 = inlined_call_operand.vmem [shape: f32[2,1,32], index: 15, kind: input, shape index: {}]   ;;  %s3762_s16 = inlined_call_operand.vmem [shape: bf16[32,32], index: 16, kind: input, shape index: {}]   ;;  %s3763_s17 = inlined_call_operand.vmem [shape: f32[1,32], index: 17, kind: input, shape index: {}]   ;;  %s3764_s18 = inlined_call_operand.vmem [shape: f32[2,2,32], index: 18, kind: output, shape index: {0}]   ;;  %s3765_s19 = inlined_call_operand.hbm [shape: f32[2,2,32], index: 19, kind: output, shape index: {1}]  }
   0x1   :  { %3777 = sst [smem:[#allocation6_spill]] %s3746_s0 }
   0x2   :  { %3778 = sst [smem:[#allocation7_spill]] %s3747_s1 }
   0x3   :  { %3779 = sst [smem:[#allocation8_spill]] %s3748_s2 }
   0x4   :  { %3780 = sst [smem:[#allocation9_spill]] %s3749_s3 }
   0x5   :  { %3781 = sst [smem:[#allocation10_spill]] %s3750_s4 }
   0x6   :  { %3782 = sst [smem:[#allocation11_spill]] %s3751_s5 }
   0x7   :  { %3783 = sst [smem:[#allocation12_spill]] %s3752_s6 }
   0x8   :  { %25 = vsyncpa [#allocation3], 0 }
   0x9   :  { %27 = vsyncpa [#allocation3 + $0x1], 0  ;;  %s3259_s0 = smov 0   ;;  %s3261_s30 = smov 0  }
   0xa   :  { %s3263_s20 = smov 0   ;;  %s3265_s21 = smov 0  }
   0xb LB: > { %s3280_s1 = sadd.s32 4294967295, %s3148_s21   ;;  %s2597_s22 = sadd.s32 4294967294, %s3148_s21   ;;  %s3148_s21 = sphi %s3265_s21, %s3804_s21   ;;  %s3144_s20 = sphi %s3263_s20, %s3803_s20   ;;  %s3140_s30 = sphi %s3261_s30, %s3802_s30   ;;  %s3136_s0 = sphi %s3259_s0, %s3801_s0  }
   0xc   : > { %s3284_s2 = sadd.s32 1, %s3148_s21   ;;  %s454_s23 = sadd.s32 1, %s3144_s20 }
   0xd   : > { %s451_s24 = ssub.s32 %s3148_s21, %s3284_s2  ;;  %p464_p0 = scmp.ne.s32.totalorder %s3144_s20, %s3140_s30 }
   0xe   : > { %p452_p1 = scmp.eq.s32.totalorder %s451_s24, 0  ;;  %p465_p2 = scmp.eq.s32.totalorder %s3280_s1, 1 }
   0xf   : > { %p470_p3 = scmp.ne.s32.totalorder %s3140_s30, %s3136_s0  ;;  %p471_p4 = scmp.eq.s32.totalorder %s2597_s22, 1 }
  0x10   : > { %s3295_s25 = scalar_select %p452_p1, %s3144_s20, %s454_s23  }
  0x11   : > { %p3297_p5 = por %p465_p2, %p464_p0  ;;  %p3301_p6 = por %p471_p4, %p470_p3 }
  0x12   : > { %3784 = sst [smem:[#allocation5_spill]] %s3295_s25  ;;  %p2600_p7 = scmp.ge.s32.totalorder %s3148_s21, 1 }
  0x13   : > { %p554_p8 = scmp.lt.s32.totalorder %s3148_s21, 3 }
  0x15   : > { %p555_p9 = pnand %p2600_p7, %p554_p8 }
  0x16   : > { %s2602_s27 = sshll.u32 (!%p555_p9), %s3280_s1, 1  ;;  %vm638_vm0 = vcmask (!%p555_p9), 261120   ;;  %s3787_s23 = sld [smem:[#allocation6_spill]] (!%p555_p9)  ;;  %v3150_v15 = vmov (!%p555_p9), 0.0   ;;  %vm3151_vm1 = vmmov (!%p555_p9), 0   ;;  %vm756_vm2 = vcmask (!%p555_p9), 130048  }
  0x17   : > { %558 = sbr.rel (%p555_p9) target bundleno = 5737 (0x1669), region = 92  ;;  %p619_p10 = scmp.lt.s32.totalorder (!%p555_p9), %s2602_s27, 3  ;;  %2769 = vmatprep.subr.bf16.mxu0 (!%p555_p9), %v3150_v15  ;;  %2777 = vmatprep.subr.bf16.mxu1 (!%p555_p9), %v3150_v15  ;;  %vm811_vm3 = vcmask (!%p555_p9), 64512   ;;  %vm829_vm4 = vcmask (!%p555_p9), 1043456   ;;  %vm1457_vm5 = vcmask (!%p555_p9), 523264   ;;  %vm2411_vm6 = vcmask (!%p555_p9), 1040384  }
  0x18   : > { %s3788_s4 = sld [smem:[#allocation10_spill]] (!%p555_p9)  ;;  %2773 = vmatprep.mubr.msk.bf16.mxu0 (!%p555_p9), %vm3151_vm1, %v3150_v15  ;;  %2779 = vmatprep.mubr.msk.bf16.mxu1 (!%p555_p9), %vm3151_vm1, %v3150_v15  ;;  %s3789_s29 = sld [smem:[#allocation8_spill]] (!%p555_p9)  ;;  %vm2481_vm7 = vcmask (!%p555_p9), 254976  }
  0x19   : > { %s3790_s25 = sld [smem:[#allocation9_spill]] (!%p555_p9)  ;;  %s3791_s5 = sld [smem:[#allocation11_spill]] (!%p555_p9) }
  0x1a   : > { %s3766_s22 = smov (!%p555_p9), 112   ;;  %s3793_s6 = sld [smem:[#allocation12_spill]] (!%p555_p9) }
  0x1b   : > { %p629_p11 = scmp.lt.s32.totalorder (!%p555_p9), %s3280_s1, 1 }
  0x1e   : > { %s3806_s27 = smov (!%p619_p10, %s2602_s27), 3  ;;  %v3002_v14 = vld [vmem:[%s3788_s4] sm:$0xff]   ;;  %v3003_v16 = vld [vmem:[%s3788_s4 + $0x8] sm:$0xff]  }
  0x1f   : > { %s2603_s28 = sshll.u32 %s3806_s27, 3  ;;  %2770 = vmatpush3.bf16.msra.mxu0 %v3002_v14  ;;  %v2606_v25 = vld [vmem:[%s3789_s29] ss:$0 sm:$0xff]  ;;  %s3773_s29 = smov 96  }
  0x20   : > { %s622_s24 = scalar_lea.vmem %s3787_s23, %s2603_s28  ;;  %2771 = vmatprep.subr.bf16.mxu0 %v3150_v15  ;;  %v2607_v29 = vld [vmem:[%s3790_s25] ss:$0 sm:$0xff]  ;;  %s3775_s25 = smov 80  }
  0x21   : > { %v634_v0 = vld [vmem:[%s622_s24] sm:$0xff]  ;;  %v635_v1 = vld [vmem:[%s622_s24 + $0x8] sm:$0xff]  ;;  %s3792_s28 = sld [smem:[#allocation7_spill]]  ;;  %s3770_s23 = smov 16  }
  0x22   : > { %v639_v2 = vsel %vm638_vm0, %v634_v0, 0.0  ;;  %v642_v3 = vsel %vm638_vm0, %v635_v1, 0.0  ;;  %v2608_v34 = vld [vmem:[%s3791_s5] ss:$0 sm:$0xff] }
  0x23   : > { %640 = vadd.xlane.f32.xlu0 %v639_v2  ;;  %2772 = vmatpush3.bf16.msra.mxu0 %v3003_v16 }
  0x24   : > { %2783 = vmatprep.subr.bf16.mxu0 %v3150_v15 }
  0x27   : > { %643 = vadd.xlane.f32.xlu0 %v642_v3 }
  0xb0   : > { %v641_v4 = vpop.xlane.xlu0 %640 }
  0xb1   : > { %v646_v5 = vmul.f32 0.03125, %v641_v4 }
  0xb3   : > { %v648_v6 = vsub.f32 %v634_v0, %v646_v5 }
  0xb4   : > { %v644_v7 = vpop.xlane.xlu0 %643 }
  0xb5   : > { %v647_v8 = vmul.f32 0.03125, %v644_v7  ;;  %v650_v9 = vmul.f32 %v648_v6, %v648_v6 }
  0xb7   : > { %v649_v10 = vsub.f32 %v635_v1, %v647_v8  ;;  %v652_v11 = vsel %vm638_vm0, %v650_v9, 0.0 }
  0xb8   : > { %653 = vadd.xlane.f32.xlu1 %v652_v11 }
  0xb9   : > { %v651_v12 = vmul.f32 %v649_v10, %v649_v10 }
  0xbb   : > { %v655_v13 = vsel %vm638_vm0, %v651_v12, 0.0 }
  0xbc   : > { %656 = vadd.xlane.f32.xlu1 %v655_v13 }
 0x145   : > { %v654_v17 = vpop.xlane.xlu1 %653 }
 0x146   : > { %v658_v18 = vmul.f32 0.03125, %v654_v17 }
 0x148   : > { %v660_v19 = vadd.f32 1e-12, %v658_v18 }
 0x149   : > { %v657_v20 = vpop.xlane.xlu1 %656 }
 0x14a   : > { %3024 = vrsqrt.f32 %v660_v19  ;;  %v659_v21 = vmul.f32 0.03125, %v657_v20 }
 0x14c   : > { %v661_v22 = vadd.f32 1e-12, %v659_v21 }
 0x14e   : > { %3026 = vrsqrt.f32 %v661_v22 }
 0x154   : > { %v3025_v23 = vpop.eup %3024 }
 0x155   : > { %v664_v24 = vmul.f32 %v3025_v23, %v648_v6 }
 0x157   : > { %v672_v28 = vmul.f32 %v2606_v25, %v664_v24 }
 0x158   : > { %v3027_v26 = vpop.eup %3026 }
 0x159   : > { %v665_v27 = vmul.f32 %v3027_v26, %v649_v10  ;;  %v3338_v31 = vadd.f32 %v2607_v29, %v672_v28 }
 0x15b   : > { %v673_v30 = vmul.f32 %v2606_v25, %v665_v27 }
 0x15d   : > { %v3340_v32 = vadd.f32 %v2607_v29, %v673_v30 }
 0x15f   : > { %v688_v33 = vpack.c.bf16 %v3340_v32, %v3338_v31 }
 0x161   : > { %2774 = vmatmul.mubr.msk.bf16.vlgmr.msra.gmra.mrb[0].mxu0 %vm638_vm0, %v688_v33 }
 0x162   : > { %2785 = vmatprep.mubr.msk.bf16.mxu0 %vm3151_vm1, %v3150_v15 }
 0x234   : > { %v745_v35 = vpop.f32.mrb[0].mxu0 }
 0x235   : > { %v746_v36 = vadd.f32 %v2608_v34, %v745_v35  ;;  %v2775_v37 = vpop.f32.mrb[1].mxu0 }
 0x236   : > { %v748_v38 = vpop.f32.mrb[2].mxu0 }
 0x237   : > { %v3350_v39 = vpack.c.bf16 %v746_v36, %v746_v36  ;;  %v749_v40 = vadd.f32 %v2608_v34, %v748_v38  ;;  %v2776_v41 = vpop.f32.mrb[3].mxu0 }
 0x239   : > { %875 = vrot.lane.b32.xlu1 %v3350_v39, %s3775_s25  ;;  %754 = vrot.lane.b32.xlu0 %v3350_v39, %s3773_s29  ;;  %v3356_v42 = vpack.c.bf16 %v749_v40, %v749_v40 }
 0x23d   : > { %873 = vrot.lane.b32.xlu1 %v3350_v39, %s3766_s22  ;;  %1110 = vrot.lane.b32.xlu0 %v3356_v42, %s3775_s25  ;;  %s3796_s25 = smov 112  }
 0x241   : > { %992 = vrot.lane.b32.xlu1 %v3356_v42, %s3773_s29 }
 0x245   : > { %1108 = vrot.lane.b32.xlu1 %v3356_v42, %s3766_s22  ;;  %s627_s22 = scalar_lea.vmem %s3792_s28, %s3806_s27  ;;  %s3768_s27 = smov 48  }
 0x246   : > { %v3392_v54 = vld [vmem:[%s627_s22] ss:$0 sm:$0xff]  ;;  %v3398_v5 = vld [vmem:[%s627_s22 + $0x1] ss:$0 sm:$0xff]  ;;  %s3771_s22 = smov 64   ;;  %s3795_s28 = smov 96  }
 0x2ab   : > { %v755_v43 = vpop.permute.xlu0 %754  ;;  %v876_v45 = vpop.permute.xlu1 %875 }
 0x2ac   : > { %v761_v44 = vsel %vm756_vm2, %v755_v43, 0  ;;  %v881_v47 = vsel %vm756_vm2, %v876_v45, 0 }
 0x2ad   : > { %2778 = vmatpush3.bf16.xpose.msra.mxu1 %v761_v44 }
 0x2ae   : > { %2789 = vmatprep.subr.bf16.mxu1 %v3150_v15 }
 0x2af   : > { %v874_v46 = vpop.permute.xlu1 %873  ;;  %v1111_v50 = vpop.permute.xlu0 %1110 }
 0x2b0   : > { %v1116_v51 = vsel %vm756_vm2, %v1111_v50, 0 }
 0x2b3   : > { %v993_v48 = vpop.permute.xlu1 %992 }
 0x2b4   : > { %2780 = vmatmul.mubr.msk.bf16.vlgmr.msra.gmra.mrb[0].mxu1 %vm756_vm2, %v3350_v39  ;;  %v998_v49 = vsel %vm756_vm2, %v993_v48, 0 }
 0x2b5   : > { %2790 = vmatpush3.bf16.xpose.msra.mxu1 %v881_v47  ;;  %2791 = vmatprep.mubr.msk.bf16.mxu1 %vm3151_vm1, %v3150_v15 }
 0x2b6   : > { %2801 = vmatprep.subr.bf16.mxu1 %v3150_v15 }
 0x2b7   : > { %v1109_v52 = vpop.permute.xlu1 %1108 }
 0x2bc   : > { %2792 = vmatmul.mubr.msk.bf16.vlgmr.msra.gmra.mrb[4].mxu1 %vm756_vm2, %v874_v46 }
 0x2bd   : > { %2802 = vmatpush3.bf16.xpose.msra.mxu1 %v998_v49  ;;  %2803 = vmatprep.mubr.msk.bf16.mxu1 %vm3151_vm1, %v3150_v15 }
 0x2be   : > { %2813 = vmatprep.subr.bf16.mxu1 %v3150_v15 }
 0x2c4   : > { %2804 = vmatmul.mubr.msk.bf16.vlgmr.msra.gmra.mrb[8].mxu1 %vm756_vm2, %v3356_v42 }
 0x2c5   : > { %2814 = vmatpush3.bf16.xpose.msra.mxu1 %v1116_v51  ;;  %2815 = vmatprep.mubr.msk.bf16.mxu1 %vm3151_vm1, %v3150_v15 }
 0x2c6   : > { %2825 = vmatprep.subr.bf16.mxu1 %v3150_v15 }
 0x2cc   : > { %2816 = vmatmul.mubr.msk.bf16.vlgmr.msra.gmra.mrb[12].mxu1 %vm756_vm2, %v1109_v52 }
 0x2cd   : > { %2829 = vmatprep.mubr.msk.bf16.mxu1 %vm3151_vm1, %v3150_v15 }
 0x387   : > { %v797_v53 = vpop.f32.mrb[0].mxu1 }
 0x388   : > { %v803_v55 = vmul.f32 0.25, %v797_v53  ;;  %v2781_v56 = vpop.f32.mrb[1].mxu1 }
 0x389   : > { %v800_v57 = vpop.f32.mrb[2].mxu1 }
 0x38a   : > { %v2782_v58 = vpop.f32.mrb[3].mxu1  ;;  %v810_v59 = vadd.f32 %v3392_v54, %v803_v55 }
 0x38c   : > { %v812_v60 = vsel %vm811_vm3, %v810_v59, -inf }
 0x38d   : > { %813 = vmax.xlane.f32.xlu0 %v812_v60 }
 0x38f   : > { %v917_v61 = vpop.f32.mrb[4].mxu1 }
 0x390   : > { %v923_v62 = vmul.f32 0.25, %v917_v61  ;;  %v2793_v63 = vpop.f32.mrb[5].mxu1 }
 0x391   : > { %v920_v0 = vpop.f32.mrb[6].mxu1 }
 0x392   : > { %v2794_v1 = vpop.f32.mrb[7].mxu1  ;;  %v924_v2 = vadd.f32 %v3392_v54, %v923_v62 }
 0x394   : > { %v925_v3 = vsel %vm811_vm3, %v924_v2, -inf }
 0x395   : > { %926 = vmax.xlane.f32.xlu1 %v925_v3  ;;  %v3004_v3 = vld [vmem:[%s3793_s6] sm:$0xff]  }
 0x396   : > { %2826 = vmatpush3.bf16.msra.mxu1 %v3004_v3 }
 0x397   : > { %v1034_v4 = vpop.f32.mrb[8].mxu1  ;;  %2827 = vmatprep.subr.bf16.mxu1 %v3150_v15 }
 0x398   : > { %v1040_v6 = vmul.f32 0.25, %v1034_v4  ;;  %v2805_v7 = vpop.f32.mrb[9].mxu1 }
 0x399   : > { %v1037_v8 = vpop.f32.mrb[10].mxu1 }
 0x39a   : > { %v2806_v9 = vpop.f32.mrb[11].mxu1  ;;  %v1047_v10 = vadd.f32 %v3398_v5, %v1040_v6 }
 0x39c   : > { %v1048_v11 = vsel %vm811_vm3, %v1047_v10, -inf }
 0x39d   : > { %1049 = vmax.xlane.f32.xlu0 %v1048_v11 }
 0x39f   : > { %v1152_v12 = vpop.f32.mrb[12].mxu1 }
 0x3a0   : > { %v1158_v13 = vmul.f32 0.25, %v1152_v12  ;;  %v2817_v14 = vpop.f32.mrb[13].mxu1 }
 0x3a1   : > { %v1155_v16 = vpop.f32.mrb[14].mxu1 }
 0x3a2   : > { %v2818_v17 = vpop.f32.mrb[15].mxu1  ;;  %v1159_v18 = vadd.f32 %v3398_v5, %v1158_v13 }
 0x3a4   : > { %v1160_v19 = vsel %vm811_vm3, %v1159_v18, -inf }
 0x3a5   : > { %1161 = vmax.xlane.f32.xlu0 %v1160_v19 }
 0x41a   : > { %v814_v20 = vpop.xlane.xlu0 %813 }
 0x41b   : > { %v815_v21 = vsub.f32 %v810_v59, %v814_v20 }
 0x41d   : > { %v816_v22 = vmul.f32 1.442695, %v815_v21 }
 0x41f   : > { %3028 = vpow2.f32 %v816_v22 }
 0x422   : > { %v927_v23 = vpop.xlane.xlu1 %926 }
 0x423   : > { %v928_v24 = vsub.f32 %v924_v2, %v927_v23 }
 0x425   : > { %v929_v25 = vmul.f32 1.442695, %v928_v24 }
 0x427   : > { %3030 = vpow2.f32 %v929_v25 }
 0x429   : > { %v3029_v26 = vpop.eup %3028 }
 0x42a   : > { %v1050_v27 = vpop.xlane.xlu0 %1049  ;;  %v818_v28 = vsel %vm811_vm3, %v3029_v26, 0.0 }
 0x42b   : > { %v1051_v29 = vsub.f32 %v1047_v10, %v1050_v27  ;;  %819 = vadd.xlane.f32.xlu0 %v818_v28 }
 0x42d   : > { %v1052_v30 = vmul.f32 1.442695, %v1051_v29 }
 0x42f   : > { %3032 = vpow2.f32 %v1052_v30  ;;  %v2622_v30 = vld [vmem:[%s3753_s7] ss:$0 sm:$0xff] }
 0x431   : > { %v3031_v33 = vpop.eup %3030 }
 0x432   : > { %v931_v34 = vsel %vm811_vm3, %v3031_v33, 0.0  ;;  %v1162_v37 = vpop.xlane.xlu0 %1161 }
 0x433   : > { %932 = vadd.xlane.f32.xlu1 %v931_v34  ;;  %v1163_v38 = vsub.f32 %v1159_v18, %v1162_v37  ;;  %v3005_v18 = vld [vmem:[%s3793_s6 + $0x8] sm:$0xff]  }
 0x434   : > { %2828 = vmatpush3.bf16.msra.mxu1 %v3005_v18 }
 0x435   : > { %v1164_v40 = vmul.f32 1.442695, %v1163_v38  ;;  %2841 = vmatprep.subr.bf16.mxu1 %v3150_v15 }
 0x437   : > { %3034 = vpow2.f32 %v1164_v40 }
 0x439   : > { %v3033_v35 = vpop.eup %3032 }
 0x43a   : > { %v1054_v36 = vsel %vm811_vm3, %v3033_v35, 0.0 }
 0x43b   : > { %1055 = vadd.xlane.f32.xlu0 %v1054_v36 }
 0x441   : > { %v3035_v41 = vpop.eup %3034 }
 0x442   : > { %v1166_v43 = vsel %vm811_vm3, %v3035_v41, 0.0 }
 0x444   : > { %937 = vrot.lane.b32.xlu1 %v3350_v39, %s3768_s27 }
 0x448   : > { %1060 = vrot.lane.b32.xlu1 %v3356_v42, %s3771_s22 }
 0x451   : > { %824 = vrot.lane.b32.xlu0 %v3350_v39, %s3771_s22  ;;  %s3794_s22 = smov 80  }
 0x46c   : > { %1167 = vadd.xlane.f32.xlu1 %v1166_v43 }
 0x47d   : > { %1172 = vrot.lane.b32.xlu1 %v3356_v42, %s3768_s27  ;;  %s3797_s27 = smov 64  }
 0x4b8   : > { %v820_v44 = vpop.xlane.xlu0 %819 }
 0x4b9   : > { %3036 = vrcp.f32 %v820_v44 }
 0x4c0   : > { %v933_v45 = vpop.xlane.xlu1 %932 }
 0x4c1   : > { %3038 = vrcp.f32 %v933_v45 }
 0x4c3   : > { %v3037_v46 = vpop.eup %3036 }
 0x4c4   : > { %v822_v48 = vmul.f32 %v3037_v46, %v3029_v26  ;;  %v938_v50 = vpop.permute.xlu1 %937 }
 0x4c5   : > { %v943_v42 = vsel %vm829_vm4, %v938_v50, 0 }
 0x4c6   : > { %v823_v51 = vpack.c.bf16 %v822_v48, %v822_v48 }
 0x4c8   : > { %v1056_v47 = vpop.xlane.xlu0 %1055  ;;  %v1061_v55 = vpop.permute.xlu1 %1060 }
 0x4c9   : > { %3040 = vrcp.f32 %v1056_v47  ;;  %v1066_v58 = vsel %vm829_vm4, %v1061_v55, 0 }
 0x4cb   : > { %v3039_v52 = vpop.eup %3038 }
 0x4cc   : > { %v825_v39 = vpop.permute.xlu0 %824  ;;  %v935_v53 = vmul.f32 %v3039_v52, %v3031_v33 }
 0x4cd   : > { %v831_v49 = vsel %vm829_vm4, %v825_v39, 0 }
 0x4ce   : > { %2784 = vmatpush3.bf16.msra.mxu0 %v831_v49  ;;  %v936_v56 = vpack.c.bf16 %v935_v53, %v935_v53 }
 0x4cf   : > { %2795 = vmatprep.subr.bf16.mxu0 %v3150_v15 }
 0x4d1   : > { %2786 = vmatmul.mubr.msk.bf16.vlgmr.msra.gmra.mrb[4].mxu0 %vm811_vm3, %v823_v51 }
 0x4d2   : > { %2796 = vmatpush3.bf16.msra.mxu0 %v943_v42  ;;  %2797 = vmatprep.mubr.msk.bf16.mxu0 %vm3151_vm1, %v3150_v15  ;;  %v3007_v42 = vld [vmem:[%s3756_s10 + $0x8] sm:$0xff]  }
 0x4d3   : > { %2807 = vmatprep.subr.bf16.mxu0 %v3150_v15  ;;  %v3041_v57 = vpop.eup %3040 }
 0x4d4   : > { %v1058_v59 = vmul.f32 %v3041_v57, %v3033_v35 }
 0x4d6   : > { %v1059_v60 = vpack.c.bf16 %v1058_v59, %v1058_v59 }
 0x4d9   : > { %2798 = vmatmul.mubr.msk.bf16.vlgmr.msra.gmra.mrb[8].mxu0 %vm811_vm3, %v936_v56 }
 0x4da   : > { %2808 = vmatpush3.bf16.msra.mxu0 %v1066_v58  ;;  %2809 = vmatprep.mubr.msk.bf16.mxu0 %vm3151_vm1, %v3150_v15 }
 0x4db   : > { %2819 = vmatprep.subr.bf16.mxu0 %v3150_v15 }
 0x4e1   : > { %2810 = vmatmul.mubr.msk.bf16.vlgmr.msra.gmra.mrb[12].mxu0 %vm811_vm3, %v1059_v60 }
 0x4e2   : > { %2821 = vmatprep.mubr.msk.bf16.mxu0 %vm3151_vm1, %v3150_v15 }
 0x4f9   : > { %v1168_v61 = vpop.xlane.xlu1 %1167 }
 0x4fa   : > { %3042 = vrcp.f32 %v1168_v61 }
 0x4fd   : > { %v1173_v62 = vpop.permute.xlu1 %1172 }
 0x4fe   : > { %v1178_v63 = vsel %vm829_vm4, %v1173_v62, 0  ;;  %v2626_v62 = vld [vmem:[%s3754_s8] ss:$0 sm:$0xff] }
 0x4ff   : > { %2820 = vmatpush3.bf16.msra.mxu0 %v1178_v63 }
 0x500   : > { %2833 = vmatprep.subr.bf16.mxu0 %v3150_v15 }
 0x504   : > { %v3043_v0 = vpop.eup %3042 }
 0x505   : > { %v1170_v1 = vmul.f32 %v3043_v0, %v3035_v41 }
 0x507   : > { %v1171_v2 = vpack.c.bf16 %v1170_v1, %v1170_v1 }
 0x509   : > { %2822 = vmatmul.mubr.msk.bf16.vlgmr.msra.gmra.mrb[16].mxu0 %vm811_vm3, %v1171_v2  ;;  %v2627_v2 = vld [vmem:[%s3755_s9] ss:$0 sm:$0xff] }
 0x50a   : > { %2837 = vmatprep.mubr.msk.bf16.mxu0 %vm3151_vm1, %v3150_v15 }
 0x5a4   : > { %v867_v4 = vpop.f32.mrb[4].mxu0 }
 0x5a5   : > { %v2787_v6 = vpop.f32.mrb[5].mxu0 }
 0x5a6   : > { %v870_v7 = vpop.f32.mrb[6].mxu0 }
 0x5a7   : > { %v2788_v8 = vpop.f32.mrb[7].mxu0 }
 0x5a8   : > { %v3008_v8 = vld [vmem:[%s3758_s12] sm:$0xff]  }
 0x5ac   : > { %v979_v9 = vpop.f32.mrb[8].mxu0 }
 0x5ad   : > { %v2799_v10 = vpop.f32.mrb[9].mxu0 }
 0x5ae   : > { %v982_v11 = vpop.f32.mrb[10].mxu0  ;;  %v3010_v10 = vld [vmem:[%s3758_s12 + $0x10] sm:$0xff]  }
 0x5af   : > { %v2800_v12 = vpop.f32.mrb[11].mxu0  ;;  %v3011_v11 = vld [vmem:[%s3758_s12 + $0x18] sm:$0xff]  }
 0x5b0   : > { %v2628_v12 = vld [vmem:[%s3757_s11] ss:$0 sm:$0xff] }
 0x5b4   : > { %v1102_v13 = vpop.f32.mrb[12].mxu0 }
 0x5b5   : > { %v2811_v14 = vpop.f32.mrb[13].mxu0 }
 0x5b6   : > { %v1105_v16 = vpop.f32.mrb[14].mxu0 }
 0x5b7   : > { %v2812_v17 = vpop.f32.mrb[15].mxu0 }
 0x5dc   : > { %v1214_v19 = vpop.f32.mrb[16].mxu0 }
 0x5dd   : > { %v2992_v20 = vpack.i.bf16 %v1214_v19, %v979_v9  ;;  %v2823_v21 = vpop.f32.mrb[17].mxu0  ;;  %v3009_v9 = vld [vmem:[%s3758_s12 + $0x8] sm:$0xff]  }
 0x5de   : > { %v1217_v22 = vpop.f32.mrb[18].mxu0 }
 0x5df   : > { %2993 = vrot.lane.b32.xlu0 %v2992_v20, %s3770_s23  ;;  %v2824_v23 = vpop.f32.mrb[19].mxu0  ;;  %s3798_s23 = smov 48  }
 0x651   : > { %v2994_v24 = vpop.permute.xlu0 %2993 }
 0x652   : > { %v2996_v25 = vunpack.i.h.bf16 %v2994_v24  ;;  %v2995_v26 = vunpack.i.l.bf16 %v2994_v24 }
 0x654   : > { %v1224_v27 = vsel %vm756_vm2, %v1102_v13, %v2996_v25  ;;  %v989_v28 = vsel %vm756_vm2, %v867_v4, %v2995_v26 }
 0x655   : > { %v1229_v29 = vpack.c.bf16 %v1224_v27, %v989_v28 }
 0x657   : > { %2830 = vmatmul.mubr.msk.bf16.vlgmr.msra.gmra.mrb[16].mxu1 %vm638_vm0, %v1229_v29 }
 0x658   : > { %2849 = vmatprep.mubr.msk.bf16.mxu1 %vm3151_vm1, %v3150_v15  ;;  %2842 = vmatpush3.bf16.msra.mxu1 %v3008_v8 }
 0x659   : > { %2843 = vmatprep.subr.bf16.mxu1 %v3150_v15 }
 0x65c   : > { %2844 = vmatpush3.bf16.msra.mxu1 %v3009_v9  ;;  %v2645_v9 = vld [vmem:[%s3791_s5 + $0x1] ss:$0 sm:$0xff] }
 0x65d   : > { %2845 = vmatprep.subr.bf16.mxu1 %v3150_v15 }
 0x660   : > { %2846 = vmatpush3.bf16.msra.mxu1 %v3010_v10 }
 0x661   : > { %2847 = vmatprep.subr.bf16.mxu1 %v3150_v15 }
 0x664   : > { %2848 = vmatpush3.bf16.msra.mxu1 %v3011_v11 }
 0x665   : > { %2867 = vmatprep.subr.bf16.mxu1 %v3150_v15 }
 0x72a   : > { %v1286_v33 = vpop.f32.mrb[16].mxu1 }
 0x72b   : > { %v1287_v34 = vadd.f32 %v2622_v30, %v1286_v33  ;;  %v2831_v35 = vpop.f32.mrb[17].mxu1  ;;  %v2632_v33 = vld [vmem:[%s3759_s13] ss:$0 sm:$0xff] }
 0x72c   : > { %v1289_v36 = vpop.f32.mrb[18].mxu1 }
 0x72d   : > { %v1290_v37 = vadd.f32 %v2622_v30, %v1289_v36  ;;  %v2832_v38 = vpop.f32.mrb[19].mxu1  ;;  %v1293_v40 = vadd.f32 %v1287_v34, %v3338_v31 }
 0x72f   : > { %v1297_v41 = vsel %vm638_vm0, %v1293_v40, 0.0  ;;  %v1294_v43 = vadd.f32 %v1290_v37, %v3340_v32  ;;  %v3006_v32 = vld [vmem:[%s3756_s10] sm:$0xff]  }
 0x730   : > { %1298 = vadd.xlane.f32.xlu1 %v1297_v41  ;;  %2834 = vmatpush3.bf16.msra.mxu0 %v3006_v32 }
 0x731   : > { %v1300_v44 = vsel %vm638_vm0, %v1294_v43, 0.0  ;;  %2835 = vmatprep.subr.bf16.mxu0 %v3150_v15 }
 0x732   : > { %1301 = vadd.xlane.f32.xlu0 %v1300_v44 }
 0x734   : > { %2836 = vmatpush3.bf16.msra.mxu0 %v3007_v42  ;;  %v3012_v42 = vld [vmem:[%s3788_s4 + $0x10] sm:$0xff]  }
 0x735   : > { %2853 = vmatprep.subr.bf16.mxu0 %v3150_v15 }
 0x7bd   : > { %v1299_v45 = vpop.xlane.xlu1 %1298 }
 0x7be   : > { %v1303_v46 = vmul.f32 0.03125, %v1299_v45 }
 0x7bf   : > { %v1302_v47 = vpop.xlane.xlu0 %1301 }
 0x7c0   : > { %v1305_v48 = vsub.f32 %v1293_v40, %v1303_v46  ;;  %v1304_v39 = vmul.f32 0.03125, %v1302_v47 }
 0x7c2   : > { %v1306_v49 = vsub.f32 %v1294_v43, %v1304_v39  ;;  %v1307_v50 = vmul.f32 %v1305_v48, %v1305_v48 }
 0x7c4   : > { %v1309_v51 = vsel %vm638_vm0, %v1307_v50, 0.0  ;;  %v1308_v52 = vmul.f32 %v1306_v49, %v1306_v49 }
 0x7c5   : > { %1310 = vadd.xlane.f32.xlu0 %v1309_v51 }
 0x7c6   : > { %v1312_v31 = vsel %vm638_vm0, %v1308_v52, 0.0 }
 0x7c9   : > { %1313 = vadd.xlane.f32.xlu0 %v1312_v31 }
 0x852   : > { %v1311_v53 = vpop.xlane.xlu0 %1310 }
 0x853   : > { %v1315_v55 = vmul.f32 0.03125, %v1311_v53  ;;  %v3013_v53 = vld [vmem:[%s3788_s4 + $0x18] sm:$0xff]   ;;  %s630_s4 = scalar_select %p629_p11, %s3280_s1, 1 }
 0x855   : > { %v1317_v56 = vadd.f32 1e-12, %v1315_v55 }
 0x856   : > { %v1314_v57 = vpop.xlane.xlu0 %1313 }
 0x857   : > { %3044 = vrsqrt.f32 %v1317_v56  ;;  %v1316_v58 = vmul.f32 0.03125, %v1314_v57 }
 0x859   : > { %v1318_v59 = vadd.f32 1e-12, %v1316_v58 }
 0x85b   : > { %3046 = vrsqrt.f32 %v1318_v59 }
 0x861   : > { %v3045_v60 = vpop.eup %3044 }
 0x862   : > { %v1321_v61 = vmul.f32 %v3045_v60, %v1305_v48 }
 0x864   : > { %v1329_v0 = vmul.f32 %v2626_v62, %v1321_v61 }
 0x865   : > { %v3047_v63 = vpop.eup %3046 }
 0x866   : > { %v1322_v1 = vmul.f32 %v3047_v63, %v1306_v49  ;;  %v1337_v4 = vadd.f32 %v2627_v2, %v1329_v0 }
 0x868   : > { %v1330_v3 = vmul.f32 %v2626_v62, %v1322_v1  ;;  %v2638_v62 = vld [vmem:[%s3760_s14] ss:$0 sm:$0xff] }
 0x86a   : > { %v1338_v6 = vadd.f32 %v2627_v2, %v1330_v3  ;;  %v2639_v3 = vld [vmem:[%s3761_s15] ss:$0 sm:$0xff] }
 0x86c   : > { %v1343_v7 = vpack.c.bf16 %v1338_v6, %v1337_v4 }
 0x86e   : > { %2838 = vmatmul.mubr.msk.bf16.vlgmr.msra.gmra.mrb[20].mxu0 %vm638_vm0, %v1343_v7 }
 0x86f   : > { %2857 = vmatprep.mubr.msk.bf16.mxu0 %vm3151_vm1, %v3150_v15  ;;  %2854 = vmatpush3.bf16.msra.mxu0 %v3012_v42 }
 0x870   : > { %2855 = vmatprep.subr.bf16.mxu0 %v3150_v15 }
 0x873   : > { %2856 = vmatpush3.bf16.msra.mxu0 %v3013_v53 }
 0x874   : > { %2861 = vmatprep.subr.bf16.mxu0 %v3150_v15 }
 0x941   : > { %v1400_v13 = vpop.f32.mrb[20].mxu0 }
 0x942   : > { %v1401_v14 = vadd.f32 %v2628_v12, %v1400_v13  ;;  %v2839_v16 = vpop.f32.mrb[21].mxu0 }
 0x943   : > { %v1403_v17 = vpop.f32.mrb[22].mxu0 }
 0x944   : > { %v1409_v18 = vmul.f32 0.70710677, %v1401_v14  ;;  %v1404_v19 = vadd.f32 %v2628_v12, %v1403_v17  ;;  %v2840_v20 = vpop.f32.mrb[23].mxu0  ;;  %v1407_v25 = vmul.f32 0.5, %v1401_v14 }
 0x946   : > { %3048 = verf.f32 %v1409_v18  ;;  %v1410_v21 = vmul.f32 0.70710677, %v1404_v19  ;;  %v1408_v26 = vmul.f32 0.5, %v1404_v19 }
 0x948   : > { %3050 = verf.f32 %v1410_v21 }
 0x950   : > { %v3049_v22 = vpop.eup %3048 }
 0x951   : > { %v1413_v23 = vadd.f32 1.0, %v3049_v22 }
 0x952   : > { %v3051_v24 = vpop.eup %3050 }
 0x953   : > { %v1414_v27 = vadd.f32 1.0, %v3051_v24  ;;  %v1415_v28 = vmul.f32 %v1413_v23, %v1407_v25 }
 0x955   : > { %v1416_v29 = vmul.f32 %v1414_v27, %v1408_v26 }
 0x957   : > { %v1425_v30 = vpack.c.bf16 %v1416_v29, %v1415_v28 }
 0x959   : > { %2850 = vmatmul.mubr.msk.bf16.vlgmr.msra.gmra.mrb[20].mxu1 %vm1457_vm5, %v1425_v30 }
 0x95a   : > { %2869 = vmatprep.mubr.msk.bf16.mxu1 %vm3151_vm1, %v3150_v15 }
 0xa2c   : > { %v1495_v34 = vpop.f32.mrb[20].mxu1 }
 0xa2d   : > { %v1496_v35 = vadd.f32 %v2632_v33, %v1495_v34  ;;  %v2851_v36 = vpop.f32.mrb[21].mxu1 }
 0xa2e   : > { %v1498_v37 = vpop.f32.mrb[22].mxu1 }
 0xa2f   : > { %v1499_v38 = vadd.f32 %v2632_v33, %v1498_v37  ;;  %v2852_v40 = vpop.f32.mrb[23].mxu1  ;;  %v1502_v41 = vadd.f32 %v1496_v35, %v1337_v4 }
 0xa31   : > { %v1506_v43 = vsel %vm638_vm0, %v1502_v41, 0.0  ;;  %v1503_v44 = vadd.f32 %v1499_v38, %v1338_v6 }
 0xa32   : > { %1507 = vadd.xlane.f32.xlu1 %v1506_v43 }
 0xa33   : > { %v1509_v45 = vsel %vm638_vm0, %v1503_v44, 0.0 }
 0xa34   : > { %1510 = vadd.xlane.f32.xlu0 %v1509_v45 }
 0xabf   : > { %v1508_v46 = vpop.xlane.xlu1 %1507 }
 0xac0   : > { %v1512_v47 = vmul.f32 0.03125, %v1508_v46 }
 0xac1   : > { %v1511_v48 = vpop.xlane.xlu0 %1510 }
 0xac2   : > { %v1514_v39 = vsub.f32 %v1502_v41, %v1512_v47  ;;  %v1513_v49 = vmul.f32 0.03125, %v1511_v48 }
 0xac4   : > { %v1515_v50 = vsub.f32 %v1503_v44, %v1513_v49  ;;  %v1516_v51 = vmul.f32 %v1514_v39, %v1514_v39 }
 0xac6   : > { %v1518_v52 = vsel %vm638_vm0, %v1516_v51, 0.0  ;;  %v1517_v31 = vmul.f32 %v1515_v50, %v1515_v50 }
 0xac7   : > { %1519 = vadd.xlane.f32.xlu1 %v1518_v52 }
 0xac8   : > { %v1521_v32 = vsel %vm638_vm0, %v1517_v31, 0.0 }
 0xac9   : > { %1522 = vadd.xlane.f32.xlu0 %v1521_v32 }
 0xb54   : > { %v1520_v55 = vpop.xlane.xlu1 %1519 }
 0xb55   : > { %v1524_v56 = vmul.f32 0.03125, %v1520_v55 }
 0xb56   : > { %v1523_v57 = vpop.xlane.xlu0 %1522 }
 0xb57   : > { %v1526_v58 = vadd.f32 1e-12, %v1524_v56  ;;  %v1525_v59 = vmul.f32 0.03125, %v1523_v57 }
 0xb59   : > { %3052 = vrsqrt.f32 %v1526_v58  ;;  %v1527_v60 = vadd.f32 1e-12, %v1525_v59 }
 0xb5b   : > { %3054 = vrsqrt.f32 %v1527_v60 }
 0xb63   : > { %v3053_v61 = vpop.eup %3052 }
 0xb64   : > { %v1530_v63 = vmul.f32 %v3053_v61, %v1514_v39 }
 0xb65   : > { %v3055_v0 = vpop.eup %3054 }
 0xb66   : > { %v1538_v1 = vmul.f32 %v2638_v62, %v1530_v63  ;;  %v1531_v2 = vmul.f32 %v3055_v0, %v1515_v50 }
 0xb68   : > { %v1539_v4 = vmul.f32 %v2638_v62, %v1531_v2  ;;  %v3519_v6 = vadd.f32 %v2639_v3, %v1538_v1 }
 0xb6a   : > { %v3521_v7 = vadd.f32 %v2639_v3, %v1539_v4 }
 0xb6c   : > { %v1553_v8 = vpack.c.bf16 %v3521_v7, %v3519_v6 }
 0xb6e   : > { %2858 = vmatmul.mubr.msk.bf16.vlgmr.msra.gmra.mrb[24].mxu0 %vm638_vm0, %v1553_v8 }
 0xb6f   : > { %2863 = vmatprep.mubr.msk.bf16.mxu0 %vm3151_vm1, %v3150_v15 }
 0xc41   : > { %v1611_v10 = vpop.f32.mrb[24].mxu0 }
 0xc42   : > { %v1612_v11 = vadd.f32 %v2645_v9, %v1611_v10  ;;  %v2859_v12 = vpop.f32.mrb[25].mxu0 }
 0xc43   : > { %v1614_v13 = vpop.f32.mrb[26].mxu0 }
 0xc44   : > { %v3531_v14 = vpack.c.bf16 %v1612_v11, %v1612_v11  ;;  %v1615_v16 = vadd.f32 %v2645_v9, %v1614_v13  ;;  %v2860_v17 = vpop.f32.mrb[27].mxu0 }
 0xc46   : > { %1732 = vrot.lane.b32.xlu0 %v3531_v14, %s3794_s22  ;;  %1620 = vrot.lane.b32.xlu1 %v3531_v14, %s3795_s28  ;;  %v3537_v18 = vpack.c.bf16 %v1615_v16, %v1615_v16 }
 0xc4a   : > { %1730 = vrot.lane.b32.xlu1 %v3531_v14, %s3796_s25  ;;  %1959 = vrot.lane.b32.xlu0 %v3537_v18, %s3796_s25  ;;  %s3799_s25 = smov 16  }
 0xc4e   : > { %1849 = vrot.lane.b32.xlu1 %v3537_v18, %s3795_s28 }
 0xc52   : > { %1961 = vrot.lane.b32.xlu1 %v3537_v18, %s3794_s22 }
 0xcb8   : > { %v1621_v19 = vpop.permute.xlu1 %1620  ;;  %v1733_v21 = vpop.permute.xlu0 %1732 }
 0xcb9   : > { %v1626_v20 = vsel %vm756_vm2, %v1621_v19, 0  ;;  %v1738_v23 = vsel %vm756_vm2, %v1733_v21, 0 }
 0xcba   : > { %2862 = vmatpush3.bf16.xpose.msra.mxu0 %v1626_v20 }
 0xcbb   : > { %2873 = vmatprep.subr.bf16.mxu0 %v3150_v15 }
 0xcbc   : > { %v1731_v22 = vpop.permute.xlu1 %1730  ;;  %v1960_v28 = vpop.permute.xlu0 %1959 }
 0xcc0   : > { %v1850_v24 = vpop.permute.xlu1 %1849 }
 0xcc1   : > { %2864 = vmatmul.mubr.msk.bf16.vlgmr.msra.gmra.mrb[28].mxu0 %vm756_vm2, %v3531_v14  ;;  %v1855_v25 = vsel %vm756_vm2, %v1850_v24, 0 }
 0xcc2   : > { %2874 = vmatpush3.bf16.xpose.msra.mxu0 %v1738_v23  ;;  %2875 = vmatprep.mubr.msk.bf16.mxu0 %vm3151_vm1, %v3150_v15 }
 0xcc3   : > { %2885 = vmatprep.subr.bf16.mxu0 %v3150_v15 }
 0xcc4   : > { %v1962_v26 = vpop.permute.xlu1 %1961 }
 0xcc5   : > { %v1967_v27 = vsel %vm756_vm2, %v1962_v26, 0 }
 0xcc9   : > { %2876 = vmatmul.mubr.msk.bf16.vlgmr.msra.gmra.mrb[32].mxu0 %vm756_vm2, %v1731_v22 }
 0xcca   : > { %2886 = vmatpush3.bf16.xpose.msra.mxu0 %v1855_v25  ;;  %2887 = vmatprep.mubr.msk.bf16.mxu0 %vm3151_vm1, %v3150_v15 }
 0xccb   : > { %2897 = vmatprep.subr.bf16.mxu0 %v3150_v15 }
 0xcd1   : > { %2888 = vmatmul.mubr.msk.bf16.vlgmr.msra.gmra.mrb[36].mxu0 %vm756_vm2, %v3537_v18 }
 0xcd2   : > { %2898 = vmatpush3.bf16.xpose.msra.mxu0 %v1967_v27  ;;  %2899 = vmatprep.mubr.msk.bf16.mxu0 %vm3151_vm1, %v3150_v15 }
 0xcd3   : > { %2909 = vmatprep.subr.bf16.mxu0 %v3150_v15 }
 0xcd9   : > { %2900 = vmatmul.mubr.msk.bf16.vlgmr.msra.gmra.mrb[40].mxu0 %vm756_vm2, %v1960_v28 }
 0xcda   : > { %2913 = vmatprep.mubr.msk.bf16.mxu0 %vm3151_vm1, %v3150_v15 }
 0xd94   : > { %v1662_v29 = vpop.f32.mrb[28].mxu0 }
 0xd95   : > { %v1668_v30 = vmul.f32 0.25, %v1662_v29  ;;  %v2865_v33 = vpop.f32.mrb[29].mxu0 }
 0xd96   : > { %v1665_v34 = vpop.f32.mrb[30].mxu0 }
 0xd97   : > { %v2866_v35 = vpop.f32.mrb[31].mxu0  ;;  %v1669_v36 = vadd.f32 %v3392_v54, %v1668_v30 }
 0xd99   : > { %v1670_v37 = vsel %vm811_vm3, %v1669_v36, -inf }
 0xd9a   : > { %1671 = vmax.xlane.f32.xlu1 %v1670_v37 }
 0xd9c   : > { %v1774_v38 = vpop.f32.mrb[32].mxu0 }
 0xd9d   : > { %v1780_v40 = vmul.f32 0.25, %v1774_v38  ;;  %v2877_v41 = vpop.f32.mrb[33].mxu0 }
 0xd9e   : > { %v1777_v43 = vpop.f32.mrb[34].mxu0 }
 0xd9f   : > { %v2878_v44 = vpop.f32.mrb[35].mxu0  ;;  %v1781_v45 = vadd.f32 %v3392_v54, %v1780_v40 }
 0xda0   : > { %v3014_v44 = vld [vmem:[%s3793_s6 + $0x10] sm:$0xff]  }
 0xda1   : > { %v1782_v46 = vsel %vm811_vm3, %v1781_v45, -inf  ;;  %2910 = vmatpush3.bf16.msra.mxu0 %v3014_v44 }
 0xda2   : > { %1783 = vmax.xlane.f32.xlu0 %v1782_v46  ;;  %2911 = vmatprep.subr.bf16.mxu0 %v3150_v15 }
 0xda4   : > { %v1891_v47 = vpop.f32.mrb[36].mxu0 }
 0xda5   : > { %v1897_v48 = vmul.f32 0.25, %v1891_v47  ;;  %v2889_v39 = vpop.f32.mrb[37].mxu0 }
 0xda6   : > { %v1894_v49 = vpop.f32.mrb[38].mxu0 }
 0xda7   : > { %v2890_v50 = vpop.f32.mrb[39].mxu0  ;;  %v1898_v51 = vadd.f32 %v3398_v5, %v1897_v48 }
 0xda9   : > { %v1899_v52 = vsel %vm811_vm3, %v1898_v51, -inf }
 0xdaa   : > { %1900 = vmax.xlane.f32.xlu0 %v1899_v52  ;;  %v3015_v52 = vld [vmem:[%s3793_s6 + $0x18] sm:$0xff]  }
 0xdab   : > { %2912 = vmatpush3.bf16.msra.mxu0 %v3015_v52 }
 0xdac   : > { %v2003_v31 = vpop.f32.mrb[40].mxu0  ;;  %2925 = vmatprep.subr.bf16.mxu0 %v3150_v15 }
 0xdad   : > { %v2009_v32 = vmul.f32 0.25, %v2003_v31  ;;  %v2901_v42 = vpop.f32.mrb[41].mxu0 }
 0xdae   : > { %v2006_v53 = vpop.f32.mrb[42].mxu0 }
 0xdaf   : > { %v2902_v55 = vpop.f32.mrb[43].mxu0  ;;  %v2010_v54 = vadd.f32 %v3398_v5, %v2009_v32 }
 0xdb1   : > { %v2011_v56 = vsel %vm811_vm3, %v2010_v54, -inf }
 0xdb2   : > { %2012 = vmax.xlane.f32.xlu0 %v2011_v56 }
 0xe27   : > { %v1672_v57 = vpop.xlane.xlu1 %1671 }
 0xe28   : > { %v1673_v58 = vsub.f32 %v1669_v36, %v1672_v57 }
 0xe2a   : > { %v1674_v59 = vmul.f32 1.442695, %v1673_v58 }
 0xe2c   : > { %3056 = vpow2.f32 %v1674_v59 }
 0xe2f   : > { %v1784_v60 = vpop.xlane.xlu0 %1783 }
 0xe30   : > { %v1785_v61 = vsub.f32 %v1781_v45, %v1784_v60 }
 0xe32   : > { %v1786_v62 = vmul.f32 1.442695, %v1785_v61 }
 0xe34   : > { %3058 = vpow2.f32 %v1786_v62 }
 0xe36   : > { %v3057_v63 = vpop.eup %3056 }
 0xe37   : > { %v1676_v0 = vsel %vm811_vm3, %v3057_v63, 0.0  ;;  %v1901_v1 = vpop.xlane.xlu0 %1900 }
 0xe38   : > { %1677 = vadd.xlane.f32.xlu1 %v1676_v0  ;;  %v1902_v11 = vsub.f32 %v1898_v51, %v1901_v1  ;;  %v2662_v1 = vld [vmem:[%s3753_s7 + $0x1] ss:$0 sm:$0xff] }
 0xe3a   : > { %v1903_v12 = vmul.f32 1.442695, %v1902_v11 }
 0xe3e   : > { %v3059_v2 = vpop.eup %3058 }
 0xe3f   : > { %v2013_v3 = vpop.xlane.xlu0 %2012  ;;  %v1788_v5 = vsel %vm811_vm3, %v3059_v2, 0.0 }
 0xe40   : > { %v2014_v4 = vsub.f32 %v2010_v54, %v2013_v3  ;;  %1789 = vadd.xlane.f32.xlu0 %v1788_v5 }
 0xe42   : > { %v2015_v8 = vmul.f32 1.442695, %v2014_v4 }
 0xe44   : > { %3060 = vpow2.f32 %v2015_v8 }
 0xe45   : > { %3062 = vpow2.f32 %v1903_v12 }
 0xe49   : > { %1682 = vrot.lane.b32.xlu1 %v3531_v14, %s3797_s27 }
 0xe4e   : > { %v3061_v9 = vpop.eup %3060 }
 0xe4f   : > { %v2017_v10 = vsel %vm811_vm3, %v3061_v9, 0.0  ;;  %v3063_v13 = vpop.eup %3062 }
 0xe50   : > { %2018 = vadd.xlane.f32.xlu0 %v2017_v10  ;;  %v1905_v16 = vsel %vm811_vm3, %v3063_v13, 0.0 }
 0xe66   : > { %1794 = vrot.lane.b32.xlu0 %v3531_v14, %s3798_s23 }
 0xe6d   : > { %1906 = vadd.xlane.f32.xlu1 %v1905_v16 }
 0xe7e   : > { %1911 = vrot.lane.b32.xlu1 %v3537_v18, %s3797_s27  ;;  %s2605_s27 = sshll.u32 %s630_s4, 1  ;;  %s615_s4 = sand.u32 1, %s3140_s30  }
 0xe7f   : > { %s632_s29 = scalar_lea.vmem %s3764_s18, %s2605_s27  ;;  %s2703_s27 = sshll.u32 %s3280_s1, 5 }
 0xe80   : > { %s3703_s6 = scalar_lea.hbm %s3765_s19, %s2703_s27  ;;  %s2489_s22 = scalar_lea.sflag [#allocation3], %s615_s4 }
 0xe81   : > { %s3158_s1 = smov [#allocation2]  }
 0xe82   : > { %2023 = vrot.lane.b32.xlu1 %v3537_v18, %s3798_s23 }
 0xec5   : > { %v1678_v17 = vpop.xlane.xlu1 %1677 }
 0xec6   : > { %3064 = vrcp.f32 %v1678_v17 }
 0xec9   : > { %v1683_v19 = vpop.permute.xlu1 %1682 }
 0xeca   : > { %v1688_v20 = vsel %vm829_vm4, %v1683_v19, 0 }
 0xecb   : > { %2868 = vmatpush3.bf16.msra.mxu1 %v1688_v20 }
 0xecc   : > { %2879 = vmatprep.subr.bf16.mxu1 %v3150_v15 }
 0xecd   : > { %v1790_v14 = vpop.xlane.xlu0 %1789 }
 0xece   : > { %3066 = vrcp.f32 %v1790_v14 }
 0xed0   : > { %v3065_v21 = vpop.eup %3064 }
 0xed1   : > { %v1680_v22 = vmul.f32 %v3065_v21, %v3057_v63 }
 0xed3   : > { %v1681_v23 = vpack.c.bf16 %v1680_v22, %v1680_v22 }
 0xed5   : > { %2870 = vmatmul.mubr.msk.bf16.vlgmr.msra.gmra.mrb[24].mxu1 %vm811_vm3, %v1681_v23 }
 0xed6   : > { %2881 = vmatprep.mubr.msk.bf16.mxu1 %vm3151_vm1, %v3150_v15 }
 0xed8   : > { %v3067_v24 = vpop.eup %3066 }
 0xed9   : > { %v1792_v25 = vmul.f32 %v3067_v24, %v3059_v2 }
 0xedb   : > { %v1793_v28 = vpack.c.bf16 %v1792_v25, %v1792_v25 }
 0xedd   : > { %v2019_v18 = vpop.xlane.xlu0 %2018 }
 0xee1   : > { %v1795_v26 = vpop.permute.xlu0 %1794 }
 0xee2   : > { %v1800_v27 = vsel %vm829_vm4, %v1795_v26, 0 }
 0xee3   : > { %2880 = vmatpush3.bf16.msra.mxu1 %v1800_v27 }
 0xee4   : > { %2891 = vmatprep.subr.bf16.mxu1 %v3150_v15 }
 0xee6   : > { %2882 = vmatmul.mubr.msk.bf16.vlgmr.msra.gmra.mrb[28].mxu1 %vm811_vm3, %v1793_v28 }
 0xee7   : > { %2893 = vmatprep.mubr.msk.bf16.mxu1 %vm3151_vm1, %v3150_v15 }
 0xefa   : > { %v1907_v29 = vpop.xlane.xlu1 %1906 }
 0xefb   : > { %3068 = vrcp.f32 %v1907_v29 }
 0xefc   : > { %3070 = vrcp.f32 %v2019_v18  ;;  %v3017_v18 = vld [vmem:[%s3756_s10 + $0x18] sm:$0xff]  }
 0xefe   : > { %v1912_v30 = vpop.permute.xlu1 %1911 }
 0xeff   : > { %v1917_v33 = vsel %vm829_vm4, %v1912_v30, 0 }
 0xf00   : > { %2892 = vmatpush3.bf16.msra.mxu1 %v1917_v33 }
 0xf01   : > { %2903 = vmatprep.subr.bf16.mxu1 %v3150_v15 }
 0xf02   : > { %v2024_v36 = vpop.permute.xlu1 %2023 }
 0xf03   : > { %v2029_v40 = vsel %vm829_vm4, %v2024_v36, 0 }
 0xf05   : > { %v3069_v34 = vpop.eup %3068 }
 0xf06   : > { %v1909_v35 = vmul.f32 %v3069_v34, %v3063_v13  ;;  %v3071_v38 = vpop.eup %3070 }
 0xf07   : > { %v2021_v41 = vmul.f32 %v3071_v38, %v3061_v9 }
 0xf08   : > { %v1910_v37 = vpack.c.bf16 %v1909_v35, %v1909_v35  ;;  %v2668_v35 = vld [vmem:[%s3754_s8 + $0x1] ss:$0 sm:$0xff] }
 0xf09   : > { %v2022_v43 = vpack.c.bf16 %v2021_v41, %v2021_v41 }
 0xf0a   : > { %2894 = vmatmul.mubr.msk.bf16.vlgmr.msra.gmra.mrb[32].mxu1 %vm811_vm3, %v1910_v37 }
 0xf0b   : > { %2904 = vmatpush3.bf16.msra.mxu1 %v2029_v40  ;;  %2905 = vmatprep.mubr.msk.bf16.mxu1 %vm3151_vm1, %v3150_v15  ;;  %v2669_v40 = vld [vmem:[%s3755_s9 + $0x1] ss:$0 sm:$0xff] }
 0xf0c   : > { %2917 = vmatprep.subr.bf16.mxu1 %v3150_v15 }
 0xf12   : > { %2906 = vmatmul.mubr.msk.bf16.vlgmr.msra.gmra.mrb[36].mxu1 %vm811_vm3, %v2022_v43 }
 0xf13   : > { %2921 = vmatprep.mubr.msk.bf16.mxu1 %vm3151_vm1, %v3150_v15 }
 0xfa8   : > { %v1724_v45 = vpop.f32.mrb[24].mxu1 }
 0xfa9   : > { %v2871_v46 = vpop.f32.mrb[25].mxu1 }
 0xfaa   : > { %v1727_v47 = vpop.f32.mrb[26].mxu1  ;;  %v3018_v46 = vld [vmem:[%s3758_s12 + $0x20] sm:$0xff]  }
 0xfab   : > { %v2872_v48 = vpop.f32.mrb[27].mxu1  ;;  %v3019_v47 = vld [vmem:[%s3758_s12 + $0x28] sm:$0xff]  }
 0xfac   : > { %v3020_v48 = vld [vmem:[%s3758_s12 + $0x30] sm:$0xff]  }
 0xfb9   : > { %v1836_v39 = vpop.f32.mrb[28].mxu1 }
 0xfba   : > { %v2883_v49 = vpop.f32.mrb[29].mxu1 }
 0xfbb   : > { %v1839_v50 = vpop.f32.mrb[30].mxu1  ;;  %v2675_v49 = vld [vmem:[%s3757_s11 + $0x1] ss:$0 sm:$0xff] }
 0xfbc   : > { %v2884_v51 = vpop.f32.mrb[31].mxu1 }
 0xfdd   : > { %v1953_v31 = vpop.f32.mrb[32].mxu1 }
 0xfde   : > { %v2895_v32 = vpop.f32.mrb[33].mxu1 }
 0xfdf   : > { %v1956_v42 = vpop.f32.mrb[34].mxu1 }
 0xfe0   : > { %v2896_v53 = vpop.f32.mrb[35].mxu1 }
 0xfe5   : > { %v2065_v55 = vpop.f32.mrb[36].mxu1 }
 0xfe6   : > { %v2997_v54 = vpack.i.bf16 %v2065_v55, %v1836_v39  ;;  %v2907_v56 = vpop.f32.mrb[37].mxu1  ;;  %v3021_v39 = vld [vmem:[%s3758_s12 + $0x38] sm:$0xff]  }
 0xfe7   : > { %v2068_v57 = vpop.f32.mrb[38].mxu1 }
 0xfe8   : > { %2998 = vrot.lane.b32.xlu1 %v2997_v54, %s3799_s25  ;;  %v2908_v58 = vpop.f32.mrb[39].mxu1  ;;  %s2601_s25 = sshll.u32 %s615_s4, 1 }
 0xfe9   : > { %s617_s23 = scalar_lea.vmem [#allocation2], %s2601_s25  ;;  %s3090_s25 = sshll.u32 %s3158_s1, 4  ;;  %s3091_s25 = int_to_ptr.vmem [resolvable:$false] %s3090_s25 }
 0xfea   : > { %s2505_s24 = sshll.u32 %s617_s23, 4  ;;  %s3092_s5 = scalar_lea.vmem %s3091_s25, 64  ;;  %s3705_s24 = int_to_ptr.vmem [resolvable:$true] %s2505_s24 }
 0xfeb   : > { %s3086_s28 = scalar_lea.vmem %s3705_s24, 32  ;;  %p3093_p1 = scmp.lt.s32.totalorder %s3705_s24, %s3091_s25 }
 0xfec   : > { %p3087_p12 = scmp.ne.s32.totalorder %s3705_s24, %s3086_s28  ;;  %p3094_p2 = scmp.lt.s32.totalorder %s3092_s5, %s3086_s28 }
 0xfee   : > { %p3088_p13 = pnand %p3087_p12, %p3297_p5  ;;  %p3095_p3 = por %p3094_p2, %p3093_p1 }
 0xff0   : > { %p3089_p0 = pneg %p3088_p13 }
 0xff2   : > { %p3096_p4 = pnand %p3095_p3, %p3089_p0 }
0x105a   : > { %v2999_v59 = vpop.permute.xlu1 %2998 }
0x105b   : > { %v3001_v60 = vunpack.i.h.bf16 %v2999_v59  ;;  %v3000_v61 = vunpack.i.l.bf16 %v2999_v59 }
0x105d   : > { %v2075_v62 = vsel %vm756_vm2, %v1953_v31, %v3001_v60  ;;  %v1846_v63 = vsel %vm756_vm2, %v1724_v45, %v3000_v61 }
0x105e   : > { %v2081_v0 = vpack.c.bf16 %v2075_v62, %v1846_v63 }
0x1060   : > { %2914 = vmatmul.mubr.msk.bf16.vlgmr.msra.gmra.mrb[44].mxu0 %vm638_vm0, %v2081_v0  ;;  %v2688_v0 = vld [vmem:[%s3759_s13 + $0x1] ss:$0 sm:$0xff] }
0x1061   : > { %2933 = vmatprep.mubr.msk.bf16.mxu0 %vm3151_vm1, %v3150_v15  ;;  %2926 = vmatpush3.bf16.msra.mxu0 %v3018_v46  ;;  %v2698_v46 = vld [vmem:[%s3763_s17] ss:$0 sm:$0xff] }
0x1062   : > { %2927 = vmatprep.subr.bf16.mxu0 %v3150_v15 }
0x1065   : > { %2928 = vmatpush3.bf16.msra.mxu0 %v3019_v47 }
0x1066   : > { %2929 = vmatprep.subr.bf16.mxu0 %v3150_v15 }
0x1069   : > { %2930 = vmatpush3.bf16.msra.mxu0 %v3020_v48 }
0x106a   : > { %2931 = vmatprep.subr.bf16.mxu0 %v3150_v15 }
0x106d   : > { %2932 = vmatpush3.bf16.msra.mxu0 %v3021_v39 }
0x1133   : > { %v2139_v2 = vpop.f32.mrb[44].mxu0 }
0x1134   : > { %v2140_v3 = vadd.f32 %v2662_v1, %v2139_v2  ;;  %v2915_v5 = vpop.f32.mrb[45].mxu0 }
0x1135   : > { %v2142_v4 = vpop.f32.mrb[46].mxu0 }
0x1136   : > { %v2143_v8 = vadd.f32 %v2662_v1, %v2142_v4  ;;  %v2916_v9 = vpop.f32.mrb[47].mxu0  ;;  %v2146_v10 = vadd.f32 %v2140_v3, %v3519_v6 }
0x1138   : > { %v2152_v11 = vsel %vm638_vm0, %v2146_v10, 0.0  ;;  %v2147_v12 = vadd.f32 %v2143_v8, %v3521_v7  ;;  %v3016_v7 = vld [vmem:[%s3756_s10 + $0x10] sm:$0xff]  }
0x1139   : > { %2153 = vadd.xlane.f32.xlu0 %v2152_v11  ;;  %2918 = vmatpush3.bf16.msra.mxu1 %v3016_v7  ;;  %v3023_v7 = vld [vmem:[%s3762_s16 + $0x8] sm:$0xff]  }
0x113a   : > { %v2155_v13 = vsel %vm638_vm0, %v2147_v12, 0.0  ;;  %2919 = vmatprep.subr.bf16.mxu1 %v3150_v15 }
0x113b   : > { %2156 = vadd.xlane.f32.xlu1 %v2155_v13 }
0x113d   : > { %2920 = vmatpush3.bf16.msra.mxu1 %v3017_v18 }
0x113e   : > { %2937 = vmatprep.subr.bf16.mxu1 %v3150_v15 }
0x11c6   : > { %v2154_v16 = vpop.xlane.xlu0 %2153 }
0x11c7   : > { %v2158_v17 = vmul.f32 0.03125, %v2154_v16 }
0x11c8   : > { %v2157_v19 = vpop.xlane.xlu1 %2156 }
0x11c9   : > { %v2160_v20 = vsub.f32 %v2146_v10, %v2158_v17  ;;  %v2159_v21 = vmul.f32 0.03125, %v2157_v19 }
0x11cb   : > { %v2161_v14 = vsub.f32 %v2147_v12, %v2159_v21  ;;  %v2162_v22 = vmul.f32 %v2160_v20, %v2160_v20 }
0x11cd   : > { %v2164_v23 = vsel %vm638_vm0, %v2162_v22, 0.0  ;;  %v2163_v24 = vmul.f32 %v2161_v14, %v2161_v14 }
0x11ce   : > { %2165 = vadd.xlane.f32.xlu0 %v2164_v23 }
0x11cf   : > { %v2167_v6 = vsel %vm638_vm0, %v2163_v24, 0.0 }
0x11d2   : > { %2168 = vadd.xlane.f32.xlu0 %v2167_v6  ;;  %v3022_v6 = vld [vmem:[%s3762_s16] sm:$0xff]  }
0x125b   : > { %v2166_v25 = vpop.xlane.xlu0 %2165 }
0x125c   : > { %v2170_v26 = vmul.f32 0.03125, %v2166_v25 }
0x125e   : > { %v2172_v27 = vadd.f32 1e-12, %v2170_v26 }
0x125f   : > { %v2169_v28 = vpop.xlane.xlu0 %2168 }
0x1260   : > { %3072 = vrsqrt.f32 %v2172_v27  ;;  %v2171_v29 = vmul.f32 0.03125, %v2169_v28 }
0x1262   : > { %v2173_v30 = vadd.f32 1e-12, %v2171_v29 }
0x1264   : > { %3074 = vrsqrt.f32 %v2173_v30 }
0x126a   : > { %v3073_v33 = vpop.eup %3072 }
0x126b   : > { %v2176_v34 = vmul.f32 %v3073_v33, %v2160_v20 }
0x126d   : > { %v2184_v37 = vmul.f32 %v2668_v35, %v2176_v34 }
0x126e   : > { %v3075_v36 = vpop.eup %3074 }
0x126f   : > { %v2177_v38 = vmul.f32 %v3075_v36, %v2161_v14  ;;  %v2192_v43 = vadd.f32 %v2669_v40, %v2184_v37 }
0x1271   : > { %v2185_v41 = vmul.f32 %v2668_v35, %v2177_v38  ;;  %v2697_v38 = vld [vmem:[%s3761_s15 + $0x1] ss:$0 sm:$0xff] }
0x1273   : > { %v2193_v44 = vadd.f32 %v2669_v40, %v2185_v41 }
0x1275   : > { %v2199_v45 = vpack.c.bf16 %v2193_v44, %v2192_v43 }
0x1277   : > { %2922 = vmatmul.mubr.msk.bf16.vlgmr.msra.gmra.mrb[40].mxu1 %vm638_vm0, %v2199_v45 }
0x1278   : > { %2941 = vmatprep.mubr.msk.bf16.mxu1 %vm3151_vm1, %v3150_v15  ;;  %2938 = vmatpush3.bf16.msra.mxu1 %v3022_v6 }
0x1279   : > { %2939 = vmatprep.subr.bf16.mxu1 %v3150_v15  ;;  %v2696_v15 = vld [vmem:[%s3760_s14 + $0x1] ss:$0 sm:$0xff] }
0x127c   : > { %2940 = vmatpush3.bf16.msra.mxu1 %v3023_v7 }
0x134a   : > { %v2257_v50 = vpop.f32.mrb[40].mxu1 }
0x134b   : > { %v2258_v51 = vadd.f32 %v2675_v49, %v2257_v50  ;;  %v2923_v52 = vpop.f32.mrb[41].mxu1 }
0x134c   : > { %v2260_v31 = vpop.f32.mrb[42].mxu1 }
0x134d   : > { %v2266_v32 = vmul.f32 0.70710677, %v2258_v51  ;;  %v2261_v42 = vadd.f32 %v2675_v49, %v2260_v31  ;;  %v2924_v53 = vpop.f32.mrb[43].mxu1  ;;  %v2264_v58 = vmul.f32 0.5, %v2258_v51 }
0x134f   : > { %3076 = verf.f32 %v2266_v32  ;;  %v2267_v55 = vmul.f32 0.70710677, %v2261_v42  ;;  %v2265_v59 = vmul.f32 0.5, %v2261_v42 }
0x1351   : > { %3078 = verf.f32 %v2267_v55 }
0x1359   : > { %v3077_v54 = vpop.eup %3076 }
0x135a   : > { %v2270_v56 = vadd.f32 1.0, %v3077_v54 }
0x135b   : > { %v3079_v57 = vpop.eup %3078 }
0x135c   : > { %v2271_v60 = vadd.f32 1.0, %v3079_v57  ;;  %v2272_v61 = vmul.f32 %v2270_v56, %v2264_v58 }
0x135e   : > { %v2273_v62 = vmul.f32 %v2271_v60, %v2265_v59 }
0x1360   : > { %v2283_v63 = vpack.c.bf16 %v2273_v62, %v2272_v61 }
0x1362   : > { %2934 = vmatmul.mubr.msk.bf16.vlgmr.msra.gmra.mrb[48].mxu0 %vm1457_vm5, %v2283_v63 }
0x1435   : > { %v2353_v1 = vpop.f32.mrb[48].mxu0 }
0x1436   : > { %v2354_v2 = vadd.f32 %v2688_v0, %v2353_v1  ;;  %v2935_v3 = vpop.f32.mrb[49].mxu0 }
0x1437   : > { %v2356_v5 = vpop.f32.mrb[50].mxu0 }
0x1438   : > { %v2357_v4 = vadd.f32 %v2688_v0, %v2356_v5  ;;  %v2936_v8 = vpop.f32.mrb[51].mxu0  ;;  %v2360_v9 = vadd.f32 %v2354_v2, %v2192_v43 }
0x143a   : > { %v2366_v10 = vsel %vm638_vm0, %v2360_v9, 0.0  ;;  %v2361_v11 = vadd.f32 %v2357_v4, %v2193_v44 }
0x143b   : > { %2367 = vadd.xlane.f32.xlu1 %v2366_v10 }
0x143c   : > { %v2369_v12 = vsel %vm638_vm0, %v2361_v11, 0.0 }
0x143d   : > { %2370 = vadd.xlane.f32.xlu0 %v2369_v12 }
0x14c8   : > { %v2368_v13 = vpop.xlane.xlu1 %2367 }
0x14c9   : > { %v2372_v16 = vmul.f32 0.03125, %v2368_v13 }
0x14ca   : > { %v2371_v17 = vpop.xlane.xlu0 %2370 }
0x14cb   : > { %v2374_v19 = vsub.f32 %v2360_v9, %v2372_v16  ;;  %v2373_v20 = vmul.f32 0.03125, %v2371_v17 }
0x14cd   : > { %v2375_v21 = vsub.f32 %v2361_v11, %v2373_v20  ;;  %v2376_v14 = vmul.f32 %v2374_v19, %v2374_v19 }
0x14cf   : > { %v2378_v22 = vsel %vm638_vm0, %v2376_v14, 0.0  ;;  %v2377_v23 = vmul.f32 %v2375_v21, %v2375_v21 }
0x14d0   : > { %2379 = vadd.xlane.f32.xlu1 %v2378_v22 }
0x14d1   : > { %v2381_v24 = vsel %vm638_vm0, %v2377_v23, 0.0 }
0x14d2   : > { %2382 = vadd.xlane.f32.xlu0 %v2381_v24 }
0x155d   : > { %v2380_v18 = vpop.xlane.xlu1 %2379 }
0x155e   : > { %v2384_v25 = vmul.f32 0.03125, %v2380_v18 }
0x155f   : > { %v2383_v26 = vpop.xlane.xlu0 %2382 }
0x1560   : > { %v2386_v27 = vadd.f32 1e-12, %v2384_v25  ;;  %v2385_v28 = vmul.f32 0.03125, %v2383_v26 }
0x1562   : > { %3080 = vrsqrt.f32 %v2386_v27  ;;  %v2387_v29 = vadd.f32 1e-12, %v2385_v28 }
0x1564   : > { %3082 = vrsqrt.f32 %v2387_v29 }
0x156c   : > { %v3081_v30 = vpop.eup %3080 }
0x156d   : > { %v2390_v33 = vmul.f32 %v3081_v30, %v2374_v19 }
0x156e   : > { %v3083_v34 = vpop.eup %3082 }
0x156f   : > { %v2391_v35 = vmul.f32 %v3083_v34, %v2375_v21  ;;  %v2398_v36 = vmul.f32 %v2696_v15, %v2390_v33 }
0x1571   : > { %v2399_v37 = vmul.f32 %v2696_v15, %v2391_v35  ;;  %v2406_v41 = vadd.f32 %v2697_v38, %v2398_v36 }
0x1573   : > { %v2407_v40 = vadd.f32 %v2697_v38, %v2399_v37 }
0x1575   : > { %v2409_v43 = vrot.slane %v2407_v40, 7 }
0x1577   : > { %v2412_v44 = vsel %vm2411_vm6, %v2406_v41, %v2409_v43 }
0x1578   : > { %v2417_v45 = vpack.c.bf16 %v2412_v44, %v2412_v44  ;;  %2482 = vst.msk [vmem:[%s632_s29] sm:$0x3] %vm2481_vm7, %v2412_v44 }
0x157a   : > { %2942 = vmatmul.mubr.msk.bf16.vlgmr.msra.gmra.mrb[44].mxu1 %vm638_vm0, %v2417_v45 }
0x164d   : > { %v2474_v47 = vpop.f32.mrb[44].mxu1 }
0x164e   : > { %v2475_v48 = vadd.f32 %v2698_v46, %v2474_v47  ;;  %v2943_v39 = vpop.f32.mrb[45].mxu1 }
0x164f   : > { %v2477_v49 = vpop.f32.mrb[46].mxu1 }
0x1650   : > { %3084 = vtanh.f32 %v2475_v48  ;;  %v2944_v50 = vpop.f32.mrb[47].mxu1 }
0x165a   : > { %v3085_v51 = vpop.eup %3084 }
0x165b   : > { %2483 = vst.msk [vmem:[%s617_s23] sm:$0x3] %vm2481_vm7, %v3085_v51 }
0x165c   : > { %3099 = shalt.err (!%p3096_p4)
}
0x165d   : > { %s3100_s4 = scalar_lea.hbm %s3703_s6, 32  ;;  %s3104_s29 = scalar_lea.hbm %s3765_s19, 64 }
0x165e   : > { %p3101_p7 = scmp.ne.s32.totalorder %s3703_s6, %s3100_s4  ;;  %p3105_p10 = scmp.lt.u32.totalorder %s3703_s6, %s3765_s19 }
0x165f   : > { %p3106_p11 = scmp.lt.u32.totalorder %s3104_s29, %s3100_s4  ;;  %p3108_p13 = scmp.lt.u32.totalorder %s3100_s4, %s3703_s6 }
0x1660   : > { %p3102_p8 = pnand %p3101_p7, %p3297_p5 }
0x1661   : > { %p3107_p12 = por %p3106_p11, %p3105_p10 }
0x1662   : > { %p3103_p9 = pneg %p3102_p8 }
0x1663   : > { %p3109_p0 = por %p3108_p13, %p3107_p12 }
0x1665   : > { %p3110_p1 = pnand %p3109_p0, %p3103_p9 }
0x1667   : > { %3113 = shalt.err (!%p3110_p1)
}
0x1668   : > { %2945 = dma.vmem_to_hbm [thread:$0]  (%p3297_p5), %s3705_s24, 32, %s3703_s6, %s2489_s22  }
0x1669 PF: > { %p2951_p2 = scmp.ge.s32.totalorder %s3148_s21, 2  ;;  %s2524_s28 = sand.u32 1, %s3136_s0  }
0x166a   : > { %s2525_s5 = scalar_lea.sflag [#allocation3], %s2524_s28 }
0x166b   : > { %p2948_p3 = pnand %p2951_p2, %p3301_p6 }
0x166d   : > { %3131 = dma.done.wait (!%p2948_p3), %s2525_s5, 32  }
0x166e   : > { %3133 = vsyncadd (!%p2948_p3), %s2525_s5, 4294967264  ;;  %s3800_s4 = sld [smem:[#allocation5_spill]]  ;;  %p30_p4 = scmp.ge.s32.totalorder %s3284_s2, 4  }
0x166f   : > { %s3801_s0 = smov %s3140_s30  ;;  %s3802_s30 = smov %s3144_s20 }
0x1670   : > { %s3804_s21 = smov %s3284_s2  ;;  %32 = sbr.rel (!%p30_p4) target bundleno = 11 (0xb), region = 154 }
0x1674   : > { %s3803_s20 = smov %s3800_s4 }
0x1677   :  { %2530 = vsyncpa [#allocation3], 1 }
0x1678   :  { %2532 = vsyncpa [#allocation3 + $0x1], 1 }

// kernel: cus_arg_model_forward.3
= control target key start
LH: loop header
LB: loop body
LE: loop exit
PB: predicated region body
PF: predicated region fallthrough
CT: control target
= control target key end

     0   :  { %s3740_s0 = inlined_call_operand.vmem [shape: f32[32,32], index: 0, kind: input, shape index: {}]   ;;  %s3741_s1 = inlined_call_operand.vmem [shape: f32[4,1,8], index: 1, kind: input, shape index: {}]   ;;  %s3742_s2 = inlined_call_operand.vmem [shape: f32[1,32], index: 2, kind: input, shape index: {}]   ;;  %s3743_s3 = inlined_call_operand.vmem [shape: f32[1,32], index: 3, kind: input, shape index: {}]   ;;  %s3744_s4 = inlined_call_operand.vmem [shape: bf16[2,32,96], index: 4, kind: input, shape index: {}]   ;;  %s3745_s5 = inlined_call_operand.vmem [shape: f32[2,1,96], index: 5, kind: input, shape index: {}]   ;;  %s3746_s6 = inlined_call_operand.vmem [shape: bf16[2,32,32], index: 6, kind: input, shape index: {}]   ;;  %s3747_s7 = inlined_call_operand.vmem [shape: f32[2,1,32], index: 7, kind: input, shape index: {}]   ;;  %s3748_s8 = inlined_call_operand.vmem [shape: f32[2,1,32], index: 8, kind: input, shape index: {}]   ;;  %s3749_s9 = inlined_call_operand.vmem [shape: f32[2,1,32], index: 9, kind: input, shape index: {}]   ;;  %s3750_s10 = inlined_call_operand.vmem [shape: bf16[2,32,64], index: 10, kind: input, shape index: {}]   ;;  %s3751_s11 = inlined_call_operand.vmem [shape: f32[2,1,64], index: 11, kind: input, shape index: {}]   ;;  %s3752_s12 = inlined_call_operand.vmem [shape: bf16[2,64,32], index: 12, kind: input, shape index: {}]   ;;  %s3753_s13 = inlined_call_operand.vmem [shape: f32[2,1,32], index: 13, kind: input, shape index: {}]   ;;  %s3754_s14 = inlined_call_operand.vmem [shape: f32[2,1,32], index: 14, kind: input, shape index: {}]   ;;  %s3755_s15 = inlined_call_operand.vmem [shape: f32[2,1,32], index: 15, kind: input, shape index: {}]   ;;  %s3756_s16 = inlined_call_operand.vmem [shape: bf16[32,32], index: 16, kind: input, shape index: {}]   ;;  %s3757_s17 = inlined_call_operand.vmem [shape: f32[1,32], index: 17, kind: input, shape index: {}]   ;;  %s3758_s18 = inlined_call_operand.hbm [shape: f32[2,2,32], index: 18, kind: output, shape index: {0}]   ;;  %s3759_s19 = inlined_call_operand.vmem [shape: f32[2,2,32], index: 19, kind: output, shape index: {1}]  }
   0x1   :  { %3771 = sst [smem:[#allocation6_spill]] %s3740_s0 }
   0x2   :  { %3772 = sst [smem:[#allocation7_spill]] %s3741_s1 }
   0x3   :  { %3773 = sst [smem:[#allocation8_spill]] %s3742_s2 }
   0x4   :  { %3774 = sst [smem:[#allocation9_spill]] %s3743_s3 }
   0x5   :  { %3775 = sst [smem:[#allocation10_spill]] %s3744_s4 }
   0x6   :  { %3776 = sst [smem:[#allocation11_spill]] %s3745_s5 }
   0x7   :  { %3777 = sst [smem:[#allocation12_spill]] %s3746_s6 }
   0x8   :  { %3778 = sst [smem:[#allocation13_spill]] %s3747_s7 }
   0x9   :  { %3779 = sst [smem:[#allocation14_spill]] %s3748_s8 }
   0xa   :  { %25 = vsyncpa [#allocation3], 0 }
   0xb   :  { %27 = vsyncpa [#allocation3 + $0x1], 0  ;;  %s3259_s0 = smov 0   ;;  %s3261_s30 = smov 0  }
   0xc   :  { %s3263_s20 = smov 0   ;;  %s3265_s21 = smov 0  }
   0xd LB: > { %s3280_s1 = sadd.s32 4294967295, %s3148_s21   ;;  %s2597_s22 = sadd.s32 4294967294, %s3148_s21   ;;  %s3148_s21 = sphi %s3265_s21, %s3802_s21   ;;  %s3144_s20 = sphi %s3263_s20, %s3801_s20   ;;  %s3140_s30 = sphi %s3261_s30, %s3800_s30   ;;  %s3136_s0 = sphi %s3259_s0, %s3799_s0  }
   0xe   : > { %s3284_s2 = sadd.s32 1, %s3148_s21   ;;  %s428_s23 = sadd.s32 1, %s3144_s20 }
   0xf   : > { %s425_s24 = ssub.s32 %s3148_s21, %s3284_s2  ;;  %p438_p0 = scmp.ne.s32.totalorder %s3144_s20, %s3140_s30 }
  0x10   : > { %p426_p1 = scmp.eq.s32.totalorder %s425_s24, 0  ;;  %p439_p2 = scmp.eq.s32.totalorder %s3280_s1, 1 }
  0x11   : > { %p444_p3 = scmp.ne.s32.totalorder %s3140_s30, %s3136_s0  ;;  %p445_p4 = scmp.eq.s32.totalorder %s2597_s22, 1 }
  0x12   : > { %s3295_s25 = scalar_select %p426_p1, %s3144_s20, %s428_s23  }
  0x13   : > { %p3297_p5 = por %p439_p2, %p438_p0  ;;  %p3301_p6 = por %p445_p4, %p444_p3 }
  0x14   : > { %3780 = sst [smem:[#allocation5_spill]] %s3295_s25  ;;  %p2600_p7 = scmp.ge.s32.totalorder %s3148_s21, 1 }
  0x15   : > { %p554_p8 = scmp.lt.s32.totalorder %s3148_s21, 3 }
  0x17   : > { %p555_p9 = pnand %p2600_p7, %p554_p8 }
  0x18   : > { %s2602_s27 = sshll.u32 (!%p555_p9), %s3280_s1, 1  ;;  %vm638_vm0 = vcmask (!%p555_p9), 261120   ;;  %s3783_s23 = sld [smem:[#allocation6_spill]] (!%p555_p9)  ;;  %v3150_v15 = vmov (!%p555_p9), 0.0   ;;  %vm3151_vm1 = vmmov (!%p555_p9), 0   ;;  %vm756_vm2 = vcmask (!%p555_p9), 130048  }
  0x19   : > { %558 = sbr.rel (%p555_p9) target bundleno = 5726 (0x165e), region = 92  ;;  %p619_p10 = scmp.lt.s32.totalorder (!%p555_p9), %s2602_s27, 3  ;;  %2769 = vmatprep.subr.bf16.mxu0 (!%p555_p9), %v3150_v15  ;;  %2777 = vmatprep.subr.bf16.mxu1 (!%p555_p9), %v3150_v15  ;;  %vm811_vm3 = vcmask (!%p555_p9), 64512   ;;  %vm829_vm4 = vcmask (!%p555_p9), 1043456   ;;  %vm1457_vm5 = vcmask (!%p555_p9), 523264   ;;  %vm2411_vm6 = vcmask (!%p555_p9), 1040384  }
  0x1a   : > { %s3784_s4 = sld [smem:[#allocation10_spill]] (!%p555_p9)  ;;  %2773 = vmatprep.mubr.msk.bf16.mxu0 (!%p555_p9), %vm3151_vm1, %v3150_v15  ;;  %2779 = vmatprep.mubr.msk.bf16.mxu1 (!%p555_p9), %vm3151_vm1, %v3150_v15  ;;  %s3785_s29 = sld [smem:[#allocation8_spill]] (!%p555_p9)  ;;  %vm2481_vm7 = vcmask (!%p555_p9), 254976  }
  0x1b   : > { %s3786_s25 = sld [smem:[#allocation9_spill]] (!%p555_p9)  ;;  %s3787_s5 = sld [smem:[#allocation11_spill]] (!%p555_p9) }
  0x1c   : > { %s3760_s22 = smov (!%p555_p9), 112   ;;  %s3789_s6 = sld [smem:[#allocation12_spill]] (!%p555_p9) }
  0x1d   : > { %s3790_s7 = sld [smem:[#allocation13_spill]] (!%p555_p9)  ;;  %s3791_s8 = sld [smem:[#allocation14_spill]] (!%p555_p9) }
  0x20   : > { %s3804_s27 = smov (!%p619_p10, %s2602_s27), 3  ;;  %v3002_v14 = vld [vmem:[%s3784_s4] sm:$0xff]   ;;  %v3003_v16 = vld [vmem:[%s3784_s4 + $0x8] sm:$0xff]  }
  0x21   : > { %s2603_s28 = sshll.u32 %s3804_s27, 3  ;;  %2770 = vmatpush3.bf16.msra.mxu0 %v3002_v14  ;;  %v2606_v25 = vld [vmem:[%s3785_s29] ss:$0 sm:$0xff]  ;;  %s3767_s29 = smov 96  }
  0x22   : > { %s622_s24 = scalar_lea.vmem %s3783_s23, %s2603_s28  ;;  %2771 = vmatprep.subr.bf16.mxu0 %v3150_v15  ;;  %v2607_v29 = vld [vmem:[%s3786_s25] ss:$0 sm:$0xff]  ;;  %s3769_s25 = smov 80  }
  0x23   : > { %v634_v0 = vld [vmem:[%s622_s24] sm:$0xff]  ;;  %v635_v1 = vld [vmem:[%s622_s24 + $0x8] sm:$0xff]  ;;  %s3788_s28 = sld [smem:[#allocation7_spill]]  ;;  %s3764_s23 = smov 16  }
  0x24   : > { %v639_v2 = vsel %vm638_vm0, %v634_v0, 0.0  ;;  %v642_v3 = vsel %vm638_vm0, %v635_v1, 0.0  ;;  %v2608_v34 = vld [vmem:[%s3787_s5] ss:$0 sm:$0xff]  ;;  %s2703_s24 = sshll.u32 %s3280_s1, 5 }
  0x25   : > { %640 = vadd.xlane.f32.xlu0 %v639_v2  ;;  %2772 = vmatpush3.bf16.msra.mxu0 %v3003_v16 }
  0x26   : > { %2783 = vmatprep.subr.bf16.mxu0 %v3150_v15 }
  0x29   : > { %643 = vadd.xlane.f32.xlu0 %v642_v3 }
  0xb2   : > { %v641_v4 = vpop.xlane.xlu0 %640 }
  0xb3   : > { %v646_v5 = vmul.f32 0.03125, %v641_v4 }
  0xb5   : > { %v648_v6 = vsub.f32 %v634_v0, %v646_v5 }
  0xb6   : > { %v644_v7 = vpop.xlane.xlu0 %643 }
  0xb7   : > { %v647_v8 = vmul.f32 0.03125, %v644_v7  ;;  %v650_v9 = vmul.f32 %v648_v6, %v648_v6 }
  0xb9   : > { %v649_v10 = vsub.f32 %v635_v1, %v647_v8  ;;  %v652_v11 = vsel %vm638_vm0, %v650_v9, 0.0 }
  0xba   : > { %653 = vadd.xlane.f32.xlu1 %v652_v11 }
  0xbb   : > { %v651_v12 = vmul.f32 %v649_v10, %v649_v10 }
  0xbd   : > { %v655_v13 = vsel %vm638_vm0, %v651_v12, 0.0 }
  0xbe   : > { %656 = vadd.xlane.f32.xlu1 %v655_v13 }
 0x147   : > { %v654_v17 = vpop.xlane.xlu1 %653 }
 0x148   : > { %v658_v18 = vmul.f32 0.03125, %v654_v17 }
 0x14a   : > { %v660_v19 = vadd.f32 1e-12, %v658_v18 }
 0x14b   : > { %v657_v20 = vpop.xlane.xlu1 %656 }
 0x14c   : > { %3024 = vrsqrt.f32 %v660_v19  ;;  %v659_v21 = vmul.f32 0.03125, %v657_v20 }
 0x14e   : > { %v661_v22 = vadd.f32 1e-12, %v659_v21 }
 0x150   : > { %3026 = vrsqrt.f32 %v661_v22 }
 0x156   : > { %v3025_v23 = vpop.eup %3024 }
 0x157   : > { %v664_v24 = vmul.f32 %v3025_v23, %v648_v6 }
 0x159   : > { %v672_v28 = vmul.f32 %v2606_v25, %v664_v24 }
 0x15a   : > { %v3027_v26 = vpop.eup %3026 }
 0x15b   : > { %v665_v27 = vmul.f32 %v3027_v26, %v649_v10  ;;  %v3338_v31 = vadd.f32 %v2607_v29, %v672_v28 }
 0x15d   : > { %v673_v30 = vmul.f32 %v2606_v25, %v665_v27 }
 0x15f   : > { %v3340_v32 = vadd.f32 %v2607_v29, %v673_v30 }
 0x161   : > { %v688_v33 = vpack.c.bf16 %v3340_v32, %v3338_v31 }
 0x163   : > { %2774 = vmatmul.mubr.msk.bf16.vlgmr.msra.gmra.mrb[0].mxu0 %vm638_vm0, %v688_v33 }
 0x164   : > { %2785 = vmatprep.mubr.msk.bf16.mxu0 %vm3151_vm1, %v3150_v15 }
 0x236   : > { %v745_v35 = vpop.f32.mrb[0].mxu0 }
 0x237   : > { %v746_v36 = vadd.f32 %v2608_v34, %v745_v35  ;;  %v2775_v37 = vpop.f32.mrb[1].mxu0 }
 0x238   : > { %v748_v38 = vpop.f32.mrb[2].mxu0 }
 0x239   : > { %v3350_v39 = vpack.c.bf16 %v746_v36, %v746_v36  ;;  %v749_v40 = vadd.f32 %v2608_v34, %v748_v38  ;;  %v2776_v41 = vpop.f32.mrb[3].mxu0 }
 0x23b   : > { %875 = vrot.lane.b32.xlu1 %v3350_v39, %s3769_s25  ;;  %754 = vrot.lane.b32.xlu0 %v3350_v39, %s3767_s29  ;;  %v3356_v42 = vpack.c.bf16 %v749_v40, %v749_v40 }
 0x23f   : > { %873 = vrot.lane.b32.xlu1 %v3350_v39, %s3760_s22  ;;  %1110 = vrot.lane.b32.xlu0 %v3356_v42, %s3769_s25  ;;  %s3794_s25 = smov 112  }
 0x243   : > { %992 = vrot.lane.b32.xlu1 %v3356_v42, %s3767_s29 }
 0x247   : > { %1108 = vrot.lane.b32.xlu1 %v3356_v42, %s3760_s22  ;;  %s627_s22 = scalar_lea.vmem %s3788_s28, %s3804_s27  ;;  %s3762_s27 = smov 48  }
 0x248   : > { %v3392_v54 = vld [vmem:[%s627_s22] ss:$0 sm:$0xff]  ;;  %v3398_v5 = vld [vmem:[%s627_s22 + $0x1] ss:$0 sm:$0xff]  ;;  %s3765_s22 = smov 64   ;;  %s3793_s28 = smov 96  }
 0x2ad   : > { %v755_v43 = vpop.permute.xlu0 %754  ;;  %v876_v45 = vpop.permute.xlu1 %875 }
 0x2ae   : > { %v761_v44 = vsel %vm756_vm2, %v755_v43, 0  ;;  %v881_v47 = vsel %vm756_vm2, %v876_v45, 0 }
 0x2af   : > { %2778 = vmatpush3.bf16.xpose.msra.mxu1 %v761_v44 }
 0x2b0   : > { %2789 = vmatprep.subr.bf16.mxu1 %v3150_v15 }
 0x2b1   : > { %v874_v46 = vpop.permute.xlu1 %873  ;;  %v1111_v50 = vpop.permute.xlu0 %1110 }
 0x2b2   : > { %v1116_v51 = vsel %vm756_vm2, %v1111_v50, 0 }
 0x2b5   : > { %v993_v48 = vpop.permute.xlu1 %992 }
 0x2b6   : > { %2780 = vmatmul.mubr.msk.bf16.vlgmr.msra.gmra.mrb[0].mxu1 %vm756_vm2, %v3350_v39  ;;  %v998_v49 = vsel %vm756_vm2, %v993_v48, 0 }
 0x2b7   : > { %2790 = vmatpush3.bf16.xpose.msra.mxu1 %v881_v47  ;;  %2791 = vmatprep.mubr.msk.bf16.mxu1 %vm3151_vm1, %v3150_v15 }
 0x2b8   : > { %2801 = vmatprep.subr.bf16.mxu1 %v3150_v15 }
 0x2b9   : > { %v1109_v52 = vpop.permute.xlu1 %1108 }
 0x2be   : > { %2792 = vmatmul.mubr.msk.bf16.vlgmr.msra.gmra.mrb[4].mxu1 %vm756_vm2, %v874_v46 }
 0x2bf   : > { %2802 = vmatpush3.bf16.xpose.msra.mxu1 %v998_v49  ;;  %2803 = vmatprep.mubr.msk.bf16.mxu1 %vm3151_vm1, %v3150_v15 }
 0x2c0   : > { %2813 = vmatprep.subr.bf16.mxu1 %v3150_v15 }
 0x2c6   : > { %2804 = vmatmul.mubr.msk.bf16.vlgmr.msra.gmra.mrb[8].mxu1 %vm756_vm2, %v3356_v42 }
 0x2c7   : > { %2814 = vmatpush3.bf16.xpose.msra.mxu1 %v1116_v51  ;;  %2815 = vmatprep.mubr.msk.bf16.mxu1 %vm3151_vm1, %v3150_v15 }
 0x2c8   : > { %2825 = vmatprep.subr.bf16.mxu1 %v3150_v15 }
 0x2ce   : > { %2816 = vmatmul.mubr.msk.bf16.vlgmr.msra.gmra.mrb[12].mxu1 %vm756_vm2, %v1109_v52 }
 0x2cf   : > { %2829 = vmatprep.mubr.msk.bf16.mxu1 %vm3151_vm1, %v3150_v15 }
 0x389   : > { %v797_v53 = vpop.f32.mrb[0].mxu1 }
 0x38a   : > { %v803_v55 = vmul.f32 0.25, %v797_v53  ;;  %v2781_v56 = vpop.f32.mrb[1].mxu1 }
 0x38b   : > { %v800_v57 = vpop.f32.mrb[2].mxu1 }
 0x38c   : > { %v2782_v58 = vpop.f32.mrb[3].mxu1  ;;  %v810_v59 = vadd.f32 %v3392_v54, %v803_v55 }
 0x38e   : > { %v812_v60 = vsel %vm811_vm3, %v810_v59, -inf }
 0x38f   : > { %813 = vmax.xlane.f32.xlu0 %v812_v60 }
 0x391   : > { %v917_v61 = vpop.f32.mrb[4].mxu1 }
 0x392   : > { %v923_v62 = vmul.f32 0.25, %v917_v61  ;;  %v2793_v63 = vpop.f32.mrb[5].mxu1 }
 0x393   : > { %v920_v0 = vpop.f32.mrb[6].mxu1 }
 0x394   : > { %v2794_v1 = vpop.f32.mrb[7].mxu1  ;;  %v924_v2 = vadd.f32 %v3392_v54, %v923_v62 }
 0x396   : > { %v925_v3 = vsel %vm811_vm3, %v924_v2, -inf }
 0x397   : > { %926 = vmax.xlane.f32.xlu1 %v925_v3  ;;  %v3004_v3 = vld [vmem:[%s3789_s6] sm:$0xff]  }
 0x398   : > { %2826 = vmatpush3.bf16.msra.mxu1 %v3004_v3 }
 0x399   : > { %v1034_v4 = vpop.f32.mrb[8].mxu1  ;;  %2827 = vmatprep.subr.bf16.mxu1 %v3150_v15 }
 0x39a   : > { %v1040_v6 = vmul.f32 0.25, %v1034_v4  ;;  %v2805_v7 = vpop.f32.mrb[9].mxu1 }
 0x39b   : > { %v1037_v8 = vpop.f32.mrb[10].mxu1 }
 0x39c   : > { %v2806_v9 = vpop.f32.mrb[11].mxu1  ;;  %v1047_v10 = vadd.f32 %v3398_v5, %v1040_v6 }
 0x39e   : > { %v1048_v11 = vsel %vm811_vm3, %v1047_v10, -inf }
 0x39f   : > { %1049 = vmax.xlane.f32.xlu0 %v1048_v11 }
 0x3a1   : > { %v1152_v12 = vpop.f32.mrb[12].mxu1 }
 0x3a2   : > { %v1158_v13 = vmul.f32 0.25, %v1152_v12  ;;  %v2817_v14 = vpop.f32.mrb[13].mxu1 }
 0x3a3   : > { %v1155_v16 = vpop.f32.mrb[14].mxu1 }
 0x3a4   : > { %v2818_v17 = vpop.f32.mrb[15].mxu1  ;;  %v1159_v18 = vadd.f32 %v3398_v5, %v1158_v13 }
 0x3a6   : > { %v1160_v19 = vsel %vm811_vm3, %v1159_v18, -inf }
 0x3a7   : > { %1161 = vmax.xlane.f32.xlu0 %v1160_v19 }
 0x41c   : > { %v814_v20 = vpop.xlane.xlu0 %813 }
 0x41d   : > { %v815_v21 = vsub.f32 %v810_v59, %v814_v20 }
 0x41f   : > { %v816_v22 = vmul.f32 1.442695, %v815_v21 }
 0x421   : > { %3028 = vpow2.f32 %v816_v22 }
 0x424   : > { %v927_v23 = vpop.xlane.xlu1 %926 }
 0x425   : > { %v928_v24 = vsub.f32 %v924_v2, %v927_v23 }
 0x427   : > { %v929_v25 = vmul.f32 1.442695, %v928_v24 }
 0x429   : > { %3030 = vpow2.f32 %v929_v25 }
 0x42b   : > { %v3029_v26 = vpop.eup %3028 }
 0x42c   : > { %v1050_v27 = vpop.xlane.xlu0 %1049  ;;  %v818_v28 = vsel %vm811_vm3, %v3029_v26, 0.0 }
 0x42d   : > { %v1051_v29 = vsub.f32 %v1047_v10, %v1050_v27  ;;  %819 = vadd.xlane.f32.xlu0 %v818_v28 }
 0x42f   : > { %v1052_v30 = vmul.f32 1.442695, %v1051_v29 }
 0x431   : > { %3032 = vpow2.f32 %v1052_v30  ;;  %v2622_v30 = vld [vmem:[%s3790_s7] ss:$0 sm:$0xff] }
 0x433   : > { %v3031_v33 = vpop.eup %3030 }
 0x434   : > { %v931_v34 = vsel %vm811_vm3, %v3031_v33, 0.0  ;;  %v1162_v37 = vpop.xlane.xlu0 %1161 }
 0x435   : > { %932 = vadd.xlane.f32.xlu1 %v931_v34  ;;  %v1163_v38 = vsub.f32 %v1159_v18, %v1162_v37  ;;  %v3005_v18 = vld [vmem:[%s3789_s6 + $0x8] sm:$0xff]  }
 0x436   : > { %2828 = vmatpush3.bf16.msra.mxu1 %v3005_v18 }
 0x437   : > { %v1164_v40 = vmul.f32 1.442695, %v1163_v38  ;;  %2841 = vmatprep.subr.bf16.mxu1 %v3150_v15 }
 0x439   : > { %3034 = vpow2.f32 %v1164_v40 }
 0x43b   : > { %v3033_v35 = vpop.eup %3032 }
 0x43c   : > { %v1054_v36 = vsel %vm811_vm3, %v3033_v35, 0.0 }
 0x43d   : > { %1055 = vadd.xlane.f32.xlu0 %v1054_v36 }
 0x443   : > { %v3035_v41 = vpop.eup %3034 }
 0x444   : > { %v1166_v43 = vsel %vm811_vm3, %v3035_v41, 0.0 }
 0x446   : > { %937 = vrot.lane.b32.xlu1 %v3350_v39, %s3762_s27 }
 0x44a   : > { %1060 = vrot.lane.b32.xlu1 %v3356_v42, %s3765_s22 }
 0x453   : > { %824 = vrot.lane.b32.xlu0 %v3350_v39, %s3765_s22  ;;  %s3792_s22 = smov 80  }
 0x46e   : > { %1167 = vadd.xlane.f32.xlu1 %v1166_v43 }
 0x47f   : > { %1172 = vrot.lane.b32.xlu1 %v3356_v42, %s3762_s27  ;;  %s3795_s27 = smov 64  }
 0x4ba   : > { %v820_v44 = vpop.xlane.xlu0 %819 }
 0x4bb   : > { %3036 = vrcp.f32 %v820_v44 }
 0x4c2   : > { %v933_v45 = vpop.xlane.xlu1 %932 }
 0x4c3   : > { %3038 = vrcp.f32 %v933_v45 }
 0x4c5   : > { %v3037_v46 = vpop.eup %3036 }
 0x4c6   : > { %v822_v48 = vmul.f32 %v3037_v46, %v3029_v26  ;;  %v938_v50 = vpop.permute.xlu1 %937 }
 0x4c7   : > { %v943_v42 = vsel %vm829_vm4, %v938_v50, 0 }
 0x4c8   : > { %v823_v51 = vpack.c.bf16 %v822_v48, %v822_v48 }
 0x4ca   : > { %v1056_v47 = vpop.xlane.xlu0 %1055  ;;  %v1061_v55 = vpop.permute.xlu1 %1060 }
 0x4cb   : > { %3040 = vrcp.f32 %v1056_v47  ;;  %v1066_v58 = vsel %vm829_vm4, %v1061_v55, 0 }
 0x4cd   : > { %v3039_v52 = vpop.eup %3038 }
 0x4ce   : > { %v825_v39 = vpop.permute.xlu0 %824  ;;  %v935_v53 = vmul.f32 %v3039_v52, %v3031_v33 }
 0x4cf   : > { %v831_v49 = vsel %vm829_vm4, %v825_v39, 0 }
 0x4d0   : > { %2784 = vmatpush3.bf16.msra.mxu0 %v831_v49  ;;  %v936_v56 = vpack.c.bf16 %v935_v53, %v935_v53 }
 0x4d1   : > { %2795 = vmatprep.subr.bf16.mxu0 %v3150_v15 }
 0x4d3   : > { %2786 = vmatmul.mubr.msk.bf16.vlgmr.msra.gmra.mrb[4].mxu0 %vm811_vm3, %v823_v51 }
 0x4d4   : > { %2796 = vmatpush3.bf16.msra.mxu0 %v943_v42  ;;  %2797 = vmatprep.mubr.msk.bf16.mxu0 %vm3151_vm1, %v3150_v15  ;;  %v3007_v42 = vld [vmem:[%s3750_s10 + $0x8] sm:$0xff]  }
 0x4d5   : > { %2807 = vmatprep.subr.bf16.mxu0 %v3150_v15  ;;  %v3041_v57 = vpop.eup %3040 }
 0x4d6   : > { %v1058_v59 = vmul.f32 %v3041_v57, %v3033_v35 }
 0x4d8   : > { %v1059_v60 = vpack.c.bf16 %v1058_v59, %v1058_v59 }
 0x4db   : > { %2798 = vmatmul.mubr.msk.bf16.vlgmr.msra.gmra.mrb[8].mxu0 %vm811_vm3, %v936_v56 }
 0x4dc   : > { %2808 = vmatpush3.bf16.msra.mxu0 %v1066_v58  ;;  %2809 = vmatprep.mubr.msk.bf16.mxu0 %vm3151_vm1, %v3150_v15 }
 0x4dd   : > { %2819 = vmatprep.subr.bf16.mxu0 %v3150_v15 }
 0x4e3   : > { %2810 = vmatmul.mubr.msk.bf16.vlgmr.msra.gmra.mrb[12].mxu0 %vm811_vm3, %v1059_v60 }
 0x4e4   : > { %2821 = vmatprep.mubr.msk.bf16.mxu0 %vm3151_vm1, %v3150_v15 }
 0x4fb   : > { %v1168_v61 = vpop.xlane.xlu1 %1167 }
 0x4fc   : > { %3042 = vrcp.f32 %v1168_v61 }
 0x4ff   : > { %v1173_v62 = vpop.permute.xlu1 %1172 }
 0x500   : > { %v1178_v63 = vsel %vm829_vm4, %v1173_v62, 0  ;;  %v2626_v62 = vld [vmem:[%s3791_s8] ss:$0 sm:$0xff] }
 0x501   : > { %2820 = vmatpush3.bf16.msra.mxu0 %v1178_v63 }
 0x502   : > { %2833 = vmatprep.subr.bf16.mxu0 %v3150_v15 }
 0x506   : > { %v3043_v0 = vpop.eup %3042 }
 0x507   : > { %v1170_v1 = vmul.f32 %v3043_v0, %v3035_v41 }
 0x509   : > { %v1171_v2 = vpack.c.bf16 %v1170_v1, %v1170_v1 }
 0x50b   : > { %2822 = vmatmul.mubr.msk.bf16.vlgmr.msra.gmra.mrb[16].mxu0 %vm811_vm3, %v1171_v2  ;;  %v2627_v2 = vld [vmem:[%s3749_s9] ss:$0 sm:$0xff] }
 0x50c   : > { %2837 = vmatprep.mubr.msk.bf16.mxu0 %vm3151_vm1, %v3150_v15 }
 0x5a6   : > { %v867_v4 = vpop.f32.mrb[4].mxu0 }
 0x5a7   : > { %v2787_v6 = vpop.f32.mrb[5].mxu0 }
 0x5a8   : > { %v870_v7 = vpop.f32.mrb[6].mxu0 }
 0x5a9   : > { %v2788_v8 = vpop.f32.mrb[7].mxu0 }
 0x5aa   : > { %v3008_v8 = vld [vmem:[%s3752_s12] sm:$0xff]  }
 0x5ae   : > { %v979_v9 = vpop.f32.mrb[8].mxu0 }
 0x5af   : > { %v2799_v10 = vpop.f32.mrb[9].mxu0 }
 0x5b0   : > { %v982_v11 = vpop.f32.mrb[10].mxu0  ;;  %v3010_v10 = vld [vmem:[%s3752_s12 + $0x10] sm:$0xff]  }
 0x5b1   : > { %v2800_v12 = vpop.f32.mrb[11].mxu0  ;;  %v3011_v11 = vld [vmem:[%s3752_s12 + $0x18] sm:$0xff]  }
 0x5b2   : > { %v2628_v12 = vld [vmem:[%s3751_s11] ss:$0 sm:$0xff] }
 0x5b6   : > { %v1102_v13 = vpop.f32.mrb[12].mxu0 }
 0x5b7   : > { %v2811_v14 = vpop.f32.mrb[13].mxu0 }
 0x5b8   : > { %v1105_v16 = vpop.f32.mrb[14].mxu0 }
 0x5b9   : > { %v2812_v17 = vpop.f32.mrb[15].mxu0 }
 0x5de   : > { %v1214_v19 = vpop.f32.mrb[16].mxu0 }
 0x5df   : > { %v2992_v20 = vpack.i.bf16 %v1214_v19, %v979_v9  ;;  %v2823_v21 = vpop.f32.mrb[17].mxu0  ;;  %v3009_v9 = vld [vmem:[%s3752_s12 + $0x8] sm:$0xff]  }
 0x5e0   : > { %v1217_v22 = vpop.f32.mrb[18].mxu0 }
 0x5e1   : > { %2993 = vrot.lane.b32.xlu0 %v2992_v20, %s3764_s23  ;;  %v2824_v23 = vpop.f32.mrb[19].mxu0  ;;  %s3796_s23 = smov 48  }
 0x653   : > { %v2994_v24 = vpop.permute.xlu0 %2993 }
 0x654   : > { %v2996_v25 = vunpack.i.h.bf16 %v2994_v24  ;;  %v2995_v26 = vunpack.i.l.bf16 %v2994_v24 }
 0x656   : > { %v1224_v27 = vsel %vm756_vm2, %v1102_v13, %v2996_v25  ;;  %v989_v28 = vsel %vm756_vm2, %v867_v4, %v2995_v26 }
 0x657   : > { %v1229_v29 = vpack.c.bf16 %v1224_v27, %v989_v28 }
 0x659   : > { %2830 = vmatmul.mubr.msk.bf16.vlgmr.msra.gmra.mrb[16].mxu1 %vm638_vm0, %v1229_v29 }
 0x65a   : > { %2849 = vmatprep.mubr.msk.bf16.mxu1 %vm3151_vm1, %v3150_v15  ;;  %2842 = vmatpush3.bf16.msra.mxu1 %v3008_v8 }
 0x65b   : > { %2843 = vmatprep.subr.bf16.mxu1 %v3150_v15 }
 0x65e   : > { %2844 = vmatpush3.bf16.msra.mxu1 %v3009_v9  ;;  %v2645_v9 = vld [vmem:[%s3787_s5 + $0x1] ss:$0 sm:$0xff] }
 0x65f   : > { %2845 = vmatprep.subr.bf16.mxu1 %v3150_v15 }
 0x662   : > { %2846 = vmatpush3.bf16.msra.mxu1 %v3010_v10 }
 0x663   : > { %2847 = vmatprep.subr.bf16.mxu1 %v3150_v15 }
 0x666   : > { %2848 = vmatpush3.bf16.msra.mxu1 %v3011_v11 }
 0x667   : > { %2867 = vmatprep.subr.bf16.mxu1 %v3150_v15 }
 0x72c   : > { %v1286_v33 = vpop.f32.mrb[16].mxu1 }
 0x72d   : > { %v1287_v34 = vadd.f32 %v2622_v30, %v1286_v33  ;;  %v2831_v35 = vpop.f32.mrb[17].mxu1  ;;  %v2632_v33 = vld [vmem:[%s3753_s13] ss:$0 sm:$0xff] }
 0x72e   : > { %v1289_v36 = vpop.f32.mrb[18].mxu1 }
 0x72f   : > { %v1290_v37 = vadd.f32 %v2622_v30, %v1289_v36  ;;  %v2832_v38 = vpop.f32.mrb[19].mxu1  ;;  %v1293_v40 = vadd.f32 %v1287_v34, %v3338_v31 }
 0x731   : > { %v1297_v41 = vsel %vm638_vm0, %v1293_v40, 0.0  ;;  %v1294_v43 = vadd.f32 %v1290_v37, %v3340_v32  ;;  %v3006_v32 = vld [vmem:[%s3750_s10] sm:$0xff]  }
 0x732   : > { %1298 = vadd.xlane.f32.xlu1 %v1297_v41  ;;  %2834 = vmatpush3.bf16.msra.mxu0 %v3006_v32 }
 0x733   : > { %v1300_v44 = vsel %vm638_vm0, %v1294_v43, 0.0  ;;  %2835 = vmatprep.subr.bf16.mxu0 %v3150_v15 }
 0x734   : > { %1301 = vadd.xlane.f32.xlu0 %v1300_v44 }
 0x736   : > { %2836 = vmatpush3.bf16.msra.mxu0 %v3007_v42  ;;  %v3012_v42 = vld [vmem:[%s3784_s4 + $0x10] sm:$0xff]  }
 0x737   : > { %2853 = vmatprep.subr.bf16.mxu0 %v3150_v15 }
 0x7bf   : > { %v1299_v45 = vpop.xlane.xlu1 %1298 }
 0x7c0   : > { %v1303_v46 = vmul.f32 0.03125, %v1299_v45 }
 0x7c1   : > { %v1302_v47 = vpop.xlane.xlu0 %1301 }
 0x7c2   : > { %v1305_v48 = vsub.f32 %v1293_v40, %v1303_v46  ;;  %v1304_v39 = vmul.f32 0.03125, %v1302_v47 }
 0x7c4   : > { %v1306_v49 = vsub.f32 %v1294_v43, %v1304_v39  ;;  %v1307_v50 = vmul.f32 %v1305_v48, %v1305_v48 }
 0x7c6   : > { %v1309_v51 = vsel %vm638_vm0, %v1307_v50, 0.0  ;;  %v1308_v52 = vmul.f32 %v1306_v49, %v1306_v49 }
 0x7c7   : > { %1310 = vadd.xlane.f32.xlu0 %v1309_v51 }
 0x7c8   : > { %v1312_v31 = vsel %vm638_vm0, %v1308_v52, 0.0 }
 0x7cb   : > { %1313 = vadd.xlane.f32.xlu0 %v1312_v31 }
 0x854   : > { %v1311_v53 = vpop.xlane.xlu0 %1310 }
 0x855   : > { %v1315_v55 = vmul.f32 0.03125, %v1311_v53  ;;  %v3013_v53 = vld [vmem:[%s3784_s4 + $0x18] sm:$0xff]   ;;  %s609_s4 = sand.u32 1, %s3140_s30  }
 0x857   : > { %v1317_v56 = vadd.f32 1e-12, %v1315_v55 }
 0x858   : > { %v1314_v57 = vpop.xlane.xlu0 %1313 }
 0x859   : > { %3044 = vrsqrt.f32 %v1317_v56  ;;  %v1316_v58 = vmul.f32 0.03125, %v1314_v57 }
 0x85b   : > { %v1318_v59 = vadd.f32 1e-12, %v1316_v58 }
 0x85d   : > { %3046 = vrsqrt.f32 %v1318_v59 }
 0x863   : > { %v3045_v60 = vpop.eup %3044 }
 0x864   : > { %v1321_v61 = vmul.f32 %v3045_v60, %v1305_v48 }
 0x866   : > { %v1329_v0 = vmul.f32 %v2626_v62, %v1321_v61 }
 0x867   : > { %v3047_v63 = vpop.eup %3046 }
 0x868   : > { %v1322_v1 = vmul.f32 %v3047_v63, %v1306_v49  ;;  %v1337_v4 = vadd.f32 %v2627_v2, %v1329_v0 }
 0x86a   : > { %v1330_v3 = vmul.f32 %v2626_v62, %v1322_v1  ;;  %v2638_v62 = vld [vmem:[%s3754_s14] ss:$0 sm:$0xff] }
 0x86c   : > { %v1338_v6 = vadd.f32 %v2627_v2, %v1330_v3  ;;  %v2639_v3 = vld [vmem:[%s3755_s15] ss:$0 sm:$0xff] }
 0x86e   : > { %v1343_v7 = vpack.c.bf16 %v1338_v6, %v1337_v4 }
 0x870   : > { %2838 = vmatmul.mubr.msk.bf16.vlgmr.msra.gmra.mrb[20].mxu0 %vm638_vm0, %v1343_v7 }
 0x871   : > { %2857 = vmatprep.mubr.msk.bf16.mxu0 %vm3151_vm1, %v3150_v15  ;;  %2854 = vmatpush3.bf16.msra.mxu0 %v3012_v42 }
 0x872   : > { %2855 = vmatprep.subr.bf16.mxu0 %v3150_v15 }
 0x875   : > { %2856 = vmatpush3.bf16.msra.mxu0 %v3013_v53 }
 0x876   : > { %2861 = vmatprep.subr.bf16.mxu0 %v3150_v15 }
 0x943   : > { %v1400_v13 = vpop.f32.mrb[20].mxu0 }
 0x944   : > { %v1401_v14 = vadd.f32 %v2628_v12, %v1400_v13  ;;  %v2839_v16 = vpop.f32.mrb[21].mxu0 }
 0x945   : > { %v1403_v17 = vpop.f32.mrb[22].mxu0 }
 0x946   : > { %v1409_v18 = vmul.f32 0.70710677, %v1401_v14  ;;  %v1404_v19 = vadd.f32 %v2628_v12, %v1403_v17  ;;  %v2840_v20 = vpop.f32.mrb[23].mxu0  ;;  %v1407_v25 = vmul.f32 0.5, %v1401_v14 }
 0x948   : > { %3048 = verf.f32 %v1409_v18  ;;  %v1410_v21 = vmul.f32 0.70710677, %v1404_v19  ;;  %v1408_v26 = vmul.f32 0.5, %v1404_v19 }
 0x94a   : > { %3050 = verf.f32 %v1410_v21 }
 0x952   : > { %v3049_v22 = vpop.eup %3048 }
 0x953   : > { %v1413_v23 = vadd.f32 1.0, %v3049_v22 }
 0x954   : > { %v3051_v24 = vpop.eup %3050 }
 0x955   : > { %v1414_v27 = vadd.f32 1.0, %v3051_v24  ;;  %v1415_v28 = vmul.f32 %v1413_v23, %v1407_v25 }
 0x957   : > { %v1416_v29 = vmul.f32 %v1414_v27, %v1408_v26 }
 0x959   : > { %v1425_v30 = vpack.c.bf16 %v1416_v29, %v1415_v28 }
 0x95b   : > { %2850 = vmatmul.mubr.msk.bf16.vlgmr.msra.gmra.mrb[20].mxu1 %vm1457_vm5, %v1425_v30 }
 0x95c   : > { %2869 = vmatprep.mubr.msk.bf16.mxu1 %vm3151_vm1, %v3150_v15 }
 0xa2e   : > { %v1495_v34 = vpop.f32.mrb[20].mxu1 }
 0xa2f   : > { %v1496_v35 = vadd.f32 %v2632_v33, %v1495_v34  ;;  %v2851_v36 = vpop.f32.mrb[21].mxu1 }
 0xa30   : > { %v1498_v37 = vpop.f32.mrb[22].mxu1 }
 0xa31   : > { %v1499_v38 = vadd.f32 %v2632_v33, %v1498_v37  ;;  %v2852_v40 = vpop.f32.mrb[23].mxu1  ;;  %v1502_v41 = vadd.f32 %v1496_v35, %v1337_v4 }
 0xa33   : > { %v1506_v43 = vsel %vm638_vm0, %v1502_v41, 0.0  ;;  %v1503_v44 = vadd.f32 %v1499_v38, %v1338_v6 }
 0xa34   : > { %1507 = vadd.xlane.f32.xlu1 %v1506_v43 }
 0xa35   : > { %v1509_v45 = vsel %vm638_vm0, %v1503_v44, 0.0 }
 0xa36   : > { %1510 = vadd.xlane.f32.xlu0 %v1509_v45 }
 0xac1   : > { %v1508_v46 = vpop.xlane.xlu1 %1507 }
 0xac2   : > { %v1512_v47 = vmul.f32 0.03125, %v1508_v46 }
 0xac3   : > { %v1511_v48 = vpop.xlane.xlu0 %1510 }
 0xac4   : > { %v1514_v39 = vsub.f32 %v1502_v41, %v1512_v47  ;;  %v1513_v49 = vmul.f32 0.03125, %v1511_v48 }
 0xac6   : > { %v1515_v50 = vsub.f32 %v1503_v44, %v1513_v49  ;;  %v1516_v51 = vmul.f32 %v1514_v39, %v1514_v39 }
 0xac8   : > { %v1518_v52 = vsel %vm638_vm0, %v1516_v51, 0.0  ;;  %v1517_v31 = vmul.f32 %v1515_v50, %v1515_v50 }
 0xac9   : > { %1519 = vadd.xlane.f32.xlu1 %v1518_v52 }
 0xaca   : > { %v1521_v32 = vsel %vm638_vm0, %v1517_v31, 0.0 }
 0xacb   : > { %1522 = vadd.xlane.f32.xlu0 %v1521_v32 }
 0xb56   : > { %v1520_v55 = vpop.xlane.xlu1 %1519 }
 0xb57   : > { %v1524_v56 = vmul.f32 0.03125, %v1520_v55 }
 0xb58   : > { %v1523_v57 = vpop.xlane.xlu0 %1522 }
 0xb59   : > { %v1526_v58 = vadd.f32 1e-12, %v1524_v56  ;;  %v1525_v59 = vmul.f32 0.03125, %v1523_v57 }
 0xb5b   : > { %3052 = vrsqrt.f32 %v1526_v58  ;;  %v1527_v60 = vadd.f32 1e-12, %v1525_v59 }
 0xb5d   : > { %3054 = vrsqrt.f32 %v1527_v60 }
 0xb65   : > { %v3053_v61 = vpop.eup %3052 }
 0xb66   : > { %v1530_v63 = vmul.f32 %v3053_v61, %v1514_v39 }
 0xb67   : > { %v3055_v0 = vpop.eup %3054 }
 0xb68   : > { %v1538_v1 = vmul.f32 %v2638_v62, %v1530_v63  ;;  %v1531_v2 = vmul.f32 %v3055_v0, %v1515_v50 }
 0xb6a   : > { %v1539_v4 = vmul.f32 %v2638_v62, %v1531_v2  ;;  %v3519_v6 = vadd.f32 %v2639_v3, %v1538_v1 }
 0xb6c   : > { %v3521_v7 = vadd.f32 %v2639_v3, %v1539_v4 }
 0xb6e   : > { %v1553_v8 = vpack.c.bf16 %v3521_v7, %v3519_v6 }
 0xb70   : > { %2858 = vmatmul.mubr.msk.bf16.vlgmr.msra.gmra.mrb[24].mxu0 %vm638_vm0, %v1553_v8 }
 0xb71   : > { %2863 = vmatprep.mubr.msk.bf16.mxu0 %vm3151_vm1, %v3150_v15 }
 0xc43   : > { %v1611_v10 = vpop.f32.mrb[24].mxu0 }
 0xc44   : > { %v1612_v11 = vadd.f32 %v2645_v9, %v1611_v10  ;;  %v2859_v12 = vpop.f32.mrb[25].mxu0 }
 0xc45   : > { %v1614_v13 = vpop.f32.mrb[26].mxu0 }
 0xc46   : > { %v3531_v14 = vpack.c.bf16 %v1612_v11, %v1612_v11  ;;  %v1615_v16 = vadd.f32 %v2645_v9, %v1614_v13  ;;  %v2860_v17 = vpop.f32.mrb[27].mxu0 }
 0xc48   : > { %1732 = vrot.lane.b32.xlu0 %v3531_v14, %s3792_s22  ;;  %1620 = vrot.lane.b32.xlu1 %v3531_v14, %s3793_s28  ;;  %v3537_v18 = vpack.c.bf16 %v1615_v16, %v1615_v16 }
 0xc4c   : > { %1730 = vrot.lane.b32.xlu1 %v3531_v14, %s3794_s25  ;;  %1959 = vrot.lane.b32.xlu0 %v3537_v18, %s3794_s25  ;;  %s3797_s25 = smov 16  }
 0xc50   : > { %1849 = vrot.lane.b32.xlu1 %v3537_v18, %s3793_s28  ;;  %s3695_s28 = scalar_lea.hbm %s3758_s18, %s2703_s24 }
 0xc54   : > { %1961 = vrot.lane.b32.xlu1 %v3537_v18, %s3792_s22 }
 0xcba   : > { %v1621_v19 = vpop.permute.xlu1 %1620  ;;  %v1733_v21 = vpop.permute.xlu0 %1732 }
 0xcbb   : > { %v1626_v20 = vsel %vm756_vm2, %v1621_v19, 0  ;;  %v1738_v23 = vsel %vm756_vm2, %v1733_v21, 0 }
 0xcbc   : > { %2862 = vmatpush3.bf16.xpose.msra.mxu0 %v1626_v20 }
 0xcbd   : > { %2873 = vmatprep.subr.bf16.mxu0 %v3150_v15 }
 0xcbe   : > { %v1731_v22 = vpop.permute.xlu1 %1730  ;;  %v1960_v28 = vpop.permute.xlu0 %1959 }
 0xcc2   : > { %v1850_v24 = vpop.permute.xlu1 %1849 }
 0xcc3   : > { %2864 = vmatmul.mubr.msk.bf16.vlgmr.msra.gmra.mrb[28].mxu0 %vm756_vm2, %v3531_v14  ;;  %v1855_v25 = vsel %vm756_vm2, %v1850_v24, 0 }
 0xcc4   : > { %2874 = vmatpush3.bf16.xpose.msra.mxu0 %v1738_v23  ;;  %2875 = vmatprep.mubr.msk.bf16.mxu0 %vm3151_vm1, %v3150_v15 }
 0xcc5   : > { %2885 = vmatprep.subr.bf16.mxu0 %v3150_v15 }
 0xcc6   : > { %v1962_v26 = vpop.permute.xlu1 %1961 }
 0xcc7   : > { %v1967_v27 = vsel %vm756_vm2, %v1962_v26, 0 }
 0xccb   : > { %2876 = vmatmul.mubr.msk.bf16.vlgmr.msra.gmra.mrb[32].mxu0 %vm756_vm2, %v1731_v22 }
 0xccc   : > { %2886 = vmatpush3.bf16.xpose.msra.mxu0 %v1855_v25  ;;  %2887 = vmatprep.mubr.msk.bf16.mxu0 %vm3151_vm1, %v3150_v15 }
 0xccd   : > { %2897 = vmatprep.subr.bf16.mxu0 %v3150_v15 }
 0xcd3   : > { %2888 = vmatmul.mubr.msk.bf16.vlgmr.msra.gmra.mrb[36].mxu0 %vm756_vm2, %v3537_v18 }
 0xcd4   : > { %2898 = vmatpush3.bf16.xpose.msra.mxu0 %v1967_v27  ;;  %2899 = vmatprep.mubr.msk.bf16.mxu0 %vm3151_vm1, %v3150_v15 }
 0xcd5   : > { %2909 = vmatprep.subr.bf16.mxu0 %v3150_v15 }
 0xcdb   : > { %2900 = vmatmul.mubr.msk.bf16.vlgmr.msra.gmra.mrb[40].mxu0 %vm756_vm2, %v1960_v28 }
 0xcdc   : > { %2913 = vmatprep.mubr.msk.bf16.mxu0 %vm3151_vm1, %v3150_v15 }
 0xd96   : > { %v1662_v29 = vpop.f32.mrb[28].mxu0 }
 0xd97   : > { %v1668_v30 = vmul.f32 0.25, %v1662_v29  ;;  %v2865_v33 = vpop.f32.mrb[29].mxu0 }
 0xd98   : > { %v1665_v34 = vpop.f32.mrb[30].mxu0 }
 0xd99   : > { %v2866_v35 = vpop.f32.mrb[31].mxu0  ;;  %v1669_v36 = vadd.f32 %v3392_v54, %v1668_v30 }
 0xd9b   : > { %v1670_v37 = vsel %vm811_vm3, %v1669_v36, -inf }
 0xd9c   : > { %1671 = vmax.xlane.f32.xlu1 %v1670_v37 }
 0xd9e   : > { %v1774_v38 = vpop.f32.mrb[32].mxu0 }
 0xd9f   : > { %v1780_v40 = vmul.f32 0.25, %v1774_v38  ;;  %v2877_v41 = vpop.f32.mrb[33].mxu0 }
 0xda0   : > { %v1777_v43 = vpop.f32.mrb[34].mxu0 }
 0xda1   : > { %v2878_v44 = vpop.f32.mrb[35].mxu0  ;;  %v1781_v45 = vadd.f32 %v3392_v54, %v1780_v40 }
 0xda2   : > { %v3014_v44 = vld [vmem:[%s3789_s6 + $0x10] sm:$0xff]  }
 0xda3   : > { %v1782_v46 = vsel %vm811_vm3, %v1781_v45, -inf  ;;  %2910 = vmatpush3.bf16.msra.mxu0 %v3014_v44 }
 0xda4   : > { %1783 = vmax.xlane.f32.xlu0 %v1782_v46  ;;  %2911 = vmatprep.subr.bf16.mxu0 %v3150_v15 }
 0xda6   : > { %v1891_v47 = vpop.f32.mrb[36].mxu0 }
 0xda7   : > { %v1897_v48 = vmul.f32 0.25, %v1891_v47  ;;  %v2889_v39 = vpop.f32.mrb[37].mxu0 }
 0xda8   : > { %v1894_v49 = vpop.f32.mrb[38].mxu0 }
 0xda9   : > { %v2890_v50 = vpop.f32.mrb[39].mxu0  ;;  %v1898_v51 = vadd.f32 %v3398_v5, %v1897_v48 }
 0xdab   : > { %v1899_v52 = vsel %vm811_vm3, %v1898_v51, -inf }
 0xdac   : > { %1900 = vmax.xlane.f32.xlu0 %v1899_v52  ;;  %v3015_v52 = vld [vmem:[%s3789_s6 + $0x18] sm:$0xff]  }
 0xdad   : > { %2912 = vmatpush3.bf16.msra.mxu0 %v3015_v52 }
 0xdae   : > { %v2003_v31 = vpop.f32.mrb[40].mxu0  ;;  %2925 = vmatprep.subr.bf16.mxu0 %v3150_v15 }
 0xdaf   : > { %v2009_v32 = vmul.f32 0.25, %v2003_v31  ;;  %v2901_v42 = vpop.f32.mrb[41].mxu0 }
 0xdb0   : > { %v2006_v53 = vpop.f32.mrb[42].mxu0 }
 0xdb1   : > { %v2902_v55 = vpop.f32.mrb[43].mxu0  ;;  %v2010_v54 = vadd.f32 %v3398_v5, %v2009_v32 }
 0xdb3   : > { %v2011_v56 = vsel %vm811_vm3, %v2010_v54, -inf }
 0xdb4   : > { %2012 = vmax.xlane.f32.xlu0 %v2011_v56 }
 0xe29   : > { %v1672_v57 = vpop.xlane.xlu1 %1671 }
 0xe2a   : > { %v1673_v58 = vsub.f32 %v1669_v36, %v1672_v57 }
 0xe2c   : > { %v1674_v59 = vmul.f32 1.442695, %v1673_v58 }
 0xe2e   : > { %3056 = vpow2.f32 %v1674_v59 }
 0xe31   : > { %v1784_v60 = vpop.xlane.xlu0 %1783 }
 0xe32   : > { %v1785_v61 = vsub.f32 %v1781_v45, %v1784_v60 }
 0xe34   : > { %v1786_v62 = vmul.f32 1.442695, %v1785_v61 }
 0xe36   : > { %3058 = vpow2.f32 %v1786_v62 }
 0xe38   : > { %v3057_v63 = vpop.eup %3056 }
 0xe39   : > { %v1676_v0 = vsel %vm811_vm3, %v3057_v63, 0.0  ;;  %v1901_v1 = vpop.xlane.xlu0 %1900 }
 0xe3a   : > { %1677 = vadd.xlane.f32.xlu1 %v1676_v0  ;;  %v1902_v11 = vsub.f32 %v1898_v51, %v1901_v1  ;;  %v2662_v1 = vld [vmem:[%s3790_s7 + $0x1] ss:$0 sm:$0xff]  ;;  %s3158_s7 = smov [#allocation2]  }
 0xe3c   : > { %v1903_v12 = vmul.f32 1.442695, %v1902_v11 }
 0xe40   : > { %v3059_v2 = vpop.eup %3058 }
 0xe41   : > { %v2013_v3 = vpop.xlane.xlu0 %2012  ;;  %v1788_v5 = vsel %vm811_vm3, %v3059_v2, 0.0 }
 0xe42   : > { %v2014_v4 = vsub.f32 %v2010_v54, %v2013_v3  ;;  %1789 = vadd.xlane.f32.xlu0 %v1788_v5 }
 0xe44   : > { %v2015_v8 = vmul.f32 1.442695, %v2014_v4 }
 0xe46   : > { %3060 = vpow2.f32 %v2015_v8 }
 0xe47   : > { %3062 = vpow2.f32 %v1903_v12 }
 0xe4b   : > { %1682 = vrot.lane.b32.xlu1 %v3531_v14, %s3795_s27 }
 0xe50   : > { %v3061_v9 = vpop.eup %3060 }
 0xe51   : > { %v2017_v10 = vsel %vm811_vm3, %v3061_v9, 0.0  ;;  %v3063_v13 = vpop.eup %3062 }
 0xe52   : > { %2018 = vadd.xlane.f32.xlu0 %v2017_v10  ;;  %v1905_v16 = vsel %vm811_vm3, %v3063_v13, 0.0 }
 0xe68   : > { %1794 = vrot.lane.b32.xlu0 %v3531_v14, %s3796_s23 }
 0xe6f   : > { %1906 = vadd.xlane.f32.xlu1 %v1905_v16 }
 0xe80   : > { %1911 = vrot.lane.b32.xlu1 %v3537_v18, %s3795_s27  ;;  %s2601_s27 = sshll.u32 %s609_s4, 1 }
 0xe84   : > { %2023 = vrot.lane.b32.xlu1 %v3537_v18, %s3796_s23  ;;  %s611_s23 = scalar_lea.vmem [#allocation2], %s2601_s27  ;;  %s3090_s27 = sshll.u32 %s3158_s7, 4  ;;  %s3091_s27 = int_to_ptr.vmem [resolvable:$false] %s3090_s27 }
 0xe85   : > { %s2502_s29 = sshll.u32 %s611_s23, 4  ;;  %s2503_s29 = int_to_ptr.vmem [resolvable:$true] %s2502_s29 }
 0xe86   : > { %s3086_s6 = scalar_lea.vmem %s2503_s29, 32  ;;  %p3093_p0 = scmp.lt.s32.totalorder %s2503_s29, %s3091_s27 }
 0xe87   : > { %p3087_p11 = scmp.ne.s32.totalorder %s2503_s29, %s3086_s6 }
 0xe89   : > { %p3088_p12 = pnand %p3087_p11, %p3297_p5 }
 0xe8b   : > { %p3089_p13 = pneg %p3088_p12 }
 0xec7   : > { %v1678_v17 = vpop.xlane.xlu1 %1677 }
 0xec8   : > { %3064 = vrcp.f32 %v1678_v17 }
 0xecb   : > { %v1683_v19 = vpop.permute.xlu1 %1682 }
 0xecc   : > { %v1688_v20 = vsel %vm829_vm4, %v1683_v19, 0 }
 0xecd   : > { %2868 = vmatpush3.bf16.msra.mxu1 %v1688_v20 }
 0xece   : > { %2879 = vmatprep.subr.bf16.mxu1 %v3150_v15 }
 0xecf   : > { %v1790_v14 = vpop.xlane.xlu0 %1789 }
 0xed0   : > { %3066 = vrcp.f32 %v1790_v14 }
 0xed2   : > { %v3065_v21 = vpop.eup %3064 }
 0xed3   : > { %v1680_v22 = vmul.f32 %v3065_v21, %v3057_v63 }
 0xed5   : > { %v1681_v23 = vpack.c.bf16 %v1680_v22, %v1680_v22 }
 0xed7   : > { %2870 = vmatmul.mubr.msk.bf16.vlgmr.msra.gmra.mrb[24].mxu1 %vm811_vm3, %v1681_v23 }
 0xed8   : > { %2881 = vmatprep.mubr.msk.bf16.mxu1 %vm3151_vm1, %v3150_v15 }
 0xeda   : > { %v3067_v24 = vpop.eup %3066 }
 0xedb   : > { %v1792_v25 = vmul.f32 %v3067_v24, %v3059_v2 }
 0xedd   : > { %v1793_v28 = vpack.c.bf16 %v1792_v25, %v1792_v25 }
 0xedf   : > { %v2019_v18 = vpop.xlane.xlu0 %2018 }
 0xee3   : > { %v1795_v26 = vpop.permute.xlu0 %1794 }
 0xee4   : > { %v1800_v27 = vsel %vm829_vm4, %v1795_v26, 0 }
 0xee5   : > { %2880 = vmatpush3.bf16.msra.mxu1 %v1800_v27 }
 0xee6   : > { %2891 = vmatprep.subr.bf16.mxu1 %v3150_v15 }
 0xee8   : > { %2882 = vmatmul.mubr.msk.bf16.vlgmr.msra.gmra.mrb[28].mxu1 %vm811_vm3, %v1793_v28 }
 0xee9   : > { %2893 = vmatprep.mubr.msk.bf16.mxu1 %vm3151_vm1, %v3150_v15 }
 0xefc   : > { %v1907_v29 = vpop.xlane.xlu1 %1906 }
 0xefd   : > { %3068 = vrcp.f32 %v1907_v29 }
 0xefe   : > { %3070 = vrcp.f32 %v2019_v18  ;;  %v3017_v18 = vld [vmem:[%s3750_s10 + $0x18] sm:$0xff]  }
 0xf00   : > { %v1912_v30 = vpop.permute.xlu1 %1911 }
 0xf01   : > { %v1917_v33 = vsel %vm829_vm4, %v1912_v30, 0 }
 0xf02   : > { %2892 = vmatpush3.bf16.msra.mxu1 %v1917_v33 }
 0xf03   : > { %2903 = vmatprep.subr.bf16.mxu1 %v3150_v15 }
 0xf04   : > { %v2024_v36 = vpop.permute.xlu1 %2023 }
 0xf05   : > { %v2029_v40 = vsel %vm829_vm4, %v2024_v36, 0 }
 0xf07   : > { %v3069_v34 = vpop.eup %3068 }
 0xf08   : > { %v1909_v35 = vmul.f32 %v3069_v34, %v3063_v13  ;;  %v3071_v38 = vpop.eup %3070 }
 0xf09   : > { %v2021_v41 = vmul.f32 %v3071_v38, %v3061_v9 }
 0xf0a   : > { %v1910_v37 = vpack.c.bf16 %v1909_v35, %v1909_v35  ;;  %v2668_v35 = vld [vmem:[%s3791_s8 + $0x1] ss:$0 sm:$0xff]  ;;  %s3092_s8 = scalar_lea.vmem %s3091_s27, 64 }
 0xf0b   : > { %v2022_v43 = vpack.c.bf16 %v2021_v41, %v2021_v41  ;;  %p3094_p1 = scmp.lt.s32.totalorder %s3092_s8, %s3086_s6 }
 0xf0c   : > { %2894 = vmatmul.mubr.msk.bf16.vlgmr.msra.gmra.mrb[32].mxu1 %vm811_vm3, %v1910_v37 }
 0xf0d   : > { %2904 = vmatpush3.bf16.msra.mxu1 %v2029_v40  ;;  %2905 = vmatprep.mubr.msk.bf16.mxu1 %vm3151_vm1, %v3150_v15  ;;  %v2669_v40 = vld [vmem:[%s3749_s9 + $0x1] ss:$0 sm:$0xff]  ;;  %p3095_p2 = por %p3094_p1, %p3093_p0 }
 0xf0e   : > { %2917 = vmatprep.subr.bf16.mxu1 %v3150_v15 }
 0xf0f   : > { %p3096_p3 = pnand %p3095_p2, %p3089_p13 }
 0xf14   : > { %2906 = vmatmul.mubr.msk.bf16.vlgmr.msra.gmra.mrb[36].mxu1 %vm811_vm3, %v2022_v43 }
 0xf15   : > { %2921 = vmatprep.mubr.msk.bf16.mxu1 %vm3151_vm1, %v3150_v15 }
 0xfaa   : > { %v1724_v45 = vpop.f32.mrb[24].mxu1 }
 0xfab   : > { %v2871_v46 = vpop.f32.mrb[25].mxu1 }
 0xfac   : > { %v1727_v47 = vpop.f32.mrb[26].mxu1  ;;  %v3018_v46 = vld [vmem:[%s3752_s12 + $0x20] sm:$0xff]  }
 0xfad   : > { %v2872_v48 = vpop.f32.mrb[27].mxu1  ;;  %v3019_v47 = vld [vmem:[%s3752_s12 + $0x28] sm:$0xff]  }
 0xfae   : > { %v3020_v48 = vld [vmem:[%s3752_s12 + $0x30] sm:$0xff]  }
 0xfbb   : > { %v1836_v39 = vpop.f32.mrb[28].mxu1 }
 0xfbc   : > { %v2883_v49 = vpop.f32.mrb[29].mxu1 }
 0xfbd   : > { %v1839_v50 = vpop.f32.mrb[30].mxu1  ;;  %v2675_v49 = vld [vmem:[%s3751_s11 + $0x1] ss:$0 sm:$0xff] }
 0xfbe   : > { %v2884_v51 = vpop.f32.mrb[31].mxu1 }
 0xfdf   : > { %v1953_v31 = vpop.f32.mrb[32].mxu1 }
 0xfe0   : > { %v2895_v32 = vpop.f32.mrb[33].mxu1 }
 0xfe1   : > { %v1956_v42 = vpop.f32.mrb[34].mxu1 }
 0xfe2   : > { %v2896_v53 = vpop.f32.mrb[35].mxu1 }
 0xfe7   : > { %v2065_v55 = vpop.f32.mrb[36].mxu1 }
 0xfe8   : > { %v2997_v54 = vpack.i.bf16 %v2065_v55, %v1836_v39  ;;  %v2907_v56 = vpop.f32.mrb[37].mxu1  ;;  %v3021_v39 = vld [vmem:[%s3752_s12 + $0x38] sm:$0xff]  }
 0xfe9   : > { %v2068_v57 = vpop.f32.mrb[38].mxu1 }
 0xfea   : > { %2998 = vrot.lane.b32.xlu1 %v2997_v54, %s3797_s25  ;;  %v2908_v58 = vpop.f32.mrb[39].mxu1  ;;  %s2485_s25 = scalar_lea.sflag [#allocation3], %s609_s4 }
0x105c   : > { %v2999_v59 = vpop.permute.xlu1 %2998 }
0x105d   : > { %v3001_v60 = vunpack.i.h.bf16 %v2999_v59  ;;  %v3000_v61 = vunpack.i.l.bf16 %v2999_v59 }
0x105f   : > { %v2075_v62 = vsel %vm756_vm2, %v1953_v31, %v3001_v60  ;;  %v1846_v63 = vsel %vm756_vm2, %v1724_v45, %v3000_v61 }
0x1060   : > { %v2081_v0 = vpack.c.bf16 %v2075_v62, %v1846_v63 }
0x1062   : > { %2914 = vmatmul.mubr.msk.bf16.vlgmr.msra.gmra.mrb[44].mxu0 %vm638_vm0, %v2081_v0  ;;  %v2688_v0 = vld [vmem:[%s3753_s13 + $0x1] ss:$0 sm:$0xff] }
0x1063   : > { %2933 = vmatprep.mubr.msk.bf16.mxu0 %vm3151_vm1, %v3150_v15  ;;  %2926 = vmatpush3.bf16.msra.mxu0 %v3018_v46 }
0x1064   : > { %2927 = vmatprep.subr.bf16.mxu0 %v3150_v15 }
0x1067   : > { %2928 = vmatpush3.bf16.msra.mxu0 %v3019_v47 }
0x1068   : > { %2929 = vmatprep.subr.bf16.mxu0 %v3150_v15 }
0x106b   : > { %2930 = vmatpush3.bf16.msra.mxu0 %v3020_v48 }
0x106c   : > { %2931 = vmatprep.subr.bf16.mxu0 %v3150_v15 }
0x106f   : > { %2932 = vmatpush3.bf16.msra.mxu0 %v3021_v39 }
0x1135   : > { %v2139_v2 = vpop.f32.mrb[44].mxu0 }
0x1136   : > { %v2140_v3 = vadd.f32 %v2662_v1, %v2139_v2  ;;  %v2915_v5 = vpop.f32.mrb[45].mxu0 }
0x1137   : > { %v2142_v4 = vpop.f32.mrb[46].mxu0 }
0x1138   : > { %v2143_v8 = vadd.f32 %v2662_v1, %v2142_v4  ;;  %v2916_v9 = vpop.f32.mrb[47].mxu0  ;;  %v2146_v10 = vadd.f32 %v2140_v3, %v3519_v6 }
0x113a   : > { %v2152_v11 = vsel %vm638_vm0, %v2146_v10, 0.0  ;;  %v2147_v12 = vadd.f32 %v2143_v8, %v3521_v7  ;;  %v3016_v7 = vld [vmem:[%s3750_s10 + $0x10] sm:$0xff]  }
0x113b   : > { %2153 = vadd.xlane.f32.xlu0 %v2152_v11  ;;  %2918 = vmatpush3.bf16.msra.mxu1 %v3016_v7  ;;  %v3023_v7 = vld [vmem:[%s3756_s16 + $0x8] sm:$0xff]  }
0x113c   : > { %v2155_v13 = vsel %vm638_vm0, %v2147_v12, 0.0  ;;  %2919 = vmatprep.subr.bf16.mxu1 %v3150_v15 }
0x113d   : > { %2156 = vadd.xlane.f32.xlu1 %v2155_v13 }
0x113f   : > { %2920 = vmatpush3.bf16.msra.mxu1 %v3017_v18 }
0x1140   : > { %2937 = vmatprep.subr.bf16.mxu1 %v3150_v15 }
0x11c8   : > { %v2154_v16 = vpop.xlane.xlu0 %2153 }
0x11c9   : > { %v2158_v17 = vmul.f32 0.03125, %v2154_v16 }
0x11ca   : > { %v2157_v19 = vpop.xlane.xlu1 %2156 }
0x11cb   : > { %v2160_v20 = vsub.f32 %v2146_v10, %v2158_v17  ;;  %v2159_v21 = vmul.f32 0.03125, %v2157_v19 }
0x11cd   : > { %v2161_v14 = vsub.f32 %v2147_v12, %v2159_v21  ;;  %v2162_v22 = vmul.f32 %v2160_v20, %v2160_v20 }
0x11cf   : > { %v2164_v23 = vsel %vm638_vm0, %v2162_v22, 0.0  ;;  %v2163_v24 = vmul.f32 %v2161_v14, %v2161_v14 }
0x11d0   : > { %2165 = vadd.xlane.f32.xlu0 %v2164_v23 }
0x11d1   : > { %v2167_v6 = vsel %vm638_vm0, %v2163_v24, 0.0 }
0x11d4   : > { %2168 = vadd.xlane.f32.xlu0 %v2167_v6  ;;  %v3022_v6 = vld [vmem:[%s3756_s16] sm:$0xff]  }
0x125d   : > { %v2166_v25 = vpop.xlane.xlu0 %2165 }
0x125e   : > { %v2170_v26 = vmul.f32 0.03125, %v2166_v25 }
0x1260   : > { %v2172_v27 = vadd.f32 1e-12, %v2170_v26 }
0x1261   : > { %v2169_v28 = vpop.xlane.xlu0 %2168 }
0x1262   : > { %3072 = vrsqrt.f32 %v2172_v27  ;;  %v2171_v29 = vmul.f32 0.03125, %v2169_v28 }
0x1264   : > { %v2173_v30 = vadd.f32 1e-12, %v2171_v29 }
0x1266   : > { %3074 = vrsqrt.f32 %v2173_v30 }
0x126c   : > { %v3073_v33 = vpop.eup %3072 }
0x126d   : > { %v2176_v34 = vmul.f32 %v3073_v33, %v2160_v20 }
0x126f   : > { %v2184_v37 = vmul.f32 %v2668_v35, %v2176_v34 }
0x1270   : > { %v3075_v36 = vpop.eup %3074 }
0x1271   : > { %v2177_v38 = vmul.f32 %v3075_v36, %v2161_v14  ;;  %v2192_v43 = vadd.f32 %v2669_v40, %v2184_v37 }
0x1273   : > { %v2185_v41 = vmul.f32 %v2668_v35, %v2177_v38  ;;  %v2697_v38 = vld [vmem:[%s3755_s15 + $0x1] ss:$0 sm:$0xff] }
0x1275   : > { %v2193_v44 = vadd.f32 %v2669_v40, %v2185_v41 }
0x1277   : > { %v2199_v45 = vpack.c.bf16 %v2193_v44, %v2192_v43 }
0x1279   : > { %2922 = vmatmul.mubr.msk.bf16.vlgmr.msra.gmra.mrb[40].mxu1 %vm638_vm0, %v2199_v45 }
0x127a   : > { %2941 = vmatprep.mubr.msk.bf16.mxu1 %vm3151_vm1, %v3150_v15  ;;  %2938 = vmatpush3.bf16.msra.mxu1 %v3022_v6 }
0x127b   : > { %2939 = vmatprep.subr.bf16.mxu1 %v3150_v15  ;;  %v2696_v15 = vld [vmem:[%s3754_s14 + $0x1] ss:$0 sm:$0xff] }
0x127e   : > { %2940 = vmatpush3.bf16.msra.mxu1 %v3023_v7 }
0x134c   : > { %v2257_v50 = vpop.f32.mrb[40].mxu1 }
0x134d   : > { %v2258_v51 = vadd.f32 %v2675_v49, %v2257_v50  ;;  %v2923_v52 = vpop.f32.mrb[41].mxu1 }
0x134e   : > { %v2260_v31 = vpop.f32.mrb[42].mxu1 }
0x134f   : > { %v2266_v32 = vmul.f32 0.70710677, %v2258_v51  ;;  %v2261_v42 = vadd.f32 %v2675_v49, %v2260_v31  ;;  %v2924_v53 = vpop.f32.mrb[43].mxu1  ;;  %v2264_v58 = vmul.f32 0.5, %v2258_v51 }
0x1351   : > { %3076 = verf.f32 %v2266_v32  ;;  %v2267_v55 = vmul.f32 0.70710677, %v2261_v42  ;;  %v2265_v59 = vmul.f32 0.5, %v2261_v42 }
0x1353   : > { %3078 = verf.f32 %v2267_v55 }
0x135b   : > { %v3077_v54 = vpop.eup %3076 }
0x135c   : > { %v2270_v56 = vadd.f32 1.0, %v3077_v54 }
0x135d   : > { %v3079_v57 = vpop.eup %3078 }
0x135e   : > { %v2271_v60 = vadd.f32 1.0, %v3079_v57  ;;  %v2272_v61 = vmul.f32 %v2270_v56, %v2264_v58 }
0x1360   : > { %v2273_v62 = vmul.f32 %v2271_v60, %v2265_v59 }
0x1362   : > { %v2283_v63 = vpack.c.bf16 %v2273_v62, %v2272_v61 }
0x1364   : > { %2934 = vmatmul.mubr.msk.bf16.vlgmr.msra.gmra.mrb[48].mxu0 %vm1457_vm5, %v2283_v63 }
0x1437   : > { %v2353_v1 = vpop.f32.mrb[48].mxu0 }
0x1438   : > { %v2354_v2 = vadd.f32 %v2688_v0, %v2353_v1  ;;  %v2935_v3 = vpop.f32.mrb[49].mxu0 }
0x1439   : > { %v2356_v5 = vpop.f32.mrb[50].mxu0 }
0x143a   : > { %v2357_v4 = vadd.f32 %v2688_v0, %v2356_v5  ;;  %v2936_v8 = vpop.f32.mrb[51].mxu0  ;;  %v2360_v9 = vadd.f32 %v2354_v2, %v2192_v43 }
0x143c   : > { %v2366_v10 = vsel %vm638_vm0, %v2360_v9, 0.0  ;;  %v2361_v11 = vadd.f32 %v2357_v4, %v2193_v44 }
0x143d   : > { %2367 = vadd.xlane.f32.xlu1 %v2366_v10 }
0x143e   : > { %v2369_v12 = vsel %vm638_vm0, %v2361_v11, 0.0 }
0x143f   : > { %2370 = vadd.xlane.f32.xlu0 %v2369_v12 }
0x14ca   : > { %v2368_v13 = vpop.xlane.xlu1 %2367 }
0x14cb   : > { %v2372_v16 = vmul.f32 0.03125, %v2368_v13 }
0x14cc   : > { %v2371_v17 = vpop.xlane.xlu0 %2370 }
0x14cd   : > { %v2374_v19 = vsub.f32 %v2360_v9, %v2372_v16  ;;  %v2373_v20 = vmul.f32 0.03125, %v2371_v17 }
0x14cf   : > { %v2375_v21 = vsub.f32 %v2361_v11, %v2373_v20  ;;  %v2376_v14 = vmul.f32 %v2374_v19, %v2374_v19 }
0x14d1   : > { %v2378_v22 = vsel %vm638_vm0, %v2376_v14, 0.0  ;;  %v2377_v23 = vmul.f32 %v2375_v21, %v2375_v21 }
0x14d2   : > { %2379 = vadd.xlane.f32.xlu1 %v2378_v22 }
0x14d3   : > { %v2381_v24 = vsel %vm638_vm0, %v2377_v23, 0.0 }
0x14d4   : > { %2382 = vadd.xlane.f32.xlu0 %v2381_v24 }
0x155f   : > { %v2380_v18 = vpop.xlane.xlu1 %2379 }
0x1560   : > { %v2384_v25 = vmul.f32 0.03125, %v2380_v18 }
0x1561   : > { %v2383_v26 = vpop.xlane.xlu0 %2382 }
0x1562   : > { %v2386_v27 = vadd.f32 1e-12, %v2384_v25  ;;  %v2385_v28 = vmul.f32 0.03125, %v2383_v26 }
0x1564   : > { %3080 = vrsqrt.f32 %v2386_v27  ;;  %v2387_v29 = vadd.f32 1e-12, %v2385_v28 }
0x1566   : > { %3082 = vrsqrt.f32 %v2387_v29 }
0x156e   : > { %v3081_v30 = vpop.eup %3080 }
0x156f   : > { %v2390_v33 = vmul.f32 %v3081_v30, %v2374_v19 }
0x1570   : > { %v3083_v34 = vpop.eup %3082 }
0x1571   : > { %v2391_v35 = vmul.f32 %v3083_v34, %v2375_v21  ;;  %v2398_v36 = vmul.f32 %v2696_v15, %v2390_v33 }
0x1573   : > { %v2399_v37 = vmul.f32 %v2696_v15, %v2391_v35  ;;  %v2406_v41 = vadd.f32 %v2697_v38, %v2398_v36 }
0x1575   : > { %v2407_v40 = vadd.f32 %v2697_v38, %v2399_v37 }
0x1577   : > { %v2409_v43 = vrot.slane %v2407_v40, 7 }
0x1579   : > { %v2412_v44 = vsel %vm2411_vm6, %v2406_v41, %v2409_v43 }
0x157a   : > { %v2417_v45 = vpack.c.bf16 %v2412_v44, %v2412_v44  ;;  %2482 = vst.msk [vmem:[%s611_s23] sm:$0x3] %vm2481_vm7, %v2412_v44 }
0x157c   : > { %2942 = vmatmul.mubr.msk.bf16.vlgmr.msra.gmra.mrb[44].mxu1 %vm638_vm0, %v2417_v45 }
0x157d   : > { %3099 = shalt.err (!%p3096_p3)
}
0x157e   : > { %s3100_s5 = scalar_lea.hbm %s3695_s28, 32  ;;  %s3104_s7 = scalar_lea.hbm %s3758_s18, 64 }
0x157f   : > { %p3101_p4 = scmp.ne.s32.totalorder %s3695_s28, %s3100_s5  ;;  %p3105_p9 = scmp.lt.u32.totalorder %s3695_s28, %s3758_s18 }
0x1580   : > { %p3106_p10 = scmp.lt.u32.totalorder %s3104_s7, %s3100_s5  ;;  %p3108_p12 = scmp.lt.u32.totalorder %s3100_s5, %s3695_s28 }
0x1581   : > { %p3102_p7 = pnand %p3101_p4, %p3297_p5 }
0x1582   : > { %p3107_p11 = por %p3106_p10, %p3105_p9 }
0x1583   : > { %p3103_p8 = pneg %p3102_p7 }
0x1584   : > { %p3109_p13 = por %p3108_p12, %p3107_p11 }
0x1586   : > { %p3110_p0 = pnand %p3109_p13, %p3103_p8 }
0x1588   : > { %3113 = shalt.err (!%p3110_p0)
}
0x1589   : > { %2945 = dma.vmem_to_hbm [thread:$0]  (%p3297_p5), %s2503_s29, 32, %s3695_s28, %s2485_s25   ;;  %v2698_v46 = vld [vmem:[%s3757_s17] ss:$0 sm:$0xff] }
0x158a   : > { %p629_p1 = scmp.lt.s32.totalorder %s3280_s1, 1 }
0x158c   : > { %s3806_s1 = smov (!%p629_p1, %s3280_s1), 1 }
0x158d   : > { %s2605_s27 = sshll.u32 %s3806_s1, 1 }
0x158e   : > { %s632_s3 = scalar_lea.vmem %s3759_s19, %s2605_s27 }
0x164f   : > { %v2474_v47 = vpop.f32.mrb[44].mxu1 }
0x1650   : > { %v2475_v48 = vadd.f32 %v2698_v46, %v2474_v47  ;;  %v2943_v39 = vpop.f32.mrb[45].mxu1 }
0x1651   : > { %v2477_v49 = vpop.f32.mrb[46].mxu1 }
0x1652   : > { %3084 = vtanh.f32 %v2475_v48  ;;  %v2944_v50 = vpop.f32.mrb[47].mxu1 }
0x165c   : > { %v3085_v51 = vpop.eup %3084 }
0x165d   : > { %2483 = vst.msk [vmem:[%s632_s3] sm:$0x3] %vm2481_vm7, %v3085_v51 }
0x165e PF: > { %p2951_p5 = scmp.ge.s32.totalorder %s3148_s21, 2  ;;  %s2517_s29 = sand.u32 1, %s3136_s0  }
0x165f   : > { %s2518_s28 = scalar_lea.sflag [#allocation3], %s2517_s29 }
0x1660   : > { %p2948_p2 = pnand %p2951_p5, %p3301_p6 }
0x1662   : > { %3131 = dma.done.wait (!%p2948_p2), %s2518_s28, 32  }
0x1663   : > { %3133 = vsyncadd (!%p2948_p2), %s2518_s28, 4294967264  ;;  %s3798_s1 = sld [smem:[#allocation5_spill]]  ;;  %p30_p3 = scmp.ge.s32.totalorder %s3284_s2, 4  }
0x1664   : > { %s3799_s0 = smov %s3140_s30  ;;  %s3800_s30 = smov %s3144_s20 }
0x1665   : > { %s3802_s21 = smov %s3284_s2  ;;  %32 = sbr.rel (!%p30_p3) target bundleno = 13 (0xd), region = 154 }
0x1669   : > { %s3801_s20 = smov %s3798_s1 }
0x166c   :  { %2530 = vsyncpa [#allocation3], 1 }
0x166d   :  { %2532 = vsyncpa [#allocation3 + $0x1], 1 }

</bundles_post_ra>
